<compile_context>
chip_gen: v7x
topology: tpu7x:2x2x1
jax: 0.10.0
libtpu: 0.0.40
codegen_flags: <defaults>
</compile_context>

<pallas_src>
import jax
import jax.numpy as jnp
from jax import lax
from jax.experimental import pallas as pl
from jax.experimental.pallas import tpu as pltpu

N_EMBED = 384
BLOCK_SIZE = 64  # causal-mask buffer size in the PyTorch module (T must be <= this)


def _head_kernel(x_ref, wqkv_ref, o_ref):
    # x_ref: (Bb, T, C) bf16; wqkv_ref: (C, 3H) bf16; o_ref: (Bb, T, H) f32
    Bb, T, C = x_ref.shape
    H = wqkv_ref.shape[1] // 3

    # ---- fused QKV projection: one tall MXU matmul, f32 accumulation ----
    x2d = x_ref[...].reshape(Bb * T, C)                      # leading-dim merge (layout-preserving)
    qkv = jnp.dot(x2d, wqkv_ref[...],
                  preferred_element_type=jnp.float32)        # (Bb*T, 3H) f32

    # bf16 operands for the attention matmuls (f32 accumulation below).
    # 1/sqrt(H) is already folded into the query columns of wqkv.
    q = qkv[:, 0 * H:1 * H].astype(jnp.bfloat16).reshape(Bb, T, H)
    k = qkv[:, 1 * H:2 * H].astype(jnp.bfloat16).reshape(Bb, T, H)
    v = qkv[:, 2 * H:3 * H].astype(jnp.bfloat16).reshape(Bb, T, H)

    # ---- attention scores, contracting over H (no explicit k transpose) ----
    wei = jnp.einsum('bqh,bkh->bqk', q, k,
                     preferred_element_type=jnp.float32)     # (Bb, T, T) f32

    # causal mask (tril): positions j > i -> -inf (diagonal never masked -> no NaN rows)
    row = lax.broadcasted_iota(jnp.int32, (T, T), 0)
    col = lax.broadcasted_iota(jnp.int32, (T, T), 1)
    wei = jnp.where((col <= row)[None, :, :], wei, -jnp.inf)

    # softmax along last axis (f32; exp + approx reciprocal use the EUP slot)
    m = jnp.max(wei, axis=-1, keepdims=True)
    e = jnp.exp(wei - m)
    s = jnp.sum(e, axis=-1, keepdims=True)
    p = (e * pl.reciprocal(s, approx=True)).astype(jnp.bfloat16)

    # dropout(p) in eval mode == identity

    out = jnp.einsum('bqk,bkh->bqh', p, v,
                     preferred_element_type=jnp.float32)     # (Bb, T, H) f32
    o_ref[...] = out.astype(o_ref.dtype)


def pack_head_weights(w_key, w_query, w_value):
    """Done ONCE at weight-load time (hoisted out of the per-call path).

    nn.Linear computes x @ W.T -> pre-transpose, fuse [q|k|v] columns, and fold
    the 1/sqrt(head_size) softmax scale into the query weight. Returns bf16.
    """
    H = w_key.shape[0]
    scale = float(H) ** -0.5
    wqkv = jnp.concatenate([w_query.T * scale, w_key.T, w_value.T], axis=1)  # (C, 3H)
    return wqkv.astype(jnp.bfloat16)


def _grid_steps_for_device(B):
    """1 step on single-TC chips (v5e/v6e); 2 steps on dual-TC v7x."""
    try:
        kind = jax.devices()[0].device_kind.lower()
    except Exception:
        kind = ""
    two_tc = ("v7" in kind) or ("7x" in kind)
    return 2 if (two_tc and B >= 2) else 1


def head_forward(x, wqkv_bf):
    """x: (B, T, C) float32; wqkv_bf: (C, 3*head_size) bf16 from pack_head_weights."""
    B, T, C = x.shape
    H = wqkv_bf.shape[1] // 3
    assert C == N_EMBED and T <= BLOCK_SIZE

    steps = _grid_steps_for_device(B)
    Bb = (B + steps - 1) // steps
    Bp = Bb * steps

    # bf16 MXU input (halves x DMA bytes); accumulation/softmax stay f32 in-kernel.
    x_bf = x.astype(jnp.bfloat16)
    if Bp != B:
        # Pad batch instead of degrading to tiny per-step matmuls for odd B.
        x_bf = jnp.pad(x_bf, ((0, Bp - B), (0, 0), (0, 0)))

    out = pl.pallas_call(
        _head_kernel,
        out_shape=jax.ShapeDtypeStruct((Bp, T, H), x.dtype),
        grid_spec=pltpu.PrefetchScalarGridSpec(
            num_scalar_prefetch=0,
            grid=(steps,),
            in_specs=[
                pl.BlockSpec((Bb, T, C), lambda b: (b, 0, 0)),
                pl.BlockSpec((C, 3 * H), lambda b: (0, 0)),   # weight resident across grid
            ],
            out_specs=pl.BlockSpec((Bb, T, H), lambda b: (b, 0, 0)),
        ),
        compiler_params=pltpu.CompilerParams(
            dimension_semantics=("parallel",)),
    )(x_bf, wqkv_bf)

    return out[:B] if Bp != B else out


def head_forward_ref(x, w_key, w_query, w_value):
    """Pure-JAX reference mirroring the PyTorch forward (eval mode), all f32."""
    k = x @ w_key.T
    q = x @ w_query.T
    v = x @ w_value.T
    T = x.shape[1]
    wei = (q @ jnp.swapaxes(k, -2, -1)) * (k.shape[-1] ** -0.5)
    tril = jnp.tril(jnp.ones((T, T), dtype=bool))
    wei = jnp.where(tril, wei, -jnp.inf)
    wei = jax.nn.softmax(wei, axis=-1)
    return wei @ v


if __name__ == "__main__":
    B, T, C = 8, BLOCK_SIZE, N_EMBED
    head_size = 64   # n_embed // n_heads in the source model (384 / 6)

    key = jax.random.PRNGKey(0)
    kx, kk, kq, kv = jax.random.split(key, 4)

    x = jax.random.normal(kx, (B, T, C), dtype=jnp.float32)
    # Deterministic init, shapes as in nn.Linear(n_embed, head_size, bias=False).weight
    w_key = jax.random.normal(kk, (head_size, C), dtype=jnp.float32) * 0.02
    w_query = jax.random.normal(kq, (head_size, C), dtype=jnp.float32) * 0.02
    w_value = jax.random.normal(kv, (head_size, C), dtype=jnp.float32) * 0.02

    # Weight packing done once (outside the hot path); forward jitted so the
    # x cast/pad fuses into a single dispatch with the pallas_call.
    wqkv_bf = jax.block_until_ready(pack_head_weights(w_key, w_query, w_value))
    fwd = jax.jit(head_forward)

    out = jax.block_until_ready(fwd(x, wqkv_bf))

    ref = head_forward_ref(x, w_key, w_query, w_value)
    assert out.shape == (B, T, head_size)
    # bf16 MXU operands + approx reciprocal -> loosened tolerance vs f32 reference.
    assert jnp.allclose(out, ref, atol=2e-2, rtol=2e-2), "mismatch vs reference"

    print("KERNEL_OK")
</pallas_src>

<mosaic_0001>
module attributes {stable_mosaic.version = 11 : i64} {
  func.func @_head_kernel(%arg0: i32, %arg1: memref<8x64x384xbf16, #tpu.memory_space<vmem>>, %arg2: memref<384x192xbf16, #tpu.memory_space<vmem>>, %arg3: memref<8x64x64xf32, #tpu.memory_space<vmem>>) attributes {dimension_semantics = [#tpu.dimension_semantics<parallel>], iteration_bounds = array<i64: 1>, scalar_prefetch = 0 : i64, scratch_operands = 0 : i64, tpu.core_type = #tpu.core_type<tc>, window_params = [{transform_indices = @transform_0, window_bounds = array<i64: 8, 64, 384>}, {pipeline_mode = #tpu.pipeline_mode<synchronous>, transform_indices = @transform_1, window_bounds = array<i64: 384, 192>}, {transform_indices = @transform_2, window_bounds = array<i64: 8, 64, 64>}]} {
    %c0 = arith.constant 0 : index
    %c0_0 = arith.constant 0 : index
    %c0_1 = arith.constant 0 : index
    %0 = vector.load %arg1[%c0, %c0_0, %c0_1] : memref<8x64x384xbf16, #tpu.memory_space<vmem>>, vector<8x64x384xbf16>
    %1 = vector.shape_cast %0 : vector<8x64x384xbf16> to vector<512x384xbf16>
    %c0_2 = arith.constant 0 : index
    %c0_3 = arith.constant 0 : index
    %2 = vector.load %arg2[%c0_2, %c0_3] : memref<384x192xbf16, #tpu.memory_space<vmem>>, vector<384x192xbf16>
    %cst = arith.constant dense<0.000000e+00> : vector<512x192xf32>
    %3 = tpu.matmul %1, %2, %cst {dimension_numbers = #tpu.dot_dimension_numbers<[1], [0], [0], [1], [0, 0, 1, 1], [], []>} : vector<512x384xbf16>, vector<384x192xbf16>, vector<512x192xf32> -> vector<512x192xf32>
    %4 = vector.extract_strided_slice %3 {offsets = [0, 0], sizes = [512, 64], strides = [1, 1]} : vector<512x192xf32> to vector<512x64xf32>
    %5 = arith.truncf %4 : vector<512x64xf32> to vector<512x64xbf16>
    %6 = vector.shape_cast %5 : vector<512x64xbf16> to vector<8x64x64xbf16>
    %7 = vector.extract_strided_slice %3 {offsets = [0, 64], sizes = [512, 64], strides = [1, 1]} : vector<512x192xf32> to vector<512x64xf32>
    %8 = arith.truncf %7 : vector<512x64xf32> to vector<512x64xbf16>
    %9 = vector.shape_cast %8 : vector<512x64xbf16> to vector<8x64x64xbf16>
    %10 = vector.extract_strided_slice %3 {offsets = [0, 128], sizes = [512, 64], strides = [1, 1]} : vector<512x192xf32> to vector<512x64xf32>
    %11 = arith.truncf %10 : vector<512x64xf32> to vector<512x64xbf16>
    %12 = vector.shape_cast %11 : vector<512x64xbf16> to vector<8x64x64xbf16>
    "tpu.trace_start"() <{level = 10 : i32, message = "bqh,bkh->bqk"}> : () -> ()
    %cst_4 = arith.constant dense<0.000000e+00> : vector<8x64x64xf32>
    %13 = tpu.matmul %6, %9, %cst_4 {dimension_numbers = #tpu.dot_dimension_numbers<[2], [2], [1], [1], [0, 0, 0, 1, 1, 1], [0], [0]>} : vector<8x64x64xbf16>, vector<8x64x64xbf16>, vector<8x64x64xf32> -> vector<8x64x64xf32>
    "tpu.trace_stop"() : () -> ()
    %14 = tpu.iota {dimensions = array<i32: 0>} : vector<64x64xi32>
    %15 = tpu.iota {dimensions = array<i32: 1>} : vector<64x64xi32>
    %16 = arith.cmpi sle, %15, %14 : vector<64x64xi32>
    %17 = vector.shape_cast %16 : vector<64x64xi1> to vector<1x64x64xi1>
    %cst_5 = arith.constant 0xFF800000 : f32
    %18 = vector.shape_cast %17 : vector<1x64x64xi1> to vector<1x64x64xi1>
    %19 = vector.broadcast %18 : vector<1x64x64xi1> to vector<8x64x64xi1>
    %20 = vector.broadcast %cst_5 : f32 to vector<8x64x64xf32>
    %21 = arith.select %19, %13, %20 : vector<8x64x64xi1>, vector<8x64x64xf32>
    %cst_6 = arith.constant dense<0xFF800000> : vector<8x64xf32>
    %22 = vector.multi_reduction <maximumf>, %21, %cst_6 [2] : vector<8x64x64xf32> to vector<8x64xf32>
    %23 = vector.shape_cast %22 : vector<8x64xf32> to vector<8x64x1xf32>
    %24 = vector.broadcast %23 : vector<8x64x1xf32> to vector<8x64x64xf32>
    %25 = arith.subf %21, %24 : vector<8x64x64xf32>
    %26 = math.exp %25 : vector<8x64x64xf32>
    %cst_7 = arith.constant dense<0.000000e+00> : vector<8x64xf32>
    %27 = vector.multi_reduction <add>, %26, %cst_7 [2] : vector<8x64x64xf32> to vector<8x64xf32>
    %28 = vector.shape_cast %27 : vector<8x64xf32> to vector<8x64x1xf32>
    %29 = tpu.reciprocal %28 {approx = true} : vector<8x64x1xf32> -> vector<8x64x1xf32>
    %30 = vector.broadcast %29 : vector<8x64x1xf32> to vector<8x64x64xf32>
    %31 = arith.mulf %26, %30 : vector<8x64x64xf32>
    %32 = arith.truncf %31 : vector<8x64x64xf32> to vector<8x64x64xbf16>
    "tpu.trace_start"() <{level = 10 : i32, message = "bqk,bkh->bqh"}> : () -> ()
    %cst_8 = arith.constant dense<0.000000e+00> : vector<8x64x64xf32>
    %33 = tpu.matmul %32, %12, %cst_8 {dimension_numbers = #tpu.dot_dimension_numbers<[2], [1], [1], [2], [0, 0, 0, 1, 1, 2], [0], [0]>} : vector<8x64x64xbf16>, vector<8x64x64xbf16>, vector<8x64x64xf32> -> vector<8x64x64xf32>
    "tpu.trace_stop"() : () -> ()
    %c0_9 = arith.constant 0 : index
    %c0_10 = arith.constant 0 : index
    %c0_11 = arith.constant 0 : index
    %34 = vector.load %arg3[%c0_9, %c0_10, %c0_11] : memref<8x64x64xf32, #tpu.memory_space<vmem>>, vector<8x64x64xf32>
    tpu.vector_store %arg3[%c0_9, %c0_10, %c0_11], %33 {strides = array<i32>} : memref<8x64x64xf32, #tpu.memory_space<vmem>>, vector<8x64x64xf32>,
    return
  }
  func.func @transform_0(%arg0: i32) -> (i32, i32, i32) {
    %c0_i32 = arith.constant 0 : i32
    %c0_i32_0 = arith.constant 0 : i32
    %c0_i32_1 = arith.constant 0 : i32
    return %arg0, %c0_i32, %c0_i32_0 : i32, i32, i32
  }
  func.func @transform_1(%arg0: i32) -> (i32, i32) {
    %c0_i32 = arith.constant 0 : i32
    %c0_i32_0 = arith.constant 0 : i32
    %c0_i32_1 = arith.constant 0 : i32
    return %c0_i32, %c0_i32_0 : i32, i32
  }
  func.func @transform_2(%arg0: i32) -> (i32, i32, i32) {
    %c0_i32 = arith.constant 0 : i32
    %c0_i32_0 = arith.constant 0 : i32
    %c0_i32_1 = arith.constant 0 : i32
    return %arg0, %c0_i32, %c0_i32_0 : i32, i32, i32
  }
}

</mosaic_0001>

<bundles_post_ra>
// kernel: head_forward.1
= control target key start
LH: loop header
LB: loop body
LE: loop exit
PB: predicated region body
PF: predicated region fallthrough
CT: control target
= control target key end

     0   :  { %s7208_s0 = inlined_call_operand.vmem [shape: bf16[8,64,384], index: 0, kind: input, shape index: {}]   ;;  %s7209_s1 = inlined_call_operand.vmem [shape: bf16[384,192], index: 1, kind: input, shape index: {}]   ;;  %s7210_s2 = inlined_call_operand.hbm [shape: f32[8,64,64], index: 2, kind: output, shape index: {}]  }
   0x1   :  { %v4824_v0 = vld [vmem:[%s7209_s1 + $0x4] ss:$8 sps:$4 sm:$0xff]   ;;  %v4826_v1 = vld [vmem:[%s7209_s1] ss:$8 sps:$4 sm:$0xff]   ;;  %v4827_v2 = vld [vmem:[%s7209_s1 + $0x14] ss:$8 sps:$4 sm:$0xff]  }
   0x2   :  { %941 = vmatprep.subr.bf16.mxu0 %v4824_v0  ;;  %v4829_v3 = vld [vmem:[%s7209_s1 + $0x10] ss:$8 sps:$4 sm:$0xff]   ;;  %v4830_v4 = vld [vmem:[%s7209_s1 + $0x24] ss:$8 sps:$4 sm:$0xff]   ;;  %v4832_v5 = vld [vmem:[%s7209_s1 + $0x20] ss:$8 sps:$4 sm:$0xff]  }
   0x3   :  { %942 = vmatpush1.bf16.msra.mxu0 %v4826_v1  ;;  %v4833_v6 = vld [vmem:[%s7209_s1 + $0x34] ss:$8 sps:$4 sm:$0xff]   ;;  %v4835_v7 = vld [vmem:[%s7209_s1 + $0x30] ss:$8 sps:$4 sm:$0xff]   ;;  %v4836_v8 = vld [vmem:[%s7209_s1 + $0x44] ss:$8 sps:$4 sm:$0xff]  }
   0x4   :  { %943 = vmatprep.subr.bf16.mxu0 %v4827_v2  ;;  %v4838_v9 = vld [vmem:[%s7209_s1 + $0x40] ss:$8 sps:$4 sm:$0xff]   ;;  %v4839_v10 = vld [vmem:[%s7209_s1 + $0x54] ss:$8 sps:$4 sm:$0xff]   ;;  %v4841_v11 = vld [vmem:[%s7209_s1 + $0x50] ss:$8 sps:$4 sm:$0xff]  }
   0x5   :  { %v4842_v12 = vld [vmem:[%s7209_s1 + $0x64] ss:$8 sps:$4 sm:$0xff]   ;;  %v4844_v14 = vld [vmem:[%s7209_s1 + $0x60] ss:$8 sps:$4 sm:$0xff]   ;;  %v4845_v15 = vld [vmem:[%s7209_s1 + $0x74] ss:$8 sps:$4 sm:$0xff]  }
   0x6   :  { %v4874_v13 = vld [vmem:[%s7208_s0 + $0x4] ss:$12 sps:$4 sm:$0xff]   ;;  %v4850_v18 = vld [vmem:[%s7209_s1 + $0x80] ss:$8 sps:$4 sm:$0xff]   ;;  %v4851_v19 = vld [vmem:[%s7209_s1 + $0x94] ss:$8 sps:$4 sm:$0xff]  }
   0x7   :  { %944 = vmatpush1.bf16.msra.mxu0 %v4829_v3  ;;  %973 = vmatprep.mubr.bf16.mxu0 %v4874_v13  ;;  %v4847_v16 = vld [vmem:[%s7209_s1 + $0x70] ss:$8 sps:$4 sm:$0xff]   ;;  %v4848_v17 = vld [vmem:[%s7209_s1 + $0x84] ss:$8 sps:$4 sm:$0xff]   ;;  %v4896_v20 = vld [vmem:[%s7209_s1 + $0x100] ss:$8 sps:$4 sm:$0xff]  }
   0x8   :  { %945 = vmatprep.subr.bf16.mxu0 %v4830_v4  ;;  %v4898_v21 = vld [vmem:[%s7209_s1 + $0x104] ss:$8 sps:$4 sm:$0xff]   ;;  %v4853_v22 = vld [vmem:[%s7209_s1 + $0x90] ss:$8 sps:$4 sm:$0xff]   ;;  %v4856_v24 = vld [vmem:[%s7209_s1 + $0xa0] ss:$8 sps:$4 sm:$0xff]  }
   0x9   :  { %4643 = vmatprep.subr.bf16.mxu1 %v4898_v21  ;;  %v4854_v23 = vld [vmem:[%s7209_s1 + $0xa4] ss:$8 sps:$4 sm:$0xff]   ;;  %v4911_v25 = vld [vmem:[%s7209_s1 + $0x110] ss:$8 sps:$4 sm:$0xff]   ;;  %v4913_v26 = vld [vmem:[%s7209_s1 + $0x114] ss:$8 sps:$4 sm:$0xff]  }
   0xa   :  { %4651 = vmatpush1.bf16.msra.mxu1 %v4896_v20  ;;  %v4857_v27 = vld [vmem:[%s7209_s1 + $0xb4] ss:$8 sps:$4 sm:$0xff]   ;;  %v4859_v28 = vld [vmem:[%s7209_s1 + $0xb0] ss:$8 sps:$4 sm:$0xff]   ;;  %v4860_v29 = vld [vmem:[%s7209_s1 + $0xc4] ss:$8 sps:$4 sm:$0xff]  }
   0xb   :  { %946 = vmatpush1.bf16.msra.mxu0 %v4832_v5  ;;  %4644 = vmatprep.subr.bf16.mxu1 %v4913_v26  ;;  %v4862_v30 = vld [vmem:[%s7209_s1 + $0xc0] ss:$8 sps:$4 sm:$0xff]   ;;  %v4863_v31 = vld [vmem:[%s7209_s1 + $0xd4] ss:$8 sps:$4 sm:$0xff]   ;;  %v4865_v32 = vld [vmem:[%s7209_s1 + $0xd0] ss:$8 sps:$4 sm:$0xff]  }
   0xc   :  { %947 = vmatprep.subr.bf16.mxu0 %v4833_v6  ;;  %v4866_v33 = vld [vmem:[%s7209_s1 + $0xe4] ss:$8 sps:$4 sm:$0xff]   ;;  %v4868_v34 = vld [vmem:[%s7209_s1 + $0xe0] ss:$8 sps:$4 sm:$0xff]   ;;  %v4869_v35 = vld [vmem:[%s7209_s1 + $0xf4] ss:$8 sps:$4 sm:$0xff]  }
   0xd   :  { %v4926_v36 = vld [vmem:[%s7209_s1 + $0x120] ss:$8 sps:$4 sm:$0xff]   ;;  %v4928_v37 = vld [vmem:[%s7209_s1 + $0x124] ss:$8 sps:$4 sm:$0xff]   ;;  %v4871_v38 = vld [vmem:[%s7209_s1 + $0xf0] ss:$8 sps:$4 sm:$0xff]  }
   0xe   :  { %4652 = vmatpush1.bf16.msra.mxu1 %v4911_v25  ;;  %v4872_v39 = vld [vmem:[%s7208_s0] ss:$12 sps:$4 sm:$0xff]   ;;  %v4875_v40 = vld [vmem:[%s7208_s0 + $0x1c] ss:$12 sps:$4 sm:$0xff]   ;;  %v4877_v41 = vld [vmem:[%s7208_s0 + $0x18] ss:$12 sps:$4 sm:$0xff]  }
   0xf   :  { %948 = vmatpush1.bf16.msra.mxu0 %v4835_v7  ;;  %4645 = vmatprep.subr.bf16.mxu1 %v4928_v37  ;;  %v4878_v42 = vld [vmem:[%s7208_s0 + $0x34] ss:$12 sps:$4 sm:$0xff]   ;;  %v4880_v43 = vld [vmem:[%s7208_s0 + $0x30] ss:$12 sps:$4 sm:$0xff]   ;;  %v4881_v44 = vld [vmem:[%s7208_s0 + $0x4c] ss:$12 sps:$4 sm:$0xff]  }
  0x10   :  { %949 = vmatprep.subr.bf16.mxu0 %v4836_v8  ;;  %v4938_v45 = vld [vmem:[%s7209_s1 + $0x134] ss:$8 sps:$4 sm:$0xff]   ;;  %v4940_v46 = vld [vmem:[%s7209_s1 + $0x130] ss:$8 sps:$4 sm:$0xff]  }
  0x12   :  { %4653 = vmatpush1.bf16.msra.mxu1 %v4926_v36 }
  0x13   :  { %950 = vmatpush1.bf16.msra.mxu0 %v4838_v9  ;;  %4646 = vmatprep.subr.bf16.mxu1 %v4938_v45 }
  0x14   :  { %951 = vmatprep.subr.bf16.mxu0 %v4839_v10 }
  0x16   :  { %4654 = vmatpush1.bf16.msra.mxu1 %v4940_v46 }
  0x17   :  { %952 = vmatpush1.bf16.msra.mxu0 %v4841_v11 }
  0x18   :  { %953 = vmatprep.subr.bf16.mxu0 %v4842_v12 }
  0x1b   :  { %954 = vmatpush1.bf16.msra.mxu0 %v4844_v14 }
  0x1c   :  { %955 = vmatprep.subr.bf16.mxu0 %v4845_v15 }
  0x1f   :  { %956 = vmatpush1.bf16.msra.mxu0 %v4847_v16 }
  0x20   :  { %957 = vmatprep.subr.bf16.mxu0 %v4848_v17 }
  0x23   :  { %958 = vmatpush1.bf16.msra.mxu0 %v4850_v18 }
  0x24   :  { %959 = vmatprep.subr.bf16.mxu0 %v4851_v19 }
  0x27   :  { %960 = vmatpush1.bf16.msra.mxu0 %v4853_v22 }
  0x28   :  { %961 = vmatprep.subr.bf16.mxu0 %v4854_v23 }
  0x2b   :  { %962 = vmatpush1.bf16.msra.mxu0 %v4856_v24 }
  0x2c   :  { %963 = vmatprep.subr.bf16.mxu0 %v4857_v27 }
  0x2f   :  { %964 = vmatpush1.bf16.msra.mxu0 %v4859_v28 }
  0x30   :  { %965 = vmatprep.subr.bf16.mxu0 %v4860_v29 }
  0x33   :  { %966 = vmatpush1.bf16.msra.mxu0 %v4862_v30 }
  0x34   :  { %967 = vmatprep.subr.bf16.mxu0 %v4863_v31 }
  0x37   :  { %968 = vmatpush1.bf16.msra.mxu0 %v4865_v32 }
  0x38   :  { %969 = vmatprep.subr.bf16.mxu0 %v4866_v33 }
  0x3b   :  { %970 = vmatpush1.bf16.msra.mxu0 %v4868_v34 }
  0x3c   :  { %971 = vmatprep.subr.bf16.mxu0 %v4869_v35 }
  0x3f   :  { %972 = vmatpush1.bf16.msra.mxu0 %v4871_v38 }
  0x40   :  { %1294 = vmatprep.subr.bf16.mxu0 %v4898_v21 }
  0x42   :  { %974 = vmatmul.mubr.bf16.vlgmr.msra.gmra.mrb[0].mxu0 %v4872_v39 }
  0x43   :  { %983 = vmatprep.mubr.bf16.mxu0 %v4875_v40  ;;  %1295 = vmatpush1.bf16.msra.mxu0 %v4896_v20 }
  0x44   :  { %1296 = vmatprep.subr.bf16.mxu0 %v4913_v26 }
  0x47   :  { %1297 = vmatpush1.bf16.msra.mxu0 %v4911_v25 }
  0x48   :  { %1298 = vmatprep.subr.bf16.mxu0 %v4928_v37 }
  0x4a   :  { %984 = vmatmul.mubr.bf16.gmra.mrb[4].mxu0 %v4877_v41 }
  0x4b   :  { %993 = vmatprep.mubr.bf16.mxu0 %v4878_v42  ;;  %1299 = vmatpush1.bf16.msra.mxu0 %v4926_v36 }
  0x4c   :  { %1300 = vmatprep.subr.bf16.mxu0 %v4938_v45 }
  0x4f   :  { %1301 = vmatpush1.bf16.msra.mxu0 %v4940_v46 }
  0x52   :  { %994 = vmatmul.mubr.bf16.gmra.mrb[8].mxu0 %v4880_v43 }
  0x53   :  { %1003 = vmatprep.mubr.bf16.mxu0 %v4881_v44 }
  0x54   :  { %7 = vsyncpa [#allocation3], 0  ;;  %v4883_v47 = vld [vmem:[%s7208_s0 + $0x48] ss:$12 sps:$4 sm:$0xff]   ;;  %v4884_v48 = vld [vmem:[%s7208_s0 + $0x64] ss:$12 sps:$4 sm:$0xff]  }
  0x55   :  { %v4944_v49 = vld [vmem:[%s7209_s1 + $0x144] ss:$8 sps:$4 sm:$0xff]   ;;  %v4946_v50 = vld [vmem:[%s7209_s1 + $0x140] ss:$8 sps:$4 sm:$0xff]   ;;  %v4947_v51 = vld [vmem:[%s7209_s1 + $0x154] ss:$8 sps:$4 sm:$0xff]  }
  0x56   :  { %4647 = vmatprep.subr.bf16.mxu1 %v4944_v49  ;;  %v4949_v52 = vld [vmem:[%s7209_s1 + $0x150] ss:$8 sps:$4 sm:$0xff]   ;;  %1302 = vmatprep.subr.bf16.mxu0 %v4944_v49  ;;  %v4886_v53 = vld [vmem:[%s7208_s0 + $0x60] ss:$12 sps:$4 sm:$0xff]   ;;  %v4887_v54 = vld [vmem:[%s7208_s0 + $0x7c] ss:$12 sps:$4 sm:$0xff]  }
  0x57   :  { %4655 = vmatpush1.bf16.msra.mxu1 %v4946_v50  ;;  %1303 = vmatpush1.bf16.msra.mxu0 %v4946_v50  ;;  %v4953_v55 = vld [vmem:[%s7209_s1 + $0x164] ss:$8 sps:$4 sm:$0xff]   ;;  %v4955_v56 = vld [vmem:[%s7209_s1 + $0x160] ss:$8 sps:$4 sm:$0xff]   ;;  %v4956_v57 = vld [vmem:[%s7209_s1 + $0x174] ss:$8 sps:$4 sm:$0xff]  }
  0x58   :  { %4648 = vmatprep.subr.bf16.mxu1 %v4947_v51  ;;  %1304 = vmatprep.subr.bf16.mxu0 %v4947_v51  ;;  %v4958_v58 = vld [vmem:[%s7209_s1 + $0x170] ss:$8 sps:$4 sm:$0xff]   ;;  %v5304_v59 = vmov 0   ;;  %v4890_v61 = vld [vmem:[%s7208_s0 + $0x94] ss:$12 sps:$4 sm:$0xff]   ;;  %vm1723_vm0 = vcmask 523264  }
  0x59   :  { %1536 = vmatprep.mubr.bf16.mxu1 %v5304_v59  ;;  %v4889_v60 = vld [vmem:[%s7208_s0 + $0x78] ss:$12 sps:$4 sm:$0xff]   ;;  %v4962_v62 = vld [vmem:[%s7208_s0 + $0x200] ss:$12 sps:$4 sm:$0xff]   ;;  %v4892_v63 = vld [vmem:[%s7208_s0 + $0x90] ss:$12 sps:$4 sm:$0xff]  }
  0x5a   :  { %1004 = vmatmul.mubr.bf16.gmra.mrb[12].mxu0 %v4883_v47  ;;  %v4893_v0 = vld [vmem:[%s7208_s0 + $0xac] ss:$12 sps:$4 sm:$0xff]   ;;  %v4895_v2 = vld [vmem:[%s7208_s0 + $0xa8] ss:$12 sps:$4 sm:$0xff]   ;;  %v4899_v3 = vld [vmem:[%s7208_s0 + $0xc4] ss:$12 sps:$4 sm:$0xff]  }
  0x5b   :  { %1013 = vmatprep.mubr.bf16.mxu0 %v4884_v48  ;;  %4656 = vmatpush1.bf16.msra.mxu1 %v4949_v52  ;;  %v4966_v1 = vld [vmem:[%s7208_s0 + $0x218] ss:$12 sps:$4 sm:$0xff]   ;;  %v4970_v4 = vld [vmem:[%s7208_s0 + $0x230] ss:$12 sps:$4 sm:$0xff]   ;;  %v4901_v5 = vld [vmem:[%s7208_s0 + $0xc0] ss:$12 sps:$4 sm:$0xff]  }
  0x5c   :  { %1305 = vmatpush1.bf16.msra.mxu0 %v4949_v52  ;;  %4649 = vmatprep.subr.bf16.mxu1 %v4953_v55  ;;  %v4902_v6 = vld [vmem:[%s7208_s0 + $0xdc] ss:$12 sps:$4 sm:$0xff]   ;;  %v4904_v8 = vld [vmem:[%s7208_s0 + $0xd8] ss:$12 sps:$4 sm:$0xff]   ;;  %v4905_v9 = vld [vmem:[%s7208_s0 + $0xf4] ss:$12 sps:$4 sm:$0xff]  }
  0x5d   :  { %1306 = vmatprep.subr.bf16.mxu0 %v4953_v55  ;;  %v4974_v7 = vld [vmem:[%s7208_s0 + $0x248] ss:$12 sps:$4 sm:$0xff]   ;;  %v4978_v10 = vld [vmem:[%s7208_s0 + $0x260] ss:$12 sps:$4 sm:$0xff]   ;;  %v4907_v11 = vld [vmem:[%s7208_s0 + $0xf0] ss:$12 sps:$4 sm:$0xff]  }
  0x5e   :  { %v4908_v12 = vld [vmem:[%s7208_s0 + $0x10c] ss:$12 sps:$4 sm:$0xff]   ;;  %v4910_v14 = vld [vmem:[%s7208_s0 + $0x108] ss:$12 sps:$4 sm:$0xff]   ;;  %v4914_v15 = vld [vmem:[%s7208_s0 + $0x124] ss:$12 sps:$4 sm:$0xff]  }
  0x5f   :  { %4657 = vmatpush1.bf16.msra.mxu1 %v4955_v56  ;;  %v4982_v13 = vld [vmem:[%s7208_s0 + $0x278] ss:$12 sps:$4 sm:$0xff]   ;;  %v4986_v16 = vld [vmem:[%s7208_s0 + $0x290] ss:$12 sps:$4 sm:$0xff]   ;;  %v4916_v17 = vld [vmem:[%s7208_s0 + $0x120] ss:$12 sps:$4 sm:$0xff]  }
  0x60   :  { %4650 = vmatprep.subr.bf16.mxu1 %v4956_v57  ;;  %1307 = vmatpush1.bf16.msra.mxu0 %v4955_v56  ;;  %v4917_v18 = vld [vmem:[%s7208_s0 + $0x13c] ss:$12 sps:$4 sm:$0xff]   ;;  %v4919_v20 = vld [vmem:[%s7208_s0 + $0x138] ss:$12 sps:$4 sm:$0xff]   ;;  %v4920_v21 = vld [vmem:[%s7208_s0 + $0x154] ss:$12 sps:$4 sm:$0xff]  }
  0x61   :  { %1308 = vmatprep.subr.bf16.mxu0 %v4956_v57  ;;  %v4990_v19 = vld [vmem:[%s7208_s0 + $0x2a8] ss:$12 sps:$4 sm:$0xff]   ;;  %v4994_v22 = vld [vmem:[%s7208_s0 + $0x2c0] ss:$12 sps:$4 sm:$0xff]   ;;  %v4922_v23 = vld [vmem:[%s7208_s0 + $0x150] ss:$12 sps:$4 sm:$0xff]  }
  0x62   :  { %1014 = vmatmul.mubr.bf16.gmra.mrb[16].mxu0 %v4886_v53  ;;  %v4923_v24 = vld [vmem:[%s7208_s0 + $0x16c] ss:$12 sps:$4 sm:$0xff]   ;;  %v4925_v26 = vld [vmem:[%s7208_s0 + $0x168] ss:$12 sps:$4 sm:$0xff]   ;;  %v4929_v27 = vld [vmem:[%s7208_s0 + $0x184] ss:$12 sps:$4 sm:$0xff]  }
  0x63   :  { %1023 = vmatprep.mubr.bf16.mxu0 %v4887_v54  ;;  %4658 = vmatpush1.bf16.msra.mxu1 %v4958_v58  ;;  %v4998_v25 = vld [vmem:[%s7208_s0 + $0x2d8] ss:$12 sps:$4 sm:$0xff]   ;;  %v5002_v28 = vld [vmem:[%s7208_s0 + $0x2f0] ss:$12 sps:$4 sm:$0xff]   ;;  %v4931_v29 = vld [vmem:[%s7208_s0 + $0x180] ss:$12 sps:$4 sm:$0xff]  }
  0x64   :  { %1309 = vmatpush1.bf16.msra.mxu0 %v4958_v58  ;;  %v4932_v30 = vld [vmem:[%s7208_s0 + $0x19c] ss:$12 sps:$4 sm:$0xff]   ;;  %v4934_v31 = vld [vmem:[%s7208_s0 + $0x198] ss:$12 sps:$4 sm:$0xff]   ;;  %v4935_v32 = vld [vmem:[%s7208_s0 + $0x1b4] ss:$12 sps:$4 sm:$0xff]  }
  0x65   :  { %v4937_v33 = vld [vmem:[%s7208_s0 + $0x1b0] ss:$12 sps:$4 sm:$0xff]   ;;  %v4941_v34 = vld [vmem:[%s7208_s0 + $0x1cc] ss:$12 sps:$4 sm:$0xff]   ;;  %v4943_v35 = vld [vmem:[%s7208_s0 + $0x1c8] ss:$12 sps:$4 sm:$0xff]  }
  0x66   :  { %1537 = vmatmul.mubr.bf16.vlgmr.msra.gmra.mrb[0].mxu1 %v4962_v62  ;;  %v4950_v36 = vld [vmem:[%s7208_s0 + $0x1e4] ss:$12 sps:$4 sm:$0xff]   ;;  %v4952_v37 = vld [vmem:[%s7208_s0 + $0x1e0] ss:$12 sps:$4 sm:$0xff]   ;;  %v4959_v38 = vld [vmem:[%s7208_s0 + $0x1fc] ss:$12 sps:$4 sm:$0xff]  }
  0x67   :  { %1546 = vmatprep.mubr.bf16.mxu1 %v5304_v59  ;;  %v4961_v39 = vld [vmem:[%s7208_s0 + $0x1f8] ss:$12 sps:$4 sm:$0xff]   ;;  %v4963_v40 = vld [vmem:[%s7208_s0 + $0x214] ss:$12 sps:$4 sm:$0xff]   ;;  %v4965_v41 = vld [vmem:[%s7208_s0 + $0x210] ss:$12 sps:$4 sm:$0xff]  }
  0x68   :  { %v4967_v42 = vld [vmem:[%s7208_s0 + $0x22c] ss:$12 sps:$4 sm:$0xff]   ;;  %v4969_v43 = vld [vmem:[%s7208_s0 + $0x228] ss:$12 sps:$4 sm:$0xff]   ;;  %v4971_v44 = vld [vmem:[%s7208_s0 + $0x244] ss:$12 sps:$4 sm:$0xff]  }
  0x69   :  { %v4973_v45 = vld [vmem:[%s7208_s0 + $0x240] ss:$12 sps:$4 sm:$0xff]   ;;  %v4975_v46 = vld [vmem:[%s7208_s0 + $0x25c] ss:$12 sps:$4 sm:$0xff]   ;;  %v4977_v47 = vld [vmem:[%s7208_s0 + $0x258] ss:$12 sps:$4 sm:$0xff]  }
  0x6a   :  { %1024 = vmatmul.mubr.bf16.gmra.mrb[20].mxu0 %v4889_v60  ;;  %v4979_v48 = vld [vmem:[%s7208_s0 + $0x274] ss:$12 sps:$4 sm:$0xff]   ;;  %v4981_v49 = vld [vmem:[%s7208_s0 + $0x270] ss:$12 sps:$4 sm:$0xff]   ;;  %v4983_v50 = vld [vmem:[%s7208_s0 + $0x28c] ss:$12 sps:$4 sm:$0xff]  }
  0x6b   :  { %1033 = vmatprep.mubr.bf16.mxu0 %v4890_v61  ;;  %v4985_v51 = vld [vmem:[%s7208_s0 + $0x288] ss:$12 sps:$4 sm:$0xff]   ;;  %v4987_v52 = vld [vmem:[%s7208_s0 + $0x2a4] ss:$12 sps:$4 sm:$0xff]   ;;  %v4989_v53 = vld [vmem:[%s7208_s0 + $0x2a0] ss:$12 sps:$4 sm:$0xff]  }
  0x6c   :  { %v4991_v54 = vld [vmem:[%s7208_s0 + $0x2bc] ss:$12 sps:$4 sm:$0xff]   ;;  %v4993_v55 = vld [vmem:[%s7208_s0 + $0x2b8] ss:$12 sps:$4 sm:$0xff]   ;;  %v4995_v56 = vld [vmem:[%s7208_s0 + $0x2d4] ss:$12 sps:$4 sm:$0xff]  }
  0x6d   :  { %v4997_v57 = vld [vmem:[%s7208_s0 + $0x2d0] ss:$12 sps:$4 sm:$0xff]   ;;  %v4999_v58 = vld [vmem:[%s7208_s0 + $0x2ec] ss:$12 sps:$4 sm:$0xff]   ;;  %v5001_v60 = vld [vmem:[%s7208_s0 + $0x2e8] ss:$12 sps:$4 sm:$0xff]  }
  0x6e   :  { %1547 = vmatmul.mubr.bf16.gmra.mrb[4].mxu1 %v4966_v1  ;;  %v5003_v62 = vld [vmem:[%s7208_s0 + $0x8] ss:$12 sps:$4 sm:$0xff]   ;;  %s5306_s11 = smov [#allocation2]  }
  0x6f   :  { %1556 = vmatprep.mubr.bf16.mxu1 %v5304_v59  ;;  %s4040_s12 = sshll.u32 %s5306_s11, 4  ;;  %s4041_s12 = int_to_ptr.vmem [resolvable:$true] %s4040_s12 }
  0x70   :  { %s5280_s13 = scalar_lea.vmem %s4041_s12, 8192  ;;  %p5285_p1 = scmp.lt.s32.totalorder %s4041_s12, %s4041_s12 }
  0x71   :  { %p5281_p0 = scmp.ne.s32.totalorder %s4041_s12, %s5280_s13  ;;  %p5286_p2 = scmp.lt.s32.totalorder %s5280_s13, %s5280_s13 }
  0x72   :  { %1034 = vmatmul.mubr.bf16.gmra.mrb[24].mxu0 %v4892_v63 }
  0x73   :  { %1043 = vmatprep.mubr.bf16.mxu0 %v4893_v0  ;;  %p5287_p3 = por %p5286_p2, %p5285_p1 }
  0x75   :  { %p5288_p4 = pnand %p5287_p3, %p5281_p0 }
  0x76   :  { %1557 = vmatmul.mubr.bf16.gmra.mrb[8].mxu1 %v4970_v4 }
  0x77   :  { %1566 = vmatprep.mubr.bf16.mxu1 %v5304_v59 }
  0x7a   :  { %1044 = vmatmul.mubr.bf16.gmra.mrb[28].mxu0 %v4895_v2 }
  0x7b   :  { %1053 = vmatprep.mubr.bf16.mxu0 %v4899_v3  ;;  %v5004_v3 = vld [vmem:[%s7208_s0 + $0x20] ss:$12 sps:$4 sm:$0xff]  }
  0x7e   :  { %1567 = vmatmul.mubr.bf16.gmra.mrb[12].mxu1 %v4974_v7 }
  0x7f   :  { %1576 = vmatprep.mubr.bf16.mxu1 %v5304_v59 }
  0x82   :  { %1054 = vmatmul.mubr.bf16.gmra.mrb[32].mxu0 %v4901_v5 }
  0x83   :  { %1063 = vmatprep.mubr.bf16.mxu0 %v4902_v6 }
  0x86   :  { %1577 = vmatmul.mubr.bf16.gmra.mrb[16].mxu1 %v4978_v10 }
  0x87   :  { %1586 = vmatprep.mubr.bf16.mxu1 %v5304_v59 }
  0x8a   :  { %1064 = vmatmul.mubr.bf16.gmra.mrb[36].mxu0 %v4904_v8  ;;  %v5005_v8 = vld [vmem:[%s7208_s0 + $0x38] ss:$12 sps:$4 sm:$0xff]  }
  0x8b   :  { %1073 = vmatprep.mubr.bf16.mxu0 %v4905_v9 }
  0x8e   :  { %1587 = vmatmul.mubr.bf16.gmra.mrb[20].mxu1 %v4982_v13  ;;  %v5006_v13 = vld [vmem:[%s7208_s0 + $0x50] ss:$12 sps:$4 sm:$0xff]  }
  0x8f   :  { %1596 = vmatprep.mubr.bf16.mxu1 %v5304_v59 }
  0x92   :  { %1074 = vmatmul.mubr.bf16.gmra.mrb[40].mxu0 %v4907_v11 }
  0x93   :  { %1083 = vmatprep.mubr.bf16.mxu0 %v4908_v12 }
  0x96   :  { %1597 = vmatmul.mubr.bf16.gmra.mrb[24].mxu1 %v4986_v16 }
  0x97   :  { %1606 = vmatprep.mubr.bf16.mxu1 %v5304_v59 }
  0x9a   :  { %1084 = vmatmul.mubr.bf16.gmra.mrb[44].mxu0 %v4910_v14 }
  0x9b   :  { %1093 = vmatprep.mubr.bf16.mxu0 %v4914_v15 }
  0x9e   :  { %1607 = vmatmul.mubr.bf16.gmra.mrb[28].mxu1 %v4990_v19 }
  0x9f   :  { %1616 = vmatprep.mubr.bf16.mxu1 %v5304_v59 }
  0xa2   :  { %1094 = vmatmul.mubr.bf16.gmra.mrb[48].mxu0 %v4916_v17 }
  0xa3   :  { %1103 = vmatprep.mubr.bf16.mxu0 %v4917_v18  ;;  %v5007_v18 = vld [vmem:[%s7208_s0 + $0x68] ss:$12 sps:$4 sm:$0xff]  }
  0xa6   :  { %1617 = vmatmul.mubr.bf16.gmra.mrb[32].mxu1 %v4994_v22 }
  0xa7   :  { %1626 = vmatprep.mubr.bf16.mxu1 %v5304_v59 }
  0xaa   :  { %1104 = vmatmul.mubr.bf16.gmra.mrb[52].mxu0 %v4919_v20 }
  0xab   :  { %1113 = vmatprep.mubr.bf16.mxu0 %v4920_v21 }
  0xae   :  { %1627 = vmatmul.mubr.bf16.gmra.mrb[36].mxu1 %v4998_v25 }
  0xaf   :  { %1636 = vmatprep.mubr.bf16.mxu1 %v5304_v59 }
  0xb2   :  { %1114 = vmatmul.mubr.bf16.gmra.mrb[56].mxu0 %v4922_v23  ;;  %v5008_v23 = vld [vmem:[%s7208_s0 + $0x80] ss:$12 sps:$4 sm:$0xff]  }
  0xb3   :  { %1123 = vmatprep.mubr.bf16.mxu0 %v4923_v24 }
  0xb6   :  { %1637 = vmatmul.mubr.bf16.gmra.mrb[40].mxu1 %v5002_v28  ;;  %v5009_v28 = vld [vmem:[%s7208_s0 + $0x98] ss:$12 sps:$4 sm:$0xff]  }
  0xba   :  { %1124 = vmatmul.mubr.bf16.gmra.mrb[60].mxu0 %v4925_v26 }
  0xbb   :  { %1133 = vmatprep.mubr.bf16.mxu0 %v4929_v27 }
  0xc2   :  { %1134 = vmatmul.mubr.bf16.gmra.mrb[64].mxu0 %v4931_v29 }
  0xc3   :  { %1143 = vmatprep.mubr.bf16.mxu0 %v4932_v30 }
  0xca   :  { %1144 = vmatmul.mubr.bf16.gmra.mrb[68].mxu0 %v4934_v31 }
  0xcb   :  { %1153 = vmatprep.mubr.bf16.mxu0 %v4935_v32 }
  0xd2   :  { %1154 = vmatmul.mubr.bf16.gmra.mrb[72].mxu0 %v4937_v33  ;;  %v5010_v33 = vld [vmem:[%s7208_s0 + $0xb0] ss:$12 sps:$4 sm:$0xff]  }
  0xd3   :  { %1163 = vmatprep.mubr.bf16.mxu0 %v4941_v34 }
  0xda   :  { %1164 = vmatmul.mubr.bf16.gmra.mrb[76].mxu0 %v4943_v35 }
  0xdb   :  { %1173 = vmatprep.mubr.bf16.mxu0 %v4950_v36 }
  0xe2   :  { %1174 = vmatmul.mubr.bf16.gmra.mrb[80].mxu0 %v4952_v37 }
  0xe3   :  { %1183 = vmatprep.mubr.bf16.mxu0 %v4959_v38  ;;  %v5011_v38 = vld [vmem:[%s7208_s0 + $0xc8] ss:$12 sps:$4 sm:$0xff]  }
  0xea   :  { %1184 = vmatmul.mubr.bf16.gmra.mrb[84].mxu0 %v4961_v39 }
  0xeb   :  { %1193 = vmatprep.mubr.bf16.mxu0 %v4963_v40 }
  0xf2   :  { %1194 = vmatmul.mubr.bf16.gmra.mrb[88].mxu0 %v4965_v41 }
  0xf3   :  { %1203 = vmatprep.mubr.bf16.mxu0 %v4967_v42 }
  0xfa   :  { %1204 = vmatmul.mubr.bf16.gmra.mrb[92].mxu0 %v4969_v43  ;;  %v5012_v43 = vld [vmem:[%s7208_s0 + $0xe0] ss:$12 sps:$4 sm:$0xff]  }
  0xfb   :  { %1213 = vmatprep.mubr.bf16.mxu0 %v4971_v44 }
 0x102   :  { %1214 = vmatmul.mubr.bf16.gmra.mrb[96].mxu0 %v4973_v45 }
 0x103   :  { %1223 = vmatprep.mubr.bf16.mxu0 %v4975_v46 }
 0x10a   :  { %1224 = vmatmul.mubr.bf16.gmra.mrb[100].mxu0 %v4977_v47 }
 0x10b   :  { %1233 = vmatprep.mubr.bf16.mxu0 %v4979_v48  ;;  %v5013_v48 = vld [vmem:[%s7208_s0 + $0xf8] ss:$12 sps:$4 sm:$0xff]  }
 0x112   :  { %1234 = vmatmul.mubr.bf16.gmra.mrb[104].mxu0 %v4981_v49 }
 0x113   :  { %1243 = vmatprep.mubr.bf16.mxu0 %v4983_v50 }
 0x11a   :  { %1244 = vmatmul.mubr.bf16.gmra.mrb[108].mxu0 %v4985_v51 }
 0x11b   :  { %1253 = vmatprep.mubr.bf16.mxu0 %v4987_v52  ;;  %v5014_v52 = vld [vmem:[%s7208_s0 + $0x110] ss:$12 sps:$4 sm:$0xff]  }
 0x122   :  { %1254 = vmatmul.mubr.bf16.gmra.mrb[112].mxu0 %v4989_v53  ;;  %v5015_v53 = vld [vmem:[%s7208_s0 + $0x128] ss:$12 sps:$4 sm:$0xff]  }
 0x123   :  { %1263 = vmatprep.mubr.bf16.mxu0 %v4991_v54  ;;  %v5016_v54 = vld [vmem:[%s7208_s0 + $0x140] ss:$12 sps:$4 sm:$0xff]  }
 0x12a   :  { %1264 = vmatmul.mubr.bf16.gmra.mrb[116].mxu0 %v4993_v55  ;;  %v5017_v55 = vld [vmem:[%s7208_s0 + $0x158] ss:$12 sps:$4 sm:$0xff]  }
 0x12b   :  { %1273 = vmatprep.mubr.bf16.mxu0 %v4995_v56  ;;  %v5018_v56 = vld [vmem:[%s7208_s0 + $0x170] ss:$12 sps:$4 sm:$0xff]  }
 0x132   :  { %1274 = vmatmul.mubr.bf16.gmra.mrb[120].mxu0 %v4997_v57 }
 0x133   :  { %1283 = vmatprep.mubr.bf16.mxu0 %v4999_v58 }
 0x139   :  { %v5705_v61 = vpop.f32.mrb[0].mxu1 }
 0x13a   :  { %1284 = vmatmul.mubr.bf16.gmra.mrb[124].mxu0 %v5001_v60  ;;  %v5710_v63 = vpop.f32.mrb[1].mxu1 }
 0x13b   :  { %1326 = vmatprep.mubr.bf16.mxu0 %v5304_v59  ;;  %v5712_v0 = vpop.f32.mrb[2].mxu1 }
 0x13c   :  { %v5714_v1 = vpop.f32.mrb[3].mxu1 }
 0x141   :  { %v5717_v2 = vpop.f32.mrb[4].mxu1 }
 0x142   :  { %1327 = vmatmul.mubr.bf16.vlgmr.msra.gmra.mrb[0].mxu0 %v5003_v62  ;;  %v5722_v4 = vpop.f32.mrb[5].mxu1  ;;  %v5019_v62 = vld [vmem:[%s7208_s0 + $0x188] ss:$12 sps:$4 sm:$0xff]  }
 0x143   :  { %1336 = vmatprep.mubr.bf16.mxu0 %v5304_v59  ;;  %v5724_v5 = vpop.f32.mrb[6].mxu1 }
 0x144   :  { %v5726_v6 = vpop.f32.mrb[7].mxu1 }
 0x149   :  { %v5729_v7 = vpop.f32.mrb[8].mxu1 }
 0x14a   :  { %1337 = vmatmul.mubr.bf16.gmra.mrb[4].mxu0 %v5004_v3  ;;  %v5734_v9 = vpop.f32.mrb[9].mxu1 }
 0x14b   :  { %1346 = vmatprep.mubr.bf16.mxu0 %v5304_v59  ;;  %v5736_v10 = vpop.f32.mrb[10].mxu1 }
 0x14c   :  { %v5738_v11 = vpop.f32.mrb[11].mxu1 }
 0x151   :  { %v5741_v12 = vpop.f32.mrb[12].mxu1 }
 0x152   :  { %1347 = vmatmul.mubr.bf16.gmra.mrb[8].mxu0 %v5005_v8  ;;  %v5746_v14 = vpop.f32.mrb[13].mxu1 }
 0x153   :  { %1356 = vmatprep.mubr.bf16.mxu0 %v5304_v59  ;;  %v5748_v15 = vpop.f32.mrb[14].mxu1 }
 0x154   :  { %v5750_v16 = vpop.f32.mrb[15].mxu1 }
 0x159   :  { %v5753_v17 = vpop.f32.mrb[16].mxu1 }
 0x15a   :  { %1357 = vmatmul.mubr.bf16.gmra.mrb[12].mxu0 %v5006_v13  ;;  %v5758_v19 = vpop.f32.mrb[17].mxu1 }
 0x15b   :  { %1366 = vmatprep.mubr.bf16.mxu0 %v5304_v59  ;;  %v5760_v20 = vpop.f32.mrb[18].mxu1 }
 0x15c   :  { %v5762_v21 = vpop.f32.mrb[19].mxu1 }
 0x161   :  { %v5765_v22 = vpop.f32.mrb[20].mxu1 }
 0x162   :  { %1367 = vmatmul.mubr.bf16.gmra.mrb[16].mxu0 %v5007_v18  ;;  %v5770_v24 = vpop.f32.mrb[21].mxu1 }
 0x163   :  { %1376 = vmatprep.mubr.bf16.mxu0 %v5304_v59  ;;  %v5772_v25 = vpop.f32.mrb[22].mxu1 }
 0x164   :  { %v5774_v26 = vpop.f32.mrb[23].mxu1 }
 0x169   :  { %v5777_v27 = vpop.f32.mrb[24].mxu1 }
 0x16a   :  { %1377 = vmatmul.mubr.bf16.gmra.mrb[20].mxu0 %v5008_v23  ;;  %v5782_v29 = vpop.f32.mrb[25].mxu1 }
 0x16b   :  { %1386 = vmatprep.mubr.bf16.mxu0 %v5304_v59  ;;  %v5784_v30 = vpop.f32.mrb[26].mxu1 }
 0x16c   :  { %v5786_v31 = vpop.f32.mrb[27].mxu1 }
 0x171   :  { %v5789_v32 = vpop.f32.mrb[28].mxu1 }
 0x172   :  { %1387 = vmatmul.mubr.bf16.gmra.mrb[24].mxu0 %v5009_v28  ;;  %v5794_v34 = vpop.f32.mrb[29].mxu1 }
 0x173   :  { %1396 = vmatprep.mubr.bf16.mxu0 %v5304_v59  ;;  %v5796_v35 = vpop.f32.mrb[30].mxu1 }
 0x174   :  { %v5798_v36 = vpop.f32.mrb[31].mxu1 }
 0x179   :  { %v5801_v37 = vpop.f32.mrb[32].mxu1 }
 0x17a   :  { %1397 = vmatmul.mubr.bf16.gmra.mrb[28].mxu0 %v5010_v33  ;;  %v5806_v39 = vpop.f32.mrb[33].mxu1 }
 0x17b   :  { %1406 = vmatprep.mubr.bf16.mxu0 %v5304_v59  ;;  %v5808_v40 = vpop.f32.mrb[34].mxu1 }
 0x17c   :  { %v5810_v41 = vpop.f32.mrb[35].mxu1 }
 0x181   :  { %v5813_v42 = vpop.f32.mrb[36].mxu1 }
 0x182   :  { %1407 = vmatmul.mubr.bf16.gmra.mrb[32].mxu0 %v5011_v38  ;;  %v5818_v44 = vpop.f32.mrb[37].mxu1 }
 0x183   :  { %1416 = vmatprep.mubr.bf16.mxu0 %v5304_v59  ;;  %v5820_v45 = vpop.f32.mrb[38].mxu1 }
 0x184   :  { %v5822_v46 = vpop.f32.mrb[39].mxu1 }
 0x189   :  { %v5825_v47 = vpop.f32.mrb[40].mxu1 }
 0x18a   :  { %1417 = vmatmul.mubr.bf16.gmra.mrb[36].mxu0 %v5012_v43  ;;  %v5830_v49 = vpop.f32.mrb[41].mxu1 }
 0x18b   :  { %1426 = vmatprep.mubr.bf16.mxu0 %v5304_v59  ;;  %v5832_v50 = vpop.f32.mrb[42].mxu1 }
 0x18c   :  { %v5834_v51 = vpop.f32.mrb[43].mxu1 }
 0x192   :  { %1427 = vmatmul.mubr.bf16.gmra.mrb[40].mxu0 %v5013_v48 }
 0x193   :  { %1436 = vmatprep.mubr.bf16.mxu0 %v5304_v59 }
 0x19a   :  { %1437 = vmatmul.mubr.bf16.gmra.mrb[44].mxu0 %v5014_v52 }
 0x19b   :  { %1446 = vmatprep.mubr.bf16.mxu0 %v5304_v59 }
 0x1a2   :  { %1447 = vmatmul.mubr.bf16.gmra.mrb[48].mxu0 %v5015_v53 }
 0x1a3   :  { %1456 = vmatprep.mubr.bf16.mxu0 %v5304_v59 }
 0x1aa   :  { %1457 = vmatmul.mubr.bf16.gmra.mrb[52].mxu0 %v5016_v54 }
 0x1ab   :  { %1466 = vmatprep.mubr.bf16.mxu0 %v5304_v59 }
 0x1b2   :  { %1467 = vmatmul.mubr.bf16.gmra.mrb[56].mxu0 %v5017_v55 }
 0x1b3   :  { %1476 = vmatprep.mubr.bf16.mxu0 %v5304_v59 }
 0x1ba   :  { %1477 = vmatmul.mubr.bf16.gmra.mrb[60].mxu0 %v5018_v56 }
 0x1bb   :  { %1486 = vmatprep.mubr.bf16.mxu0 %v5304_v59 }
 0x1bd   :  { %v1185_v57 = vpop.f32.mrb[84].mxu0 }
 0x1be   :  { %v1539_v58 = vadd.f32 %v5705_v61, %v1185_v57  ;;  %v1187_v60 = vpop.f32.mrb[85].mxu0 }
 0x1bf   :  { %v1541_v3 = vadd.f32 %v5710_v63, %v1187_v60  ;;  %v1189_v8 = vpop.f32.mrb[86].mxu0  ;;  %v5020_v63 = vld [vmem:[%s7208_s0 + $0x1a0] ss:$12 sps:$4 sm:$0xff]  }
 0x1c0   :  { %v1543_v13 = vadd.f32 %v5712_v0, %v1189_v8  ;;  %v1191_v18 = vpop.f32.mrb[87].mxu0 }
 0x1c1   :  { %v1545_v23 = vadd.f32 %v5714_v1, %v1191_v18 }
 0x1c2   :  { %v5864_v28 = vpack.c.bf16 %v1543_v13, %v1539_v58  ;;  %1487 = vmatmul.mubr.bf16.gmra.mrb[64].mxu0 %v5019_v62 }
 0x1c3   :  { %v5866_v33 = vpack.c.bf16 %v1545_v23, %v1541_v3  ;;  %1496 = vmatprep.mubr.bf16.mxu0 %v5304_v59 }
 0x1c5   :  { %7258 = vst [vmem:[#allocation5_spill] sm:$0xff] %v5866_v33  ;;  %v1195_v61 = vpop.f32.mrb[88].mxu0 }
 0x1c6   :  { %v1549_v38 = vadd.f32 %v5717_v2, %v1195_v61  ;;  %v1197_v43 = vpop.f32.mrb[89].mxu0 }
 0x1c7   :  { %v1551_v0 = vadd.f32 %v5722_v4, %v1197_v43  ;;  %v1199_v48 = vpop.f32.mrb[90].mxu0  ;;  %v5021_v4 = vld [vmem:[%s7208_s0 + $0x1b8] ss:$12 sps:$4 sm:$0xff]  }
 0x1c8   :  { %v1553_v1 = vadd.f32 %v5724_v5, %v1199_v48  ;;  %v1201_v52 = vpop.f32.mrb[91].mxu0 }
 0x1c9   :  { %v1555_v53 = vadd.f32 %v5726_v6, %v1201_v52 }
 0x1ca   :  { %v5876_v54 = vpack.c.bf16 %v1553_v1, %v1549_v38  ;;  %1497 = vmatmul.mubr.bf16.gmra.mrb[68].mxu0 %v5020_v63 }
 0x1cb   :  { %v5878_v55 = vpack.c.bf16 %v1555_v53, %v1551_v0  ;;  %1506 = vmatprep.mubr.bf16.mxu0 %v5304_v59 }
 0x1cd   :  { %7259 = vst [vmem:[#allocation6_spill] sm:$0xff] %v5878_v55  ;;  %v1205_v2 = vpop.f32.mrb[92].mxu0 }
 0x1ce   :  { %v1559_v56 = vadd.f32 %v5729_v7, %v1205_v2  ;;  %v1207_v57 = vpop.f32.mrb[93].mxu0 }
 0x1cf   :  { %v1561_v5 = vadd.f32 %v5734_v9, %v1207_v57  ;;  %v1209_v58 = vpop.f32.mrb[94].mxu0  ;;  %v5022_v9 = vld [vmem:[%s7208_s0 + $0x1d0] ss:$12 sps:$4 sm:$0xff]  }
 0x1d0   :  { %v1563_v6 = vadd.f32 %v5736_v10, %v1209_v58  ;;  %v1211_v60 = vpop.f32.mrb[95].mxu0 }
 0x1d1   :  { %v1565_v62 = vadd.f32 %v5738_v11, %v1211_v60 }
 0x1d2   :  { %v5888_v3 = vpack.c.bf16 %v1563_v6, %v1559_v56  ;;  %1507 = vmatmul.mubr.bf16.gmra.mrb[72].mxu0 %v5021_v4 }
 0x1d3   :  { %v5890_v8 = vpack.c.bf16 %v1565_v62, %v1561_v5  ;;  %1516 = vmatprep.mubr.bf16.mxu0 %v5304_v59 }
 0x1d5   :  { %7260 = vst [vmem:[#allocation7_spill] sm:$0xff] %v5890_v8  ;;  %v1215_v7 = vpop.f32.mrb[96].mxu0 }
 0x1d6   :  { %v1569_v13 = vadd.f32 %v5741_v12, %v1215_v7  ;;  %v1217_v18 = vpop.f32.mrb[97].mxu0 }
 0x1d7   :  { %v1571_v10 = vadd.f32 %v5746_v14, %v1217_v18  ;;  %v1219_v23 = vpop.f32.mrb[98].mxu0  ;;  %v5023_v14 = vld [vmem:[%s7208_s0 + $0x1e8] ss:$12 sps:$4 sm:$0xff]   ;;  %s5305_s0 = smov 64  }
 0x1d8   :  { %v1573_v11 = vadd.f32 %v5748_v15, %v1219_v23  ;;  %v1221_v61 = vpop.f32.mrb[99].mxu0 }
 0x1d9   :  { %v1575_v38 = vadd.f32 %v5750_v16, %v1221_v61 }
 0x1da   :  { %v5900_v43 = vpack.c.bf16 %v1573_v11, %v1569_v13  ;;  %1517 = vmatmul.mubr.bf16.gmra.mrb[76].mxu0 %v5022_v9 }
 0x1db   :  { %v5902_v63 = vpack.c.bf16 %v1575_v38, %v1571_v10  ;;  %1526 = vmatprep.mubr.bf16.mxu0 %v5304_v59 }
 0x1dd   :  { %7261 = vst [vmem:[#allocation8_spill] sm:$0xff] %v5902_v63  ;;  %v1225_v12 = vpop.f32.mrb[100].mxu0 }
 0x1de   :  { %v1579_v0 = vadd.f32 %v5753_v17, %v1225_v12  ;;  %v1227_v48 = vpop.f32.mrb[101].mxu0 }
 0x1df   :  { %v1581_v15 = vadd.f32 %v5758_v19, %v1227_v48  ;;  %v1229_v1 = vpop.f32.mrb[102].mxu0 }
 0x1e0   :  { %v1583_v16 = vadd.f32 %v5760_v20, %v1229_v1  ;;  %v1231_v52 = vpop.f32.mrb[103].mxu0 }
 0x1e1   :  { %v1585_v53 = vadd.f32 %v5762_v21, %v1231_v52 }
 0x1e2   :  { %v5912_v2 = vpack.c.bf16 %v1583_v16, %v1579_v0  ;;  %1527 = vmatmul.mubr.bf16.gmra.mrb[80].mxu0 %v5023_v14 }
 0x1e3   :  { %v5914_v59 = vpack.c.bf16 %v1585_v53, %v1581_v15 }
 0x1e5   :  { %7262 = vst [vmem:[#allocation9_spill] sm:$0xff] %v5914_v59  ;;  %v1235_v56 = vpop.f32.mrb[104].mxu0 }
 0x1e6   :  { %v1589_v17 = vadd.f32 %v5765_v22, %v1235_v56  ;;  %v1237_v57 = vpop.f32.mrb[105].mxu0 }
 0x1e7   :  { %v1591_v4 = vadd.f32 %v5770_v24, %v1237_v57  ;;  %v1239_v5 = vpop.f32.mrb[106].mxu0 }
 0x1e8   :  { %v1593_v19 = vadd.f32 %v5772_v25, %v1239_v5  ;;  %v1241_v58 = vpop.f32.mrb[107].mxu0 }
 0x1e9   :  { %v1595_v20 = vadd.f32 %v5774_v26, %v1241_v58 }
 0x1ea   :  { %v5920_v6 = vpack.c.bf16 %v1593_v19, %v1589_v17 }
 0x1eb   :  { %v5922_v21 = vpack.c.bf16 %v1595_v20, %v1591_v4 }
 0x1ed   :  { %7263 = vst [vmem:[#allocation10_spill] sm:$0xff] %v5922_v21  ;;  %v1245_v60 = vpop.f32.mrb[108].mxu0 }
 0x1ee   :  { %v1599_v62 = vadd.f32 %v5777_v27, %v1245_v60  ;;  %v1247_v7 = vpop.f32.mrb[109].mxu0 }
 0x1ef   :  { %v1601_v13 = vadd.f32 %v5782_v29, %v1247_v7  ;;  %v1249_v22 = vpop.f32.mrb[110].mxu0 }
 0x1f0   :  { %v1603_v18 = vadd.f32 %v5784_v30, %v1249_v22  ;;  %v1251_v24 = vpop.f32.mrb[111].mxu0 }
 0x1f1   :  { %v1605_v9 = vadd.f32 %v5786_v31, %v1251_v24 }
 0x1f2   :  { %v5928_v25 = vpack.c.bf16 %v1603_v18, %v1599_v62 }
 0x1f3   :  { %v5930_v10 = vpack.c.bf16 %v1605_v9, %v1601_v13 }
 0x1f5   :  { %7264 = vst [vmem:[#allocation11_spill] sm:$0xff] %v5930_v10  ;;  %v1255_v26 = vpop.f32.mrb[112].mxu0 }
 0x1f6   :  { %v1609_v23 = vadd.f32 %v5789_v32, %v1255_v26  ;;  %v1257_v11 = vpop.f32.mrb[113].mxu0 }
 0x1f7   :  { %v1611_v61 = vadd.f32 %v5794_v34, %v1257_v11  ;;  %v1259_v27 = vpop.f32.mrb[114].mxu0 }
 0x1f8   :  { %v1613_v38 = vadd.f32 %v5796_v35, %v1259_v27  ;;  %v1261_v29 = vpop.f32.mrb[115].mxu0 }
 0x1f9   :  { %v1615_v12 = vadd.f32 %v5798_v36, %v1261_v29 }
 0x1fa   :  { %v5936_v30 = vpack.c.bf16 %v1613_v38, %v1609_v23 }
 0x1fb   :  { %v5938_v0 = vpack.c.bf16 %v1615_v12, %v1611_v61 }
 0x1fd   :  { %7265 = vst [vmem:[#allocation12_spill] sm:$0xff] %v5938_v0  ;;  %v1265_v31 = vpop.f32.mrb[116].mxu0 }
 0x1fe   :  { %v1619_v48 = vadd.f32 %v5801_v37, %v1265_v31  ;;  %v1267_v14 = vpop.f32.mrb[117].mxu0 }
 0x1ff   :  { %v1621_v15 = vadd.f32 %v5806_v39, %v1267_v14  ;;  %v1269_v32 = vpop.f32.mrb[118].mxu0 }
 0x200   :  { %v1623_v1 = vadd.f32 %v5808_v40, %v1269_v32  ;;  %v1271_v34 = vpop.f32.mrb[119].mxu0 }
 0x201   :  { %v1625_v16 = vadd.f32 %v5810_v41, %v1271_v34 }
 0x202   :  { %v5944_v35 = vpack.c.bf16 %v1623_v1, %v1619_v48 }
 0x203   :  { %v5946_v52 = vpack.c.bf16 %v1625_v16, %v1621_v15 }
 0x205   :  { %7266 = vst [vmem:[#allocation13_spill] sm:$0xff] %v5946_v52  ;;  %v1275_v36 = vpop.f32.mrb[120].mxu0 }
 0x206   :  { %v1629_v53 = vadd.f32 %v5813_v42, %v1275_v36  ;;  %v1277_v56 = vpop.f32.mrb[121].mxu0 }
 0x207   :  { %v1631_v17 = vadd.f32 %v5818_v44, %v1277_v56  ;;  %v1279_v37 = vpop.f32.mrb[122].mxu0 }
 0x208   :  { %v1633_v57 = vadd.f32 %v5820_v45, %v1279_v37  ;;  %v1281_v39 = vpop.f32.mrb[123].mxu0 }
 0x209   :  { %v1635_v4 = vadd.f32 %v5822_v46, %v1281_v39 }
 0x20a   :  { %v5952_v40 = vpack.c.bf16 %v1633_v57, %v1629_v53 }
 0x20b   :  { %v5954_v5 = vpack.c.bf16 %v1635_v4, %v1631_v17 }
 0x20d   :  { %7267 = vst [vmem:[#allocation14_spill] sm:$0xff] %v5954_v5  ;;  %v1285_v41 = vpop.f32.mrb[124].mxu0 }
 0x20e   :  { %v1639_v19 = vadd.f32 %v5825_v47, %v1285_v41  ;;  %v1287_v58 = vpop.f32.mrb[125].mxu0 }
 0x20f   :  { %v1641_v20 = vadd.f32 %v5830_v49, %v1287_v58  ;;  %v1289_v42 = vpop.f32.mrb[126].mxu0 }
 0x210   :  { %v1643_v60 = vadd.f32 %v5832_v50, %v1289_v42  ;;  %v1291_v44 = vpop.f32.mrb[127].mxu0 }
 0x211   :  { %v1645_v62 = vadd.f32 %v5834_v51, %v1291_v44 }
 0x212   :  { %v5960_v45 = vpack.c.bf16 %v1643_v60, %v1639_v19 }
 0x213   :  { %v5962_v7 = vpack.c.bf16 %v1645_v62, %v1641_v20 }
 0x215   :  { %7268 = vst [vmem:[#allocation15_spill] sm:$0xff] %v5962_v7  ;;  %v1328_v46 = vpop.f32.mrb[0].mxu0 }
 0x216   :  { %v1330_v13 = vpop.f32.mrb[1].mxu0 }
 0x217   :  { %v1332_v22 = vpop.f32.mrb[2].mxu0 }
 0x218   :  { %v1647_v18 = vpack.c.bf16 %v1332_v22, %v1328_v46  ;;  %v1334_v24 = vpop.f32.mrb[3].mxu0 }
 0x219   :  { %v5964_v47 = vpack.c.bf16 %v1334_v24, %v1330_v13 }
 0x21a   :  { %1715 = vrot.lane.b32.xlu0 %v1647_v18, %s5305_s0  ;;  %4395 = vmatprep.mubr.msk.bf16.mxu1 %vm1723_vm0, %v1647_v18 }
 0x21d   :  { %v1338_v49 = vpop.f32.mrb[4].mxu0 }
 0x21e   :  { %v1340_v50 = vpop.f32.mrb[5].mxu0 }
 0x21f   :  { %v1342_v51 = vpop.f32.mrb[6].mxu0 }
 0x220   :  { %v5968_v9 = vpack.c.bf16 %v1342_v51, %v1338_v49  ;;  %v1344_v26 = vpop.f32.mrb[7].mxu0 }
 0x221   :  { %v5970_v23 = vpack.c.bf16 %v1344_v26, %v1340_v50 }
 0x222   :  { %1717 = vrot.lane.b32.xlu0 %v5968_v9, %s5305_s0 }
 0x225   :  { %v1348_v11 = vpop.f32.mrb[8].mxu0 }
 0x226   :  { %v1350_v61 = vpop.f32.mrb[9].mxu0 }
 0x227   :  { %v1352_v27 = vpop.f32.mrb[10].mxu0 }
 0x228   :  { %v5974_v38 = vpack.c.bf16 %v1352_v27, %v1348_v11  ;;  %v1354_v29 = vpop.f32.mrb[11].mxu0 }
 0x229   :  { %v5976_v12 = vpack.c.bf16 %v1354_v29, %v1350_v61 }
 0x22a   :  { %1719 = vrot.lane.b32.xlu1 %v5974_v38, %s5305_s0 }
 0x22d   :  { %v1358_v31 = vpop.f32.mrb[12].mxu0 }
 0x22e   :  { %v1360_v48 = vpop.f32.mrb[13].mxu0 }
 0x22f   :  { %v1362_v14 = vpop.f32.mrb[14].mxu0 }
 0x230   :  { %v5980_v15 = vpack.c.bf16 %v1362_v14, %v1358_v31  ;;  %v1364_v32 = vpop.f32.mrb[15].mxu0 }
 0x231   :  { %v5982_v1 = vpack.c.bf16 %v1364_v32, %v1360_v48 }
 0x232   :  { %1721 = vrot.lane.b32.xlu1 %v5980_v15, %s5305_s0 }
 0x235   :  { %v1368_v34 = vpop.f32.mrb[16].mxu0 }
 0x236   :  { %v1370_v16 = vpop.f32.mrb[17].mxu0 }
 0x237   :  { %v1372_v36 = vpop.f32.mrb[18].mxu0 }
 0x238   :  { %v5986_v53 = vpack.c.bf16 %v1372_v36, %v1368_v34  ;;  %v1374_v56 = vpop.f32.mrb[19].mxu0 }
 0x239   :  { %v5988_v17 = vpack.c.bf16 %v1374_v56, %v1370_v16 }
 0x23a   :  { %1817 = vrot.lane.b32.xlu0 %v5986_v53, %s5305_s0 }
 0x23d   :  { %v1378_v37 = vpop.f32.mrb[20].mxu0 }
 0x23e   :  { %v1380_v57 = vpop.f32.mrb[21].mxu0 }
 0x23f   :  { %v1382_v39 = vpop.f32.mrb[22].mxu0 }
 0x240   :  { %v5992_v4 = vpack.c.bf16 %v1382_v39, %v1378_v37  ;;  %v1384_v41 = vpop.f32.mrb[23].mxu0 }
 0x241   :  { %v5994_v19 = vpack.c.bf16 %v1384_v41, %v1380_v57 }
 0x242   :  { %1819 = vrot.lane.b32.xlu1 %v5992_v4, %s5305_s0 }
 0x243   :  { %7269 = vst [vmem:[#allocation16_spill] sm:$0xff] %v5994_v19 }
 0x245   :  { %v1388_v58 = vpop.f32.mrb[24].mxu0 }
 0x246   :  { %v1390_v20 = vpop.f32.mrb[25].mxu0 }
 0x247   :  { %v1392_v42 = vpop.f32.mrb[26].mxu0 }
 0x248   :  { %v5998_v60 = vpack.c.bf16 %v1392_v42, %v1388_v58  ;;  %v1394_v44 = vpop.f32.mrb[27].mxu0 }
 0x249   :  { %v6000_v62 = vpack.c.bf16 %v1394_v44, %v1390_v20 }
 0x24a   :  { %1821 = vrot.lane.b32.xlu0 %v5998_v60, %s5305_s0 }
 0x24b   :  { %7270 = vst [vmem:[#allocation17_spill] sm:$0xff] %v6000_v62 }
 0x24d   :  { %v1398_v46 = vpop.f32.mrb[28].mxu0 }
 0x24e   :  { %v1400_v13 = vpop.f32.mrb[29].mxu0 }
 0x24f   :  { %v1402_v22 = vpop.f32.mrb[30].mxu0 }
 0x250   :  { %v6004_v18 = vpack.c.bf16 %v1402_v22, %v1398_v46  ;;  %v1404_v24 = vpop.f32.mrb[31].mxu0 }
 0x251   :  { %v6006_v49 = vpack.c.bf16 %v1404_v24, %v1400_v13 }
 0x252   :  { %1823 = vrot.lane.b32.xlu1 %v6004_v18, %s5305_s0 }
 0x253   :  { %7271 = vst [vmem:[#allocation18_spill] sm:$0xff] %v6006_v49 }
 0x255   :  { %v1408_v50 = vpop.f32.mrb[32].mxu0 }
 0x256   :  { %v1410_v51 = vpop.f32.mrb[33].mxu0 }
 0x257   :  { %v1412_v26 = vpop.f32.mrb[34].mxu0 }
 0x258   :  { %v6010_v11 = vpack.c.bf16 %v1412_v26, %v1408_v50  ;;  %v1414_v61 = vpop.f32.mrb[35].mxu0 }
 0x259   :  { %v6012_v27 = vpack.c.bf16 %v1414_v61, %v1410_v51 }
 0x25a   :  { %1918 = vrot.lane.b32.xlu0 %v6010_v11, %s5305_s0 }
 0x25b   :  { %7272 = vst [vmem:[#allocation19_spill] sm:$0xff] %v6012_v27 }
 0x25d   :  { %v1418_v29 = vpop.f32.mrb[36].mxu0 }
 0x25e   :  { %v1420_v31 = vpop.f32.mrb[37].mxu0 }
 0x25f   :  { %v1422_v48 = vpop.f32.mrb[38].mxu0 }
 0x260   :  { %v6016_v14 = vpack.c.bf16 %v1422_v48, %v1418_v29  ;;  %v1424_v32 = vpop.f32.mrb[39].mxu0 }
 0x261   :  { %v6018_v34 = vpack.c.bf16 %v1424_v32, %v1420_v31 }
 0x262   :  { %1920 = vrot.lane.b32.xlu1 %v6016_v14, %s5305_s0 }
 0x263   :  { %7273 = vst [vmem:[#allocation20_spill] sm:$0xff] %v6018_v34 }
 0x265   :  { %v1428_v16 = vpop.f32.mrb[40].mxu0 }
 0x266   :  { %v1430_v36 = vpop.f32.mrb[41].mxu0 }
 0x267   :  { %v1432_v56 = vpop.f32.mrb[42].mxu0 }
 0x268   :  { %v6022_v37 = vpack.c.bf16 %v1432_v56, %v1428_v16  ;;  %v1434_v57 = vpop.f32.mrb[43].mxu0 }
 0x269   :  { %v6024_v39 = vpack.c.bf16 %v1434_v57, %v1430_v36 }
 0x26a   :  { %1922 = vrot.lane.b32.xlu0 %v6022_v37, %s5305_s0 }
 0x26b   :  { %7274 = vst [vmem:[#allocation21_spill] sm:$0xff] %v6024_v39 }
 0x26d   :  { %v1438_v41 = vpop.f32.mrb[44].mxu0 }
 0x26e   :  { %v1440_v58 = vpop.f32.mrb[45].mxu0 }
 0x26f   :  { %v1442_v20 = vpop.f32.mrb[46].mxu0 }
 0x270   :  { %v6028_v42 = vpack.c.bf16 %v1442_v20, %v1438_v41  ;;  %v1444_v44 = vpop.f32.mrb[47].mxu0 }
 0x271   :  { %v6030_v46 = vpack.c.bf16 %v1444_v44, %v1440_v58 }
 0x272   :  { %1924 = vrot.lane.b32.xlu1 %v6028_v42, %s5305_s0 }
 0x273   :  { %7275 = vst [vmem:[#allocation22_spill] sm:$0xff] %v6030_v46 }
 0x275   :  { %v1448_v13 = vpop.f32.mrb[48].mxu0 }
 0x276   :  { %v1450_v22 = vpop.f32.mrb[49].mxu0 }
 0x277   :  { %v1452_v24 = vpop.f32.mrb[50].mxu0 }
 0x278   :  { %v6034_v50 = vpack.c.bf16 %v1452_v24, %v1448_v13  ;;  %v1454_v51 = vpop.f32.mrb[51].mxu0 }
 0x279   :  { %v6036_v26 = vpack.c.bf16 %v1454_v51, %v1450_v22 }
 0x27a   :  { %2019 = vrot.lane.b32.xlu0 %v6034_v50, %s5305_s0 }
 0x27b   :  { %7276 = vst [vmem:[#allocation23_spill] sm:$0xff] %v6036_v26 }
 0x27d   :  { %v1458_v61 = vpop.f32.mrb[52].mxu0 }
 0x27e   :  { %v1460_v29 = vpop.f32.mrb[53].mxu0 }
 0x27f   :  { %v1462_v31 = vpop.f32.mrb[54].mxu0 }
 0x280   :  { %v6040_v48 = vpack.c.bf16 %v1462_v31, %v1458_v61  ;;  %v1464_v32 = vpop.f32.mrb[55].mxu0 }
 0x281   :  { %v6042_v16 = vpack.c.bf16 %v1464_v32, %v1460_v29 }
 0x282   :  { %2021 = vrot.lane.b32.xlu1 %v6040_v48, %s5305_s0 }
 0x283   :  { %7277 = vst [vmem:[#allocation24_spill] sm:$0xff] %v6042_v16 }
 0x285   :  { %v1468_v36 = vpop.f32.mrb[56].mxu0 }
 0x286   :  { %v1470_v56 = vpop.f32.mrb[57].mxu0 }
 0x287   :  { %v1472_v57 = vpop.f32.mrb[58].mxu0 }
 0x288   :  { %v6046_v41 = vpack.c.bf16 %v1472_v57, %v1468_v36  ;;  %v1474_v58 = vpop.f32.mrb[59].mxu0 }
 0x289   :  { %v6048_v20 = vpack.c.bf16 %v1474_v58, %v1470_v56 }
 0x28a   :  { %2023 = vrot.lane.b32.xlu0 %v6046_v41, %s5305_s0 }
 0x28b   :  { %7278 = vst [vmem:[#allocation25_spill] sm:$0xff] %v6048_v20 }
 0x28c   :  { %v1716_v44 = vpop.permute.xlu0 %1715 }
 0x28d   :  { %v1478_v13 = vpop.f32.mrb[60].mxu0  ;;  %4787 = vmatprep.subr.msk.bf16.mxu1 %vm1723_vm0, %v1716_v44  ;;  %v1737_v22 = vsel %vm1723_vm0, %v1716_v44, 0 }
 0x28e   :  { %v1480_v24 = vpop.f32.mrb[61].mxu0  ;;  %4388 = vmatpush3.bf16.xpose.msra.mxu1 %v1737_v22 }
 0x28f   :  { %v1482_v51 = vpop.f32.mrb[62].mxu0 }
 0x290   :  { %v6054_v61 = vpack.c.bf16 %v1482_v51, %v1478_v13  ;;  %v1484_v29 = vpop.f32.mrb[63].mxu0 }
 0x291   :  { %v6056_v31 = vpack.c.bf16 %v1484_v29, %v1480_v24 }
 0x292   :  { %2025 = vrot.lane.b32.xlu1 %v6054_v61, %s5305_s0 }
 0x293   :  { %7279 = vst [vmem:[#allocation26_spill] sm:$0xff] %v6056_v31 }
 0x294   :  { %v1718_v32 = vpop.permute.xlu0 %1717 }
 0x295   :  { %v1488_v36 = vpop.f32.mrb[64].mxu0  ;;  %4788 = vmatprep.subr.msk.bf16.mxu1 %vm1723_vm0, %v1718_v32  ;;  %v1740_v56 = vsel %vm1723_vm0, %v1718_v32, 0 }
 0x296   :  { %v1490_v57 = vpop.f32.mrb[65].mxu0  ;;  %4390 = vmatpush3.bf16.xpose.msra.mxu1 %v1740_v56 }
 0x297   :  { %v1492_v58 = vpop.f32.mrb[66].mxu0 }
 0x298   :  { %v6062_v44 = vpack.c.bf16 %v1492_v58, %v1488_v36  ;;  %v1494_v22 = vpop.f32.mrb[67].mxu0 }
 0x299   :  { %v6064_v13 = vpack.c.bf16 %v1494_v22, %v1490_v57 }
 0x29a   :  { %2120 = vrot.lane.b32.xlu0 %v6062_v44, %s5305_s0 }
 0x29b   :  { %7280 = vst [vmem:[#allocation27_spill] sm:$0xff] %v6064_v13 }
 0x29c   :  { %v1720_v24 = vpop.permute.xlu1 %1719 }
 0x29d   :  { %v1498_v51 = vpop.f32.mrb[68].mxu0  ;;  %4789 = vmatprep.subr.msk.bf16.mxu1 %vm1723_vm0, %v1720_v24  ;;  %v1743_v29 = vsel %vm1723_vm0, %v1720_v24, 0 }
 0x29e   :  { %v1500_v7 = vpop.f32.mrb[69].mxu0  ;;  %4392 = vmatpush3.bf16.xpose.msra.mxu1 %v1743_v29 }
 0x29f   :  { %v1502_v32 = vpop.f32.mrb[70].mxu0 }
 0x2a0   :  { %v6070_v5 = vpack.c.bf16 %v1502_v32, %v1498_v51  ;;  %v1504_v56 = vpop.f32.mrb[71].mxu0 }
 0x2a1   :  { %v6072_v36 = vpack.c.bf16 %v1504_v56, %v1500_v7 }
 0x2a2   :  { %2122 = vrot.lane.b32.xlu1 %v6070_v5, %s5305_s0 }
 0x2a3   :  { %7281 = vst [vmem:[#allocation28_spill] sm:$0xff] %v6072_v36 }
 0x2a4   :  { %v1722_v57 = vpop.permute.xlu1 %1721 }
 0x2a5   :  { %v1508_v58 = vpop.f32.mrb[72].mxu0  ;;  %4790 = vmatprep.subr.msk.bf16.mxu1 %vm1723_vm0, %v1722_v57  ;;  %v1746_v22 = vsel %vm1723_vm0, %v1722_v57, 0 }
 0x2a6   :  { %v1510_v52 = vpop.f32.mrb[73].mxu0  ;;  %4394 = vmatpush3.bf16.xpose.msra.mxu1 %v1746_v22 }
 0x2a7   :  { %v1512_v24 = vpop.f32.mrb[74].mxu0 }
 0x2a8   :  { %v6078_v0 = vpack.c.bf16 %v1512_v24, %v1508_v58  ;;  %v1514_v29 = vpop.f32.mrb[75].mxu0 }
 0x2a9   :  { %v6080_v51 = vpack.c.bf16 %v1514_v29, %v1510_v52 }
 0x2aa   :  { %2124 = vrot.lane.b32.xlu0 %v6078_v0, %s5305_s0 }
 0x2ab   :  { %7282 = vst [vmem:[#allocation29_spill] sm:$0xff] %v6080_v51 }
 0x2ac   :  { %v1818_v7 = vpop.permute.xlu0 %1817 }
 0x2ad   :  { %v1518_v32 = vpop.f32.mrb[76].mxu0  ;;  %4396 = vmatmul.mubr.msk.bf16.vlgmr.msra.gmra.mrb[44].mxu1 %vm1723_vm0, %v5968_v9  ;;  %4791 = vmatprep.subr.msk.bf16.mxu1 %vm1723_vm0, %v1818_v7  ;;  %v1838_v56 = vsel %vm1723_vm0, %v1818_v7, 0 }
 0x2ae   :  { %v1520_v57 = vpop.f32.mrb[77].mxu0  ;;  %4399 = vmatprep.mubr.msk.bf16.mxu1 %vm1723_vm0, %v5974_v38  ;;  %4404 = vmatpush3.bf16.xpose.msra.mxu1 %v1838_v56 }
 0x2af   :  { %v1522_v58 = vpop.f32.mrb[78].mxu0 }
 0x2b0   :  { %v6090_v52 = vpack.c.bf16 %v1522_v58, %v1518_v32  ;;  %v1524_v22 = vpop.f32.mrb[79].mxu0 }
 0x2b1   :  { %v6092_v24 = vpack.c.bf16 %v1524_v22, %v1520_v57 }
 0x2b2   :  { %2126 = vrot.lane.b32.xlu1 %v6090_v52, %s5305_s0 }
 0x2b3   :  { %7283 = vst [vmem:[#allocation30_spill] sm:$0xff] %v6092_v24 }
 0x2b4   :  { %v1820_v29 = vpop.permute.xlu1 %1819 }
 0x2b5   :  { %v1528_v9 = vpop.f32.mrb[80].mxu0  ;;  %4400 = vmatmul.mubr.msk.bf16.gmra.mrb[48].mxu1 %vm1723_vm0, %v5980_v15  ;;  %4792 = vmatprep.subr.msk.bf16.mxu1 %vm1723_vm0, %v1820_v29  ;;  %v1841_v7 = vsel %vm1723_vm0, %v1820_v29, 0 }
 0x2b6   :  { %4406 = vmatpush3.bf16.xpose.msra.mxu1 %v1841_v7  ;;  %4411 = vmatprep.mubr.msk.bf16.mxu1 %vm1723_vm0, %v5986_v53  ;;  %v1530_v38 = vpop.f32.mrb[81].mxu0 }
 0x2b7   :  { %2223 = vrot.lane.b32.xlu1 %v5864_v28, %s5305_s0  ;;  %v1532_v32 = vpop.f32.mrb[82].mxu0 }
 0x2b8   :  { %v6104_v56 = vpack.c.bf16 %v1532_v32, %v1528_v9  ;;  %v1534_v57 = vpop.f32.mrb[83].mxu0 }
 0x2b9   :  { %v6106_v58 = vpack.c.bf16 %v1534_v57, %v1530_v38 }
 0x2ba   :  { %2221 = vrot.lane.b32.xlu0 %v6104_v56, %s5305_s0 }
 0x2bb   :  { %7284 = vst [vmem:[#allocation31_spill] sm:$0xff] %v6106_v58  ;;  %2227 = vrot.lane.b32.xlu1 %v5888_v3, %s5305_s0 }
 0x2bc   :  { %v1822_v15 = vpop.permute.xlu0 %1821 }
 0x2bd   :  { %4793 = vmatprep.subr.msk.bf16.mxu1 %vm1723_vm0, %v1822_v15  ;;  %v1844_v53 = vsel %vm1723_vm0, %v1822_v15, 0 }
 0x2be   :  { %4408 = vmatpush3.bf16.xpose.msra.mxu1 %v1844_v53  ;;  %2225 = vrot.lane.b32.xlu0 %v5876_v54, %s5305_s0 }
 0x2bf   :  { %2324 = vrot.lane.b32.xlu1 %v5912_v2, %s5305_s0 }
 0x2c2   :  { %2322 = vrot.lane.b32.xlu0 %v5900_v43, %s5305_s0 }
 0x2c3   :  { %2328 = vrot.lane.b32.xlu1 %v5928_v25, %s5305_s0 }
 0x2c4   :  { %v1824_v22 = vpop.permute.xlu1 %1823 }
 0x2c5   :  { %4794 = vmatprep.subr.msk.bf16.mxu1 %vm1723_vm0, %v1824_v22  ;;  %v1847_v29 = vsel %vm1723_vm0, %v1824_v22, 0 }
 0x2c6   :  { %4410 = vmatpush3.bf16.xpose.msra.mxu1 %v1847_v29  ;;  %2326 = vrot.lane.b32.xlu0 %v5920_v6, %s5305_s0 }
 0x2c7   :  { %2425 = vrot.lane.b32.xlu1 %v5944_v35, %s5305_s0 }
 0x2ca   :  { %2423 = vrot.lane.b32.xlu0 %v5936_v30, %s5305_s0 }
 0x2cb   :  { %2429 = vrot.lane.b32.xlu1 %v5960_v45, %s5305_s0 }
 0x2cc   :  { %v1919_v9 = vpop.permute.xlu0 %1918 }
 0x2cd   :  { %4412 = vmatmul.mubr.msk.bf16.vlgmr.msra.gmra.mrb[52].mxu1 %vm1723_vm0, %v5992_v4  ;;  %4795 = vmatprep.subr.msk.bf16.mxu1 %vm1723_vm0, %v1919_v9  ;;  %v1939_v7 = vsel %vm1723_vm0, %v1919_v9, 0 }
 0x2ce   :  { %4415 = vmatprep.mubr.msk.bf16.mxu1 %vm1723_vm0, %v5998_v60  ;;  %4420 = vmatpush3.bf16.xpose.msra.mxu1 %v1939_v7 }
 0x2cf   :  { %2427 = vrot.lane.b32.xlu0 %v5952_v40, %s5305_s0 }
 0x2d4   :  { %v1921_v38 = vpop.permute.xlu1 %1920 }
 0x2d5   :  { %4416 = vmatmul.mubr.msk.bf16.gmra.mrb[56].mxu1 %vm1723_vm0, %v6004_v18  ;;  %4796 = vmatprep.subr.msk.bf16.mxu1 %vm1723_vm0, %v1921_v38  ;;  %v1942_v32 = vsel %vm1723_vm0, %v1921_v38, 0 }
 0x2d6   :  { %4422 = vmatpush3.bf16.xpose.msra.mxu1 %v1942_v32  ;;  %4427 = vmatprep.mubr.msk.bf16.mxu1 %vm1723_vm0, %v6010_v11 }
 0x2dc   :  { %v1923_v4 = vpop.permute.xlu0 %1922 }
 0x2dd   :  { %4797 = vmatprep.subr.msk.bf16.mxu1 %vm1723_vm0, %v1923_v4  ;;  %v1945_v60 = vsel %vm1723_vm0, %v1923_v4, 0 }
 0x2de   :  { %4424 = vmatpush3.bf16.xpose.msra.mxu1 %v1945_v60 }
 0x2e4   :  { %v1925_v57 = vpop.permute.xlu1 %1924 }
 0x2e5   :  { %4798 = vmatprep.subr.msk.bf16.mxu1 %vm1723_vm0, %v1925_v57  ;;  %v1948_v15 = vsel %vm1723_vm0, %v1925_v57, 0 }
 0x2e6   :  { %4426 = vmatpush3.bf16.xpose.msra.mxu1 %v1948_v15 }
 0x2ec   :  { %v2020_v18 = vpop.permute.xlu0 %2019 }
 0x2ed   :  { %4428 = vmatmul.mubr.msk.bf16.vlgmr.msra.gmra.mrb[60].mxu1 %vm1723_vm0, %v6016_v14  ;;  %4799 = vmatprep.subr.msk.bf16.mxu1 %vm1723_vm0, %v2020_v18  ;;  %v2040_v11 = vsel %vm1723_vm0, %v2020_v18, 0 }
 0x2ee   :  { %4431 = vmatprep.mubr.msk.bf16.mxu1 %vm1723_vm0, %v6022_v37  ;;  %4436 = vmatpush3.bf16.xpose.msra.mxu1 %v2040_v11 }
 0x2f4   :  { %v2022_v53 = vpop.permute.xlu1 %2021 }
 0x2f5   :  { %4432 = vmatmul.mubr.msk.bf16.gmra.mrb[64].mxu1 %vm1723_vm0, %v6028_v42  ;;  %4800 = vmatprep.subr.msk.bf16.mxu1 %vm1723_vm0, %v2022_v53  ;;  %v2043_v22 = vsel %vm1723_vm0, %v2022_v53, 0 }
 0x2f6   :  { %4438 = vmatpush3.bf16.xpose.msra.mxu1 %v2043_v22  ;;  %4443 = vmatprep.mubr.msk.bf16.mxu1 %vm1723_vm0, %v6034_v50 }
 0x2fc   :  { %v2024_v14 = vpop.permute.xlu0 %2023 }
 0x2fd   :  { %4801 = vmatprep.subr.msk.bf16.mxu1 %vm1723_vm0, %v2024_v14  ;;  %v2046_v29 = vsel %vm1723_vm0, %v2024_v14, 0 }
 0x2fe   :  { %4440 = vmatpush3.bf16.xpose.msra.mxu1 %v2046_v29 }
 0x304   :  { %v2026_v37 = vpop.permute.xlu1 %2025 }
 0x305   :  { %4802 = vmatprep.subr.msk.bf16.mxu1 %vm1723_vm0, %v2026_v37  ;;  %v2049_v9 = vsel %vm1723_vm0, %v2026_v37, 0  ;;  %v2520_v37 = vlaneseq }
 0x306   :  { %4442 = vmatpush3.bf16.xpose.msra.mxu1 %v2049_v9 }
 0x30c   :  { %v2121_v42 = vpop.permute.xlu0 %2120 }
 0x30d   :  { %4444 = vmatmul.mubr.msk.bf16.vlgmr.msra.gmra.mrb[68].mxu1 %vm1723_vm0, %v6040_v48  ;;  %4803 = vmatprep.subr.msk.bf16.mxu1 %vm1723_vm0, %v2121_v42  ;;  %v2141_v50 = vsel %vm1723_vm0, %v2121_v42, 0 }
 0x30e   :  { %4447 = vmatprep.mubr.msk.bf16.mxu1 %vm1723_vm0, %v6046_v41  ;;  %4452 = vmatpush3.bf16.xpose.msra.mxu1 %v2141_v50 }
 0x314   :  { %v2123_v7 = vpop.permute.xlu1 %2122 }
 0x315   :  { %4448 = vmatmul.mubr.msk.bf16.gmra.mrb[72].mxu1 %vm1723_vm0, %v6054_v61  ;;  %4804 = vmatprep.subr.msk.bf16.mxu1 %vm1723_vm0, %v2123_v7  ;;  %v2144_v38 = vsel %vm1723_vm0, %v2123_v7, 0  ;;  %v2530_v7 = vand.u32 127, %v2520_v37 }
 0x316   :  { %4454 = vmatpush3.bf16.xpose.msra.mxu1 %v2144_v38  ;;  %4459 = vmatprep.mubr.msk.bf16.mxu1 %vm1723_vm0, %v6062_v44 }
 0x31c   :  { %v2125_v48 = vpop.permute.xlu0 %2124 }
 0x31d   :  { %4805 = vmatprep.subr.msk.bf16.mxu1 %vm1723_vm0, %v2125_v48  ;;  %v2147_v32 = vsel %vm1723_vm0, %v2125_v48, 0 }
 0x31e   :  { %4456 = vmatpush3.bf16.xpose.msra.mxu1 %v2147_v32 }
 0x324   :  { %v2127_v41 = vpop.permute.xlu1 %2126 }
 0x325   :  { %4806 = vmatprep.subr.msk.bf16.mxu1 %vm1723_vm0, %v2127_v41  ;;  %v2150_v4 = vsel %vm1723_vm0, %v2127_v41, 0 }
 0x326   :  { %4458 = vmatpush3.bf16.xpose.msra.mxu1 %v2150_v4 }
 0x329   :  { %v2224_v60 = vpop.permute.xlu1 %2223 }
 0x32a   :  { %v2245_v57 = vsel %vm1723_vm0, %v2224_v60, 0 }
 0x32c   :  { %v2222_v61 = vpop.permute.xlu0 %2221 }
 0x32d   :  { %4460 = vmatmul.mubr.msk.bf16.vlgmr.msra.gmra.mrb[76].mxu1 %vm1723_vm0, %v6070_v5  ;;  %4807 = vmatprep.subr.msk.bf16.mxu1 %vm1723_vm0, %v2222_v61  ;;  %v2242_v44 = vsel %vm1723_vm0, %v2222_v61, 0  ;;  %v2228_v18 = vpop.permute.xlu1 %2227 }
 0x32e   :  { %4463 = vmatprep.mubr.msk.bf16.mxu1 %vm1723_vm0, %v6078_v0  ;;  %4468 = vmatpush3.bf16.xpose.msra.mxu1 %v2242_v44  ;;  %v2251_v0 = vsel %vm1723_vm0, %v2228_v18, 0 }
 0x32f   :  { %4808 = vmatprep.subr.msk.bf16.mxu1 %vm1723_vm0, %v2224_v60 }
 0x330   :  { %v2226_v15 = vpop.permute.xlu0 %2225 }
 0x331   :  { %v2248_v5 = vsel %vm1723_vm0, %v2226_v15, 0 }
 0x334   :  { %v2323_v11 = vpop.permute.xlu0 %2322 }
 0x335   :  { %4464 = vmatmul.mubr.msk.bf16.gmra.mrb[80].mxu1 %vm1723_vm0, %v6090_v52  ;;  %v2343_v52 = vsel %vm1723_vm0, %v2323_v11, 0 }
 0x336   :  { %4470 = vmatpush3.bf16.xpose.msra.mxu1 %v2245_v57  ;;  %4475 = vmatprep.mubr.msk.bf16.mxu1 %vm1723_vm0, %v6104_v56  ;;  %v2325_v56 = vpop.permute.xlu1 %2324 }
 0x337   :  { %4809 = vmatprep.subr.msk.bf16.mxu1 %vm1723_vm0, %v2226_v15  ;;  %v2346_v53 = vsel %vm1723_vm0, %v2325_v56, 0 }
 0x338   :  { %v2327_v22 = vpop.permute.xlu0 %2326 }
 0x33a   :  { %v2329_v14 = vpop.permute.xlu1 %2328 }
 0x33c   :  { %v2424_v29 = vpop.permute.xlu0 %2423 }
 0x33e   :  { %4472 = vmatpush3.bf16.xpose.msra.mxu1 %v2248_v5 }
 0x33f   :  { %4810 = vmatprep.subr.msk.bf16.mxu1 %vm1723_vm0, %v2228_v18 }
 0x341   :  { %v2428_v42 = vpop.permute.xlu0 %2427 }
 0x346   :  { %4474 = vmatpush3.bf16.xpose.msra.mxu1 %v2251_v0 }
 0x347   :  { %4811 = vmatprep.subr.msk.bf16.mxu1 %vm1723_vm0, %v2323_v11 }
 0x34d   :  { %4476 = vmatmul.mubr.msk.bf16.vlgmr.msra.gmra.mrb[84].mxu1 %vm1723_vm0, %v5864_v28  ;;  %v2349_v28 = vsel %vm1723_vm0, %v2327_v22, 0 }
 0x34e   :  { %4479 = vmatprep.mubr.msk.bf16.mxu1 %vm1723_vm0, %v5876_v54  ;;  %4484 = vmatpush3.bf16.xpose.msra.mxu1 %v2343_v52  ;;  %v2352_v54 = vsel %vm1723_vm0, %v2329_v14, 0 }
 0x34f   :  { %4812 = vmatprep.subr.msk.bf16.mxu1 %vm1723_vm0, %v2325_v56 }
 0x355   :  { %4480 = vmatmul.mubr.msk.bf16.gmra.mrb[88].mxu1 %vm1723_vm0, %v5888_v3  ;;  %v2444_v3 = vsel %vm1723_vm0, %v2424_v29, 0 }
 0x356   :  { %4486 = vmatpush3.bf16.xpose.msra.mxu1 %v2346_v53  ;;  %4491 = vmatprep.mubr.msk.bf16.mxu1 %vm1723_vm0, %v5900_v43  ;;  %v2426_v43 = vpop.permute.xlu1 %2425 }
 0x357   :  { %4813 = vmatprep.subr.msk.bf16.mxu1 %vm1723_vm0, %v2327_v22  ;;  %v2447_v9 = vsel %vm1723_vm0, %v2426_v43, 0 }
 0x35a   :  { %v2430_v48 = vpop.permute.xlu1 %2429 }
 0x35b   :  { %v2453_v22 = vsel %vm1723_vm0, %v2430_v48, 0 }
 0x35e   :  { %4488 = vmatpush3.bf16.xpose.msra.mxu1 %v2349_v28 }
 0x35f   :  { %4814 = vmatprep.subr.msk.bf16.mxu1 %vm1723_vm0, %v2329_v14 }
 0x366   :  { %4490 = vmatpush3.bf16.xpose.msra.mxu1 %v2352_v54 }
 0x367   :  { %4815 = vmatprep.subr.msk.bf16.mxu1 %vm1723_vm0, %v2424_v29 }
 0x36d   :  { %4492 = vmatmul.mubr.msk.bf16.vlgmr.msra.gmra.mrb[92].mxu1 %vm1723_vm0, %v5912_v2  ;;  %v2521_v2 = vshrl.u32 %v2520_v37, 7 }
 0x36e   :  { %4495 = vmatprep.mubr.msk.bf16.mxu1 %vm1723_vm0, %v5920_v6  ;;  %4500 = vmatpush3.bf16.xpose.msra.mxu1 %v2444_v3  ;;  %v2450_v6 = vsel %vm1723_vm0, %v2428_v42, 0 }
 0x36f   :  { %4816 = vmatprep.subr.msk.bf16.mxu1 %vm1723_vm0, %v2426_v43  ;;  %v2523_v50 = vadd.s32 16, %v2521_v2  ;;  %v2522_v38 = vadd.s32 8, %v2521_v2  ;;  %vm6233_vm2 = vcmp.le.s32.totalorder %v2530_v7, %v2521_v2  ;;  %v2527_v15 = vadd.s32 48, %v2521_v2 }
 0x370   :  { %v2525_v52 = vadd.s32 32, %v2521_v2  ;;  %v2528_v56 = vadd.s32 56, %v2521_v2  ;;  %v2526_v37 = vadd.s32 40, %v2521_v2 }
 0x371   :  { %vm6228_vm1 = vcmp.le.s32.totalorder %v2530_v7, %v2523_v50  ;;  %vm6241_vm3 = vcmp.le.s32.totalorder %v2530_v7, %v2522_v38  ;;  %vm6264_vm5 = vcmp.le.s32.totalorder %v2530_v7, %v2527_v15 }
 0x372   :  { %vm6273_vm6 = vcmp.le.s32.totalorder %v2530_v7, %v2525_v52  ;;  %vm6277_vm7 = vcmp.le.s32.totalorder %v2530_v7, %v2528_v56  ;;  %vm6297_vm8 = vcmp.le.s32.totalorder %v2530_v7, %v2526_v37 }
 0x375   :  { %4496 = vmatmul.mubr.msk.bf16.gmra.mrb[96].mxu1 %vm1723_vm0, %v5928_v25 }
 0x376   :  { %4502 = vmatpush3.bf16.xpose.msra.mxu1 %v2447_v9  ;;  %4507 = vmatprep.mubr.msk.bf16.mxu1 %vm1723_vm0, %v5936_v30  ;;  %v2524_v30 = vadd.s32 24, %v2521_v2 }
 0x377   :  { %4817 = vmatprep.subr.msk.bf16.mxu1 %vm1723_vm0, %v2428_v42 }
 0x378   :  { %vm6251_vm4 = vcmp.le.s32.totalorder %v2530_v7, %v2524_v30 }
 0x37e   :  { %4504 = vmatpush3.bf16.xpose.msra.mxu1 %v2450_v6 }
 0x37f   :  { %4818 = vmatprep.subr.msk.bf16.mxu1 %vm1723_vm0, %v2430_v48 }
 0x380   :  { %v4397_v25 = vpop.f32.mrb[44].mxu1 }
 0x381   :  { %v6239_v4 = vsel %vm6228_vm1, %v4397_v25, -inf  ;;  %v1782_v61 = vpop.f32.mrb[45].mxu1 }
 0x382   :  { %v4398_v60 = vpop.f32.mrb[46].mxu1  ;;  %v2625_v57 = vsel %vm1723_vm0, %v6239_v4, -inf  ;;  %v6249_v5 = vsel %vm6233_vm2, %v1782_v61, -inf }
 0x383   :  { %v1785_v18 = vpop.f32.mrb[47].mxu1  ;;  %2626 = vmax.xlane.f32.xlu0 %v2625_v57  ;;  %v2619_v28 = vsel %vm1723_vm0, %v6249_v5, -inf  ;;  %v6270_v54 = vsel %vm6251_vm4, %v4398_v60, -inf }
 0x384   :  { %v6257_v11 = vsel %vm6241_vm3, %v1785_v18, -inf  ;;  %v2628_v38 = vsel %vm1723_vm0, %v6270_v54, -inf }
 0x385   :  { %v2622_v53 = vsel %vm1723_vm0, %v6257_v11, -inf }
 0x386   :  { %2623 = vmax.xlane.f32.xlu1 %v2622_v53  ;;  %4506 = vmatpush3.bf16.xpose.msra.mxu1 %v2453_v22 }
 0x387   :  { %2620 = vmax.xlane.f32.xlu0 %v2619_v28  ;;  %4515 = vmatprep.subr.bf16.mxu1 %v5964_v47 }
 0x388   :  { %v4401_v29 = vpop.f32.mrb[48].mxu1 }
 0x389   :  { %v6283_v9 = vsel %vm6264_vm5, %v4401_v29, -inf  ;;  %v1798_v42 = vpop.f32.mrb[49].mxu1 }
 0x38a   :  { %v4402_v50 = vpop.f32.mrb[50].mxu1  ;;  %v2637_v6 = vsel %vm1723_vm0, %v6283_v9, -inf  ;;  %v6291_v48 = vsel %vm6273_vm6, %v1798_v42, -inf }
 0x38b   :  { %v6295_v25 = vsel %vm6277_vm7, %v4402_v50, -inf  ;;  %v1801_v2 = vpop.f32.mrb[51].mxu1  ;;  %2638 = vmax.xlane.f32.xlu1 %v2637_v6  ;;  %2629 = vmax.xlane.f32.xlu0 %v2628_v38  ;;  %v2631_v61 = vsel %vm1723_vm0, %v6291_v48, -inf }
 0x38c   :  { %v2640_v60 = vsel %vm1723_vm0, %v6295_v25, -inf  ;;  %v6312_v7 = vsel %vm6297_vm8, %v1801_v2, -inf }
 0x38d   :  { %4508 = vmatmul.mubr.msk.bf16.vlgmr.msra.gmra.mrb[100].mxu1 %vm1723_vm0, %v5944_v35  ;;  %v2634_v35 = vsel %vm1723_vm0, %v6312_v7, -inf }
 0x38e   :  { %4511 = vmatprep.mubr.msk.bf16.mxu1 %vm1723_vm0, %v5952_v40  ;;  %4516 = vmatpush3.bf16.msra.mxu1 %v5964_v47 }
 0x38f   :  { %2632 = vmax.xlane.f32.xlu1 %v2631_v61  ;;  %2641 = vmax.xlane.f32.xlu0 %v2640_v60 }
 0x390   :  { %4517 = vmatprep.subr.bf16.mxu1 %v5970_v23 }
 0x392   :  { %4518 = vmatpush3.bf16.msra.mxu1 %v5970_v23 }
 0x393   :  { %2635 = vmax.xlane.f32.xlu0 %v2634_v35  ;;  %4519 = vmatprep.subr.bf16.mxu1 %v5976_v12 }
 0x395   :  { %4512 = vmatmul.mubr.msk.bf16.gmra.mrb[104].mxu1 %vm1723_vm0, %v5960_v45 }
 0x396   :  { %4520 = vmatpush3.bf16.msra.mxu1 %v5976_v12 }
 0x397   :  { %4521 = vmatprep.subr.bf16.mxu1 %v5982_v1 }
 0x39a   :  { %4522 = vmatpush3.bf16.msra.mxu1 %v5982_v1 }
 0x39b   :  { %4531 = vmatprep.subr.bf16.mxu1 %v5988_v17 }
 0x3a0   :  { %v4413_v40 = vpop.f32.mrb[52].mxu1 }
 0x3a1   :  { %v6327_v47 = vsel %vm6228_vm1, %v4413_v40, -inf  ;;  %v1883_v23 = vpop.f32.mrb[53].mxu1 }
 0x3a2   :  { %v4414_v57 = vpop.f32.mrb[54].mxu1  ;;  %v2649_v15 = vsel %vm1723_vm0, %v6327_v47, -inf  ;;  %v6333_v45 = vsel %vm6233_vm2, %v1883_v23, -inf }
 0x3a3   :  { %v6337_v12 = vsel %vm6251_vm4, %v4414_v57, -inf  ;;  %v1886_v1 = vpop.f32.mrb[55].mxu1  ;;  %2650 = vmax.xlane.f32.xlu1 %v2649_v15  ;;  %v2643_v56 = vsel %vm1723_vm0, %v6333_v45, -inf }
 0x3a4   :  { %v2652_v18 = vsel %vm1723_vm0, %v6337_v12, -inf  ;;  %v6343_v52 = vsel %vm6241_vm3, %v1886_v1, -inf }
 0x3a5   :  { %2653 = vmax.xlane.f32.xlu0 %v2652_v18  ;;  %v2646_v22 = vsel %vm1723_vm0, %v6343_v52, -inf }
 0x3a7   :  { %2644 = vmax.xlane.f32.xlu1 %v2643_v56 }
 0x3a8   :  { %v4417_v53 = vpop.f32.mrb[56].mxu1 }
 0x3a9   :  { %v6351_v28 = vsel %vm6264_vm5, %v4417_v53, -inf  ;;  %v1899_v29 = vpop.f32.mrb[57].mxu1  ;;  %2647 = vmax.xlane.f32.xlu0 %v2646_v22 }
 0x3aa   :  { %v4418_v37 = vpop.f32.mrb[58].mxu1  ;;  %v2661_v42 = vsel %vm1723_vm0, %v6351_v28, -inf  ;;  %v6357_v50 = vsel %vm6273_vm6, %v1899_v29, -inf }
 0x3ab   :  { %v6361_v6 = vsel %vm6277_vm7, %v4418_v37, -inf  ;;  %v1902_v38 = vpop.f32.mrb[59].mxu1  ;;  %2662 = vmax.xlane.f32.xlu1 %v2661_v42  ;;  %v2655_v60 = vsel %vm1723_vm0, %v6357_v50, -inf }
 0x3ac   :  { %v2664_v2 = vsel %vm1723_vm0, %v6361_v6, -inf  ;;  %v6367_v61 = vsel %vm6297_vm8, %v1902_v38, -inf }
 0x3ad   :  { %2665 = vmax.xlane.f32.xlu0 %v2664_v2  ;;  %v2658_v35 = vsel %vm1723_vm0, %v6367_v61, -inf }
 0x3af   :  { %2656 = vmax.xlane.f32.xlu1 %v2655_v60 }
 0x3b1   :  { %2659 = vmax.xlane.f32.xlu0 %v2658_v35 }
 0x3c0   :  { %v4429_v40 = vpop.f32.mrb[60].mxu1 }
 0x3c1   :  { %v6375_v23 = vsel %vm6228_vm1, %v4429_v40, -inf  ;;  %v1984_v57 = vpop.f32.mrb[61].mxu1 }
 0x3c2   :  { %v4430_v15 = vpop.f32.mrb[62].mxu1  ;;  %v2673_v1 = vsel %vm1723_vm0, %v6375_v23, -inf  ;;  %v6381_v18 = vsel %vm6233_vm2, %v1984_v57, -inf }
 0x3c3   :  { %v6385_v56 = vsel %vm6251_vm4, %v4430_v15, -inf  ;;  %v1987_v53 = vpop.f32.mrb[63].mxu1  ;;  %2674 = vmax.xlane.f32.xlu1 %v2673_v1  ;;  %v2667_v37 = vsel %vm1723_vm0, %v6381_v18, -inf }
 0x3c4   :  { %v2676_v22 = vsel %vm1723_vm0, %v6385_v56, -inf  ;;  %v6391_v29 = vsel %vm6241_vm3, %v1987_v53, -inf }
 0x3c5   :  { %2677 = vmax.xlane.f32.xlu0 %v2676_v22  ;;  %v2670_v38 = vsel %vm1723_vm0, %v6391_v29, -inf }
 0x3c7   :  { %2668 = vmax.xlane.f32.xlu1 %v2667_v37 }
 0x3c8   :  { %v4433_v42 = vpop.f32.mrb[64].mxu1 }
 0x3c9   :  { %v6399_v2 = vsel %vm6264_vm5, %v4433_v42, -inf  ;;  %v2000_v60 = vpop.f32.mrb[65].mxu1  ;;  %2671 = vmax.xlane.f32.xlu0 %v2670_v38 }
 0x3ca   :  { %v4434_v35 = vpop.f32.mrb[66].mxu1  ;;  %v2685_v40 = vsel %vm1723_vm0, %v6399_v2, -inf  ;;  %v6405_v57 = vsel %vm6273_vm6, %v2000_v60, -inf }
 0x3cb   :  { %v6409_v15 = vsel %vm6277_vm7, %v4434_v35, -inf  ;;  %v2003_v1 = vpop.f32.mrb[67].mxu1  ;;  %2686 = vmax.xlane.f32.xlu1 %v2685_v40  ;;  %v2679_v37 = vsel %vm1723_vm0, %v6405_v57, -inf }
 0x3cc   :  { %v2688_v53 = vsel %vm1723_vm0, %v6409_v15, -inf  ;;  %v6415_v22 = vsel %vm6297_vm8, %v2003_v1, -inf }
 0x3cd   :  { %2689 = vmax.xlane.f32.xlu0 %v2688_v53  ;;  %v2682_v42 = vsel %vm1723_vm0, %v6415_v22, -inf }
 0x3cf   :  { %2680 = vmax.xlane.f32.xlu1 %v2679_v37 }
 0x3d1   :  { %2683 = vmax.xlane.f32.xlu0 %v2682_v42 }
 0x3e0   :  { %v4445_v38 = vpop.f32.mrb[68].mxu1 }
 0x3e1   :  { %v6423_v60 = vsel %vm6228_vm1, %v4445_v38, -inf  ;;  %v2085_v35 = vpop.f32.mrb[69].mxu1 }
 0x3e2   :  { %v4446_v40 = vpop.f32.mrb[70].mxu1  ;;  %v2697_v1 = vsel %vm1723_vm0, %v6423_v60, -inf  ;;  %v6429_v53 = vsel %vm6233_vm2, %v2085_v35, -inf }
 0x3e3   :  { %v6433_v37 = vsel %vm6251_vm4, %v4446_v40, -inf  ;;  %v2088_v10 = vpop.f32.mrb[71].mxu1  ;;  %2698 = vmax.xlane.f32.xlu1 %v2697_v1  ;;  %v2691_v21 = vsel %vm1723_vm0, %v6429_v53, -inf }
 0x3e4   :  { %v2700_v42 = vsel %vm1723_vm0, %v6433_v37, -inf  ;;  %v6439_v38 = vsel %vm6241_vm3, %v2088_v10, -inf }
 0x3e5   :  { %2701 = vmax.xlane.f32.xlu0 %v2700_v42  ;;  %v2694_v59 = vsel %vm1723_vm0, %v6439_v38, -inf }
 0x3e7   :  { %2692 = vmax.xlane.f32.xlu1 %v2691_v21 }
 0x3e8   :  { %v4449_v35 = vpop.f32.mrb[72].mxu1 }
 0x3e9   :  { %v6447_v40 = vsel %vm6264_vm5, %v4449_v35, -inf  ;;  %v2101_v1 = vpop.f32.mrb[73].mxu1  ;;  %2695 = vmax.xlane.f32.xlu0 %v2694_v59 }
 0x3ea   :  { %v4450_v63 = vpop.f32.mrb[74].mxu1  ;;  %v2709_v10 = vsel %vm1723_vm0, %v6447_v40, -inf  ;;  %v6453_v42 = vsel %vm6273_vm6, %v2101_v1, -inf }
 0x3eb   :  { %v6457_v21 = vsel %vm6277_vm7, %v4450_v63, -inf  ;;  %v2104_v8 = vpop.f32.mrb[75].mxu1  ;;  %2710 = vmax.xlane.f32.xlu1 %v2709_v10  ;;  %v2703_v55 = vsel %vm1723_vm0, %v6453_v42, -inf }
 0x3ec   :  { %v2712_v35 = vsel %vm1723_vm0, %v6457_v21, -inf  ;;  %v6463_v59 = vsel %vm6297_vm8, %v2104_v8, -inf }
 0x3ed   :  { %2713 = vmax.xlane.f32.xlu0 %v2712_v35  ;;  %v2706_v1 = vsel %vm1723_vm0, %v6463_v59, -inf }
 0x3ef   :  { %2704 = vmax.xlane.f32.xlu1 %v2703_v55 }
 0x3f1   :  { %2707 = vmax.xlane.f32.xlu0 %v2706_v1 }
 0x400   :  { %v4461_v63 = vpop.f32.mrb[76].mxu1 }
 0x401   :  { %v6471_v10 = vsel %vm6228_vm1, %v4461_v63, -inf  ;;  %v2186_v33 = vpop.f32.mrb[77].mxu1 }
 0x402   :  { %v4462_v58 = vpop.f32.mrb[78].mxu1  ;;  %v2721_v8 = vsel %vm1723_vm0, %v6471_v10, -inf  ;;  %v6477_v35 = vsel %vm6233_vm2, %v2186_v33, -inf }
 0x403   :  { %v6481_v55 = vsel %vm6251_vm4, %v4462_v58, -inf  ;;  %2722 = vmax.xlane.f32.xlu1 %v2721_v8  ;;  %v2189_v1 = vpop.f32.mrb[79].mxu1  ;;  %v2715_v51 = vsel %vm1723_vm0, %v6477_v35, -inf }
 0x404   :  { %v2724_v24 = vsel %vm1723_vm0, %v6481_v55, -inf  ;;  %v6487_v63 = vsel %vm6241_vm3, %v2189_v1, -inf }
 0x405   :  { %2725 = vmax.xlane.f32.xlu0 %v2724_v24  ;;  %v2718_v36 = vsel %vm1723_vm0, %v6487_v63, -inf }
 0x407   :  { %2716 = vmax.xlane.f32.xlu1 %v2715_v51 }
 0x408   :  { %v4465_v33 = vpop.f32.mrb[80].mxu1 }
 0x409   :  { %v6495_v58 = vsel %vm6264_vm5, %v4465_v33, -inf  ;;  %v2202_v8 = vpop.f32.mrb[81].mxu1  ;;  %2719 = vmax.xlane.f32.xlu0 %v2718_v36 }
 0x40a   :  { %v4466_v13 = vpop.f32.mrb[82].mxu1  ;;  %v2733_v1 = vsel %vm1723_vm0, %v6495_v58, -inf  ;;  %v6501_v24 = vsel %vm6273_vm6, %v2202_v8, -inf }
 0x40b   :  { %v6505_v51 = vsel %vm6277_vm7, %v4466_v13, -inf  ;;  %2734 = vmax.xlane.f32.xlu1 %v2733_v1  ;;  %v2205_v31 = vpop.f32.mrb[83].mxu1  ;;  %v2727_v20 = vsel %vm1723_vm0, %v6501_v24, -inf }
 0x40c   :  { %v2736_v33 = vsel %vm1723_vm0, %v6505_v51, -inf  ;;  %v6511_v36 = vsel %vm6297_vm8, %v2205_v31, -inf }
 0x40d   :  { %2737 = vmax.xlane.f32.xlu0 %v2736_v33  ;;  %v2730_v16 = vsel %vm1723_vm0, %v6511_v36, -inf }
 0x40f   :  { %2728 = vmax.xlane.f32.xlu1 %v2727_v20 }
 0x410   :  { %v2627_v8 = vpop.xlane.xlu0 %2626 }
 0x411   :  { %v2813_v13 = vsub.f32 %v6239_v4, %v2627_v8  ;;  %2731 = vmax.xlane.f32.xlu0 %v2730_v16 }
 0x413   :  { %v2879_v1 = vmul.f32 1.442695, %v2813_v13  ;;  %v2624_v26 = vpop.xlane.xlu1 %2623 }
 0x414   :  { %v2621_v46 = vpop.xlane.xlu0 %2620  ;;  %v2812_v33 = vsub.f32 %v6257_v11, %v2624_v26 }
 0x415   :  { %5024 = vpow2.f32 %v2879_v1  ;;  %v2811_v39 = vsub.f32 %v6249_v5, %v2621_v46 }
 0x416   :  { %v2877_v19 = vmul.f32 1.442695, %v2812_v33 }
 0x417   :  { %v2875_v31 = vmul.f32 1.442695, %v2811_v39 }
 0x418   :  { %v2639_v34 = vpop.xlane.xlu1 %2638  ;;  %v2630_v27 = vpop.xlane.xlu0 %2629 }
 0x419   :  { %5026 = vpow2.f32 %v2875_v31  ;;  %v2814_v20 = vsub.f32 %v6270_v54, %v2630_v27  ;;  %v2817_v49 = vsub.f32 %v6283_v9, %v2639_v34 }
 0x41b   :  { %v2881_v62 = vmul.f32 1.442695, %v2814_v20  ;;  %v2887_v8 = vmul.f32 1.442695, %v2817_v49 }
 0x41c   :  { %v2633_v4 = vpop.xlane.xlu1 %2632  ;;  %v2642_v46 = vpop.xlane.xlu0 %2641 }
 0x41d   :  { %5028 = vpow2.f32 %v2881_v62  ;;  %v2815_v13 = vsub.f32 %v6291_v48, %v2633_v4  ;;  %v2818_v62 = vsub.f32 %v6295_v25, %v2642_v46 }
 0x41e   :  { %5030 = vpow2.f32 %v2877_v19 }
 0x41f   :  { %v6522_v16 = vpop.eup %5024  ;;  %5032 = vpow2.f32 %v2887_v8  ;;  %v2883_v34 = vmul.f32 1.442695, %v2815_v13  ;;  %v2889_v1 = vmul.f32 1.442695, %v2818_v62 }
 0x420   :  { %v4477_v39 = vpop.f32.mrb[84].mxu1  ;;  %v3009_v26 = vsel %vm1723_vm0, %v6522_v16, 0.0  ;;  %v2636_v9 = vpop.xlane.xlu0 %2635 }
 0x421   :  { %3010 = vadd.xlane.f32.xlu1 %v3009_v26  ;;  %v2287_v5 = vpop.f32.mrb[85].mxu1  ;;  %v6534_v19 = vsel %vm6228_vm1, %v4477_v39, -inf  ;;  %5034 = vpow2.f32 %v2883_v34  ;;  %v2816_v31 = vsub.f32 %v6312_v7, %v2636_v9 }
 0x422   :  { %v4478_v27 = vpop.f32.mrb[86].mxu1  ;;  %v2745_v20 = vsel %vm1723_vm0, %v6534_v19, -inf  ;;  %v6543_v25 = vsel %vm6233_vm2, %v2287_v5, -inf  ;;  %5036 = vpow2.f32 %v2889_v1 }
 0x423   :  { %v6527_v11 = vpop.eup %5026  ;;  %v2290_v54 = vpop.f32.mrb[87].mxu1  ;;  %v2885_v7 = vmul.f32 1.442695, %v2816_v31  ;;  %v2739_v26 = vsel %vm1723_vm0, %v6543_v25, -inf  ;;  %v6557_v62 = vsel %vm6251_vm4, %v4478_v27, -inf }
 0x424   :  { %v3003_v49 = vsel %vm1723_vm0, %v6527_v11, 0.0 }
 0x425   :  { %3004 = vadd.xlane.f32.xlu1 %v3003_v49  ;;  %5038 = vpow2.f32 %v2885_v7 }
 0x427   :  { %v6536_v48 = vpop.eup %5028 }
 0x428   :  { %v4481_v33 = vpop.f32.mrb[88].mxu1  ;;  %v3012_v4 = vsel %vm1723_vm0, %v6536_v48, 0.0  ;;  %v6547_v13 = vpop.eup %5030 }
 0x429   :  { %2746 = vmax.xlane.f32.xlu1 %v2745_v20  ;;  %v2303_v8 = vpop.f32.mrb[89].mxu1  ;;  %3013 = vadd.xlane.f32.xlu0 %v3012_v4  ;;  %v6551_v34 = vpop.eup %5032  ;;  %v3006_v5 = vsel %vm1723_vm0, %v6547_v13, 0.0  ;;  %v2748_v20 = vsel %vm1723_vm0, %v6557_v62, -inf  ;;  %v6568_v4 = vsel %vm6241_vm3, %v2290_v54, -inf }
 0x42a   :  { %v4482_v46 = vpop.f32.mrb[90].mxu1  ;;  %7301 = vst [vmem:[#allocation32_spill] sm:$0xff] %v6551_v34  ;;  %v3021_v9 = vsel %vm1723_vm0, %v6551_v34, 0.0  ;;  %v2742_v54 = vsel %vm1723_vm0, %v6568_v4, -inf }
 0x42b   :  { %v2306_v39 = vpop.f32.mrb[91].mxu1  ;;  %v6561_v1 = vpop.eup %5034 }
 0x42c   :  { %7302 = vst [vmem:[#allocation33_spill] sm:$0xff] %v6561_v1  ;;  %v3015_v34 = vsel %vm1723_vm0, %v6561_v1, 0.0 }
 0x42d   :  { %2740 = vmax.xlane.f32.xlu1 %v2739_v26  ;;  %3007 = vadd.xlane.f32.xlu0 %v3006_v5 }
 0x430   :  { %v2651_v49 = vpop.xlane.xlu1 %2650 }
 0x431   :  { %v2821_v31 = vsub.f32 %v6327_v47, %v2651_v49  ;;  %3022 = vadd.xlane.f32.xlu1 %v3021_v9  ;;  %2749 = vmax.xlane.f32.xlu0 %v2748_v20  ;;  %v6575_v47 = vsel %vm6264_vm5, %v4481_v33, -inf  ;;  %v6580_v9 = vpop.eup %5036 }
 0x432   :  { %v2654_v27 = vpop.xlane.xlu0 %2653  ;;  %v2757_v33 = vsel %vm1723_vm0, %v6575_v47, -inf }
 0x433   :  { %v2895_v26 = vmul.f32 1.442695, %v2821_v31  ;;  %v2822_v7 = vsub.f32 %v6337_v12, %v2654_v27 }
 0x434   :  { %v2645_v5 = vpop.xlane.xlu1 %2644 }
 0x435   :  { %5040 = vpow2.f32 %v2895_v26  ;;  %v2819_v49 = vsub.f32 %v6333_v45, %v2645_v5  ;;  %3016 = vadd.xlane.f32.xlu1 %v3015_v34  ;;  %2743 = vmax.xlane.f32.xlu0 %v2742_v54  ;;  %v2897_v20 = vmul.f32 1.442695, %v2822_v7  ;;  %v6587_v26 = vsel %vm6273_vm6, %v2303_v8, -inf  ;;  %v6591_v34 = vpop.eup %5038 }
 0x436   :  { %v2648_v31 = vpop.xlane.xlu0 %2647  ;;  %v3024_v45 = vsel %vm1723_vm0, %v6580_v9, 0.0  ;;  %7303 = vst [vmem:[#allocation34_spill] sm:$0xff] %v6591_v34  ;;  %v3018_v8 = vsel %vm1723_vm0, %v6591_v34, 0.0  ;;  %v6600_v54 = vsel %vm6277_vm7, %v4482_v46, -inf  ;;  %v6611_v46 = vsel %vm6297_vm8, %v2306_v39, -inf }
 0x437   :  { %v2891_v12 = vmul.f32 1.442695, %v2819_v49  ;;  %v2820_v27 = vsub.f32 %v6343_v52, %v2648_v31  ;;  %v2751_v49 = vsel %vm1723_vm0, %v6587_v26, -inf  ;;  %v2754_v39 = vsel %vm1723_vm0, %v6611_v46, -inf }
 0x438   :  { %v2663_v1 = vpop.xlane.xlu1 %2662 }
 0x439   :  { %5042 = vpow2.f32 %v2891_v12  ;;  %2758 = vmax.xlane.f32.xlu1 %v2757_v33  ;;  %3025 = vadd.xlane.f32.xlu0 %v3024_v45  ;;  %v2825_v7 = vsub.f32 %v6351_v28, %v2663_v1  ;;  %v2893_v52 = vmul.f32 1.442695, %v2820_v27  ;;  %v2760_v27 = vsel %vm1723_vm0, %v6600_v54, -inf }
 0x43a   :  { %5044 = vpow2.f32 %v2897_v20  ;;  %v2666_v33 = vpop.xlane.xlu0 %2665 }
 0x43b   :  { %v2903_v12 = vmul.f32 1.442695, %v2825_v7  ;;  %5046 = vpow2.f32 %v2893_v52 }
 0x43c   :  { %v2657_v5 = vpop.xlane.xlu1 %2656 }
 0x43d   :  { %2752 = vmax.xlane.f32.xlu1 %v2751_v49  ;;  %3019 = vadd.xlane.f32.xlu0 %v3018_v8  ;;  %v2823_v28 = vsub.f32 %v6357_v50, %v2657_v5  ;;  %5048 = vpow2.f32 %v2903_v12  ;;  %v2826_v5 = vsub.f32 %v6361_v6, %v2666_v33 }
 0x43f   :  { %v6602_v31 = vpop.eup %5040  ;;  %v2899_v50 = vmul.f32 1.442695, %v2823_v28  ;;  %v2905_v12 = vmul.f32 1.442695, %v2826_v5 }
 0x440   :  { %7304 = vst [vmem:[#allocation35_spill] sm:$0xff] %v6602_v31  ;;  %v4493_v1 = vpop.f32.mrb[92].mxu1  ;;  %v3033_v20 = vsel %vm1723_vm0, %v6602_v31, 0.0 }
 0x441   :  { %3034 = vadd.xlane.f32.xlu1 %v3033_v20  ;;  %v2388_v45 = vpop.f32.mrb[93].mxu1  ;;  %2761 = vmax.xlane.f32.xlu0 %v2760_v27  ;;  %v2660_v20 = vpop.xlane.xlu0 %2659  ;;  %v6620_v31 = vsel %vm6228_vm1, %v4493_v1, -inf  ;;  %5050 = vpow2.f32 %v2899_v50 }
 0x442   :  { %v4494_v49 = vpop.f32.mrb[94].mxu1  ;;  %v2824_v28 = vsub.f32 %v6367_v61, %v2660_v20  ;;  %v2769_v33 = vsel %vm1723_vm0, %v6620_v31, -inf  ;;  %5052 = vpow2.f32 %v2905_v12 }
 0x443   :  { %v6613_v7 = vpop.eup %5042  ;;  %v2391_v52 = vpop.f32.mrb[95].mxu1 }
 0x444   :  { %7305 = vst [vmem:[#allocation36_spill] sm:$0xff] %v6613_v7  ;;  %v3027_v8 = vsel %vm1723_vm0, %v6613_v7, 0.0  ;;  %v6624_v27 = vpop.eup %5044  ;;  %v6631_v7 = vsel %vm6233_vm2, %v2388_v45, -inf  ;;  %v2901_v61 = vmul.f32 1.442695, %v2824_v28 }
 0x445   :  { %3028 = vadd.xlane.f32.xlu1 %v3027_v8  ;;  %7306 = vst [vmem:[#allocation37_spill] sm:$0xff] %v6624_v27  ;;  %2755 = vmax.xlane.f32.xlu0 %v2754_v39  ;;  %7307 = vst [vmem:[#allocation38_spill] sm:$0xff] %v6631_v7  ;;  %v3036_v1 = vsel %vm1723_vm0, %v6624_v27, 0.0  ;;  %v6635_v34 = vpop.eup %5046  ;;  %v2763_v20 = vsel %vm1723_vm0, %v6631_v7, -inf }
 0x446   :  { %7308 = vst [vmem:[#allocation39_spill] sm:$0xff] %v6635_v34  ;;  %v3030_v45 = vsel %vm1723_vm0, %v6635_v34, 0.0  ;;  %5054 = vpow2.f32 %v2901_v61  ;;  %v6655_v34 = vsel %vm6241_vm3, %v2391_v52, -inf }
 0x447   :  { %v6639_v39 = vpop.eup %5048  ;;  %7312 = vst [vmem:[#allocation43_spill] sm:$0xff] %v6655_v34 }
 0x448   :  { %v4497_v6 = vpop.f32.mrb[96].mxu1  ;;  %7309 = vst [vmem:[#allocation40_spill] sm:$0xff] %v6639_v39  ;;  %v3045_v12 = vsel %vm1723_vm0, %v6639_v39, 0.0 }
 0x449   :  { %2770 = vmax.xlane.f32.xlu1 %v2769_v33  ;;  %v2404_v8 = vpop.f32.mrb[97].mxu1  ;;  %3037 = vadd.xlane.f32.xlu0 %v3036_v1  ;;  %v6645_v33 = vsel %vm6251_vm4, %v4494_v49, -inf }
 0x44a   :  { %v4498_v50 = vpop.f32.mrb[98].mxu1  ;;  %7310 = vst [vmem:[#allocation41_spill] sm:$0xff] %v6645_v33  ;;  %v2772_v27 = vsel %vm1723_vm0, %v6645_v33, -inf }
 0x44b   :  { %v2407_v5 = vpop.f32.mrb[99].mxu1  ;;  %v6649_v28 = vpop.eup %5050 }
 0x44c   :  { %7311 = vst [vmem:[#allocation42_spill] sm:$0xff] %v6649_v28  ;;  %v3039_v61 = vsel %vm1723_vm0, %v6649_v28, 0.0  ;;  %v6666_v33 = vpop.eup %5052 }
 0x44d   :  { %2764 = vmax.xlane.f32.xlu1 %v2763_v20  ;;  %3031 = vadd.xlane.f32.xlu0 %v3030_v45  ;;  %v6661_v45 = vsel %vm6264_vm5, %v4497_v6, -inf  ;;  %7314 = vst [vmem:[#allocation45_spill] sm:$0xff] %v6666_v33  ;;  %v6673_v6 = vsel %vm6273_vm6, %v2404_v8, -inf  ;;  %v6685_v8 = vsel %vm6277_vm7, %v4498_v50, -inf }
 0x44e   :  { %7313 = vst [vmem:[#allocation44_spill] sm:$0xff] %v6661_v45  ;;  %v2781_v28 = vsel %vm1723_vm0, %v6661_v45, -inf  ;;  %7315 = vst [vmem:[#allocation46_spill] sm:$0xff] %v6673_v6 }
 0x44f   :  { %7317 = vst [vmem:[#allocation48_spill] sm:$0xff] %v6685_v8 }
 0x450   :  { %v2675_v1 = vpop.xlane.xlu1 %2674 }
 0x451   :  { %3046 = vadd.xlane.f32.xlu1 %v3045_v12  ;;  %2773 = vmax.xlane.f32.xlu0 %v2772_v27  ;;  %v2766_v12 = vsel %vm1723_vm0, %v6655_v34, -inf }
 0x452   :  { %v2678_v20 = vpop.xlane.xlu0 %2677 }
 0x454   :  { %v2669_v49 = vpop.xlane.xlu1 %2668 }
 0x455   :  { %v2827_v39 = vsub.f32 %v6381_v18, %v2669_v49  ;;  %3040 = vadd.xlane.f32.xlu1 %v3039_v61  ;;  %2767 = vmax.xlane.f32.xlu0 %v2766_v12  ;;  %v3048_v49 = vsel %vm1723_vm0, %v6666_v33, 0.0  ;;  %v6677_v61 = vpop.eup %5054 }
 0x456   :  { %v2672_v52 = vpop.xlane.xlu0 %2671  ;;  %7316 = vst [vmem:[#allocation47_spill] sm:$0xff] %v6677_v61 }
 0x457   :  { %v2907_v27 = vmul.f32 1.442695, %v2827_v39  ;;  %v2828_v7 = vsub.f32 %v6391_v29, %v2672_v52  ;;  %v2775_v39 = vsel %vm1723_vm0, %v6673_v6, -inf  ;;  %v3042_v29 = vsel %vm1723_vm0, %v6677_v61, 0.0 }
 0x459   :  { %5056 = vpow2.f32 %v2907_v27  ;;  %v2909_v18 = vmul.f32 1.442695, %v2828_v7  ;;  %2782 = vmax.xlane.f32.xlu1 %v2781_v28  ;;  %3049 = vadd.xlane.f32.xlu0 %v3048_v49  ;;  %v2687_v7 = vpop.xlane.xlu1 %2686  ;;  %v2784_v28 = vsel %vm1723_vm0, %v6685_v8, -inf  ;;  %v6691_v27 = vsel %vm6297_vm8, %v2407_v5, -inf }
 0x45a   :  { %7318 = vst [vmem:[#allocation49_spill] sm:$0xff] %v6691_v27  ;;  %v2690_v61 = vpop.xlane.xlu0 %2689  ;;  %v2778_v8 = vsel %vm1723_vm0, %v6691_v27, -inf }
 0x45b   :  { %5058 = vpow2.f32 %v2909_v18 }
 0x45d   :  { %2776 = vmax.xlane.f32.xlu1 %v2775_v39  ;;  %3043 = vadd.xlane.f32.xlu0 %v3042_v29  ;;  %v2829_v39 = vsub.f32 %v6375_v23, %v2675_v1  ;;  %v2681_v33 = vpop.xlane.xlu1 %2680  ;;  %v2830_v1 = vsub.f32 %v6385_v56, %v2678_v20 }
 0x45e   :  { %v2831_v23 = vsub.f32 %v6405_v57, %v2681_v33  ;;  %v2684_v34 = vpop.xlane.xlu0 %2683  ;;  %v2833_v57 = vsub.f32 %v6399_v2, %v2687_v7 }
 0x45f   :  { %v2832_v41 = vsub.f32 %v6415_v22, %v2684_v34  ;;  %v2834_v22 = vsub.f32 %v6409_v15, %v2690_v61 }
 0x460   :  { %v4509_v12 = vpop.f32.mrb[100].mxu1  ;;  %v2915_v33 = vmul.f32 1.442695, %v2831_v23  ;;  %v2919_v2 = vmul.f32 1.442695, %v2833_v57 }
 0x461   :  { %v2489_v52 = vpop.f32.mrb[101].mxu1  ;;  %2785 = vmax.xlane.f32.xlu0 %v2784_v28  ;;  %v6702_v6 = vsel %vm6228_vm1, %v4509_v12, -inf  ;;  %v2911_v28 = vmul.f32 1.442695, %v2829_v39  ;;  %v2913_v39 = vmul.f32 1.442695, %v2830_v1 }
 0x462   :  { %v4510_v18 = vpop.f32.mrb[102].mxu1  ;;  %v2793_v45 = vsel %vm1723_vm0, %v6702_v6, -inf  ;;  %v6712_v27 = vsel %vm6233_vm2, %v2489_v52, -inf  ;;  %v2917_v34 = vmul.f32 1.442695, %v2832_v41 }
 0x463   :  { %v6693_v49 = vpop.eup %5056  ;;  %v2492_v50 = vpop.f32.mrb[103].mxu1  ;;  %5060 = vpow2.f32 %v2911_v28  ;;  %v2787_v52 = vsel %vm1723_vm0, %v6712_v27, -inf  ;;  %v2921_v61 = vmul.f32 1.442695, %v2834_v22 }
 0x464   :  { %7319 = vst [vmem:[#allocation50_spill] sm:$0xff] %v6693_v49  ;;  %v3051_v29 = vsel %vm1723_vm0, %v6693_v49, 0.0  ;;  %5062 = vpow2.f32 %v2915_v33 }
 0x465   :  { %3052 = vadd.xlane.f32.xlu1 %v3051_v29  ;;  %v6704_v5 = vpop.eup %5058  ;;  %2779 = vmax.xlane.f32.xlu0 %v2778_v8  ;;  %v6718_v8 = vsel %vm6251_vm4, %v4510_v18, -inf  ;;  %v6732_v18 = vsel %vm6241_vm3, %v2492_v50, -inf  ;;  %5064 = vpow2.f32 %v2913_v39 }
 0x466   :  { %v3054_v32 = vsel %vm1723_vm0, %v6704_v5, 0.0  ;;  %v2790_v14 = vsel %vm1723_vm0, %v6732_v18, -inf  ;;  %5066 = vpow2.f32 %v2919_v2 }
 0x467   :  { %5068 = vpow2.f32 %v2917_v34 }
 0x468   :  { %v4513_v49 = vpop.f32.mrb[104].mxu1  ;;  %5070 = vpow2.f32 %v2921_v61 }
 0x469   :  { %2794 = vmax.xlane.f32.xlu1 %v2793_v45  ;;  %v2505_v12 = vpop.f32.mrb[105].mxu1  ;;  %3055 = vadd.xlane.f32.xlu0 %v3054_v32  ;;  %v2796_v45 = vsel %vm1723_vm0, %v6718_v8, -inf  ;;  %v6728_v0 = vsel %vm6264_vm5, %v4513_v49, -inf }
 0x46a   :  { %v4514_v56 = vpop.f32.mrb[106].mxu1  ;;  %v2805_v7 = vsel %vm1723_vm0, %v6728_v0, -inf  ;;  %v6741_v49 = vsel %vm6273_vm6, %v2505_v12, -inf }
 0x46b   :  { %v2508_v20 = vpop.f32.mrb[107].mxu1  ;;  %v6745_v44 = vsel %vm6277_vm7, %v4514_v56, -inf  ;;  %v2799_v28 = vsel %vm1723_vm0, %v6741_v49, -inf }
 0x46c   :  { %v2808_v3 = vsel %vm1723_vm0, %v6745_v44, -inf  ;;  %v6757_v32 = vsel %vm6297_vm8, %v2508_v20, -inf }
 0x46d   :  { %2788 = vmax.xlane.f32.xlu1 %v2787_v52  ;;  %2797 = vmax.xlane.f32.xlu0 %v2796_v45  ;;  %v6750_v1 = vpop.eup %5060  ;;  %v2802_v30 = vsel %vm1723_vm0, %v6757_v32, -inf }
 0x46e   :  { %v3057_v41 = vsel %vm1723_vm0, %v6750_v1, 0.0  ;;  %v6763_v52 = vpop.eup %5062 }
 0x46f   :  { %v6767_v20 = vpop.eup %5064  ;;  %v3063_v22 = vsel %vm1723_vm0, %v6763_v52, 0.0 }
 0x470   :  { %v2699_v29 = vpop.xlane.xlu1 %2698  ;;  %v6772_v34 = vpop.eup %5066 }
 0x471   :  { %2806 = vmax.xlane.f32.xlu1 %v2805_v7  ;;  %2791 = vmax.xlane.f32.xlu0 %v2790_v14  ;;  %v2837_v15 = vsub.f32 %v6423_v60, %v2699_v29  ;;  %v3060_v29 = vsel %vm1723_vm0, %v6767_v20, 0.0  ;;  %v6777_v14 = vpop.eup %5068 }
 0x472   :  { %v2702_v50 = vpop.xlane.xlu0 %2701 }
 0x473   :  { %v2927_v12 = vmul.f32 1.442695, %v2837_v15  ;;  %v2838_v33 = vsub.f32 %v6433_v37, %v2702_v50 }
 0x474   :  { %v2693_v23 = vpop.xlane.xlu1 %2692 }
 0x475   :  { %v2835_v43 = vsub.f32 %v6429_v53, %v2693_v23  ;;  %2800 = vmax.xlane.f32.xlu1 %v2799_v28  ;;  %2809 = vmax.xlane.f32.xlu0 %v2808_v3  ;;  %v2929_v37 = vmul.f32 1.442695, %v2838_v33  ;;  %v3069_v23 = vsel %vm1723_vm0, %v6772_v34, 0.0  ;;  %v3066_v3 = vsel %vm1723_vm0, %v6777_v14, 0.0 }
 0x476   :  { %v2696_v60 = vpop.xlane.xlu0 %2695 }
 0x477   :  { %v2923_v56 = vmul.f32 1.442695, %v2835_v43  ;;  %v2836_v57 = vsub.f32 %v6439_v38, %v2696_v60  ;;  %v6785_v43 = vpop.eup %5070 }
 0x478   :  { %v2711_v39 = vpop.xlane.xlu1 %2710 }
 0x479   :  { %5072 = vpow2.f32 %v2923_v56  ;;  %v2925_v53 = vmul.f32 1.442695, %v2836_v57  ;;  %3058 = vadd.xlane.f32.xlu1 %v3057_v41  ;;  %2803 = vmax.xlane.f32.xlu0 %v2802_v30  ;;  %v2841_v38 = vsub.f32 %v6447_v40, %v2711_v39  ;;  %v3072_v56 = vsel %vm1723_vm0, %v6785_v43, 0.0 }
 0x47a   :  { %v2714_v45 = vpop.xlane.xlu0 %2713  ;;  %5074 = vpow2.f32 %v2927_v12 }
 0x47b   :  { %5076 = vpow2.f32 %v2925_v53  ;;  %v2935_v15 = vmul.f32 1.442695, %v2841_v38  ;;  %v2842_v28 = vsub.f32 %v6457_v21, %v2714_v45 }
 0x47c   :  { %v2705_v2 = vpop.xlane.xlu1 %2704  ;;  %5078 = vpow2.f32 %v2929_v37 }
 0x47d   :  { %v2839_v7 = vsub.f32 %v6453_v42, %v2705_v2  ;;  %3064 = vadd.xlane.f32.xlu1 %v3063_v22  ;;  %3061 = vadd.xlane.f32.xlu0 %v3060_v29  ;;  %v2937_v12 = vmul.f32 1.442695, %v2842_v28 }
 0x47e   :  { %v2708_v50 = vpop.xlane.xlu0 %2707 }
 0x47f   :  { %v2931_v40 = vmul.f32 1.442695, %v2839_v7  ;;  %v2840_v61 = vsub.f32 %v6463_v59, %v2708_v50 }
 0x481   :  { %5080 = vpow2.f32 %v2931_v40  ;;  %v2933_v42 = vmul.f32 1.442695, %v2840_v61  ;;  %3070 = vadd.xlane.f32.xlu1 %v3069_v23  ;;  %3067 = vadd.xlane.f32.xlu0 %v3066_v3 }
 0x482   :  { %5082 = vpow2.f32 %v2935_v15 }
 0x483   :  { %v6787_v60 = vpop.eup %5072  ;;  %5084 = vpow2.f32 %v2933_v42 }
 0x484   :  { %v3075_v21 = vsel %vm1723_vm0, %v6787_v60, 0.0  ;;  %v6791_v59 = vpop.eup %5074  ;;  %5086 = vpow2.f32 %v2937_v12 }
 0x485   :  { %3076 = vadd.xlane.f32.xlu1 %v3075_v21  ;;  %v6795_v57 = vpop.eup %5076  ;;  %3073 = vadd.xlane.f32.xlu0 %v3072_v56  ;;  %v3081_v33 = vsel %vm1723_vm0, %v6791_v59, 0.0 }
 0x486   :  { %v3078_v39 = vsel %vm1723_vm0, %v6795_v57, 0.0  ;;  %v6801_v41 = vpop.eup %5078 }
 0x487   :  { %v3084_v38 = vsel %vm1723_vm0, %v6801_v41, 0.0 }
 0x489   :  { %3082 = vadd.xlane.f32.xlu1 %v3081_v33  ;;  %3079 = vadd.xlane.f32.xlu0 %v3078_v39 }
 0x48b   :  { %v6803_v30 = vpop.eup %5080 }
 0x48c   :  { %v3087_v53 = vsel %vm1723_vm0, %v6803_v30, 0.0  ;;  %v6807_v45 = vpop.eup %5082 }
 0x48d   :  { %3088 = vadd.xlane.f32.xlu1 %v3087_v53  ;;  %v6811_v37 = vpop.eup %5084  ;;  %3085 = vadd.xlane.f32.xlu0 %v3084_v38  ;;  %v3093_v22 = vsel %vm1723_vm0, %v6807_v45, 0.0 }
 0x48e   :  { %v3090_v7 = vsel %vm1723_vm0, %v6811_v37, 0.0  ;;  %v6817_v29 = vpop.eup %5086 }
 0x48f   :  { %v3096_v23 = vsel %vm1723_vm0, %v6817_v29, 0.0 }
 0x490   :  { %v2723_v2 = vpop.xlane.xlu1 %2722 }
 0x491   :  { %3094 = vadd.xlane.f32.xlu1 %v3093_v22  ;;  %v2845_v50 = vsub.f32 %v6471_v10, %v2723_v2  ;;  %3091 = vadd.xlane.f32.xlu0 %v3090_v7 }
 0x492   :  { %v2726_v15 = vpop.xlane.xlu0 %2725 }
 0x493   :  { %v2846_v61 = vsub.f32 %v6481_v55, %v2726_v15  ;;  %v2943_v42 = vmul.f32 1.442695, %v2845_v50 }
 0x494   :  { %v2717_v40 = vpop.xlane.xlu1 %2716 }
 0x495   :  { %v2843_v28 = vsub.f32 %v6477_v35, %v2717_v40  ;;  %3097 = vadd.xlane.f32.xlu0 %v3096_v23  ;;  %v2945_v33 = vmul.f32 1.442695, %v2846_v61 }
 0x496   :  { %v2720_v3 = vpop.xlane.xlu0 %2719 }
 0x497   :  { %v2939_v12 = vmul.f32 1.442695, %v2843_v28  ;;  %v2844_v21 = vsub.f32 %v6487_v63, %v2720_v3 }
 0x498   :  { %v2735_v56 = vpop.xlane.xlu1 %2734 }
 0x499   :  { %5088 = vpow2.f32 %v2939_v12  ;;  %v2941_v10 = vmul.f32 1.442695, %v2844_v21  ;;  %v2849_v39 = vsub.f32 %v6495_v58, %v2735_v56 }
 0x49a   :  { %5090 = vpow2.f32 %v2943_v42  ;;  %v2738_v53 = vpop.xlane.xlu0 %2737 }
 0x49b   :  { %5092 = vpow2.f32 %v2941_v10  ;;  %v2850_v35 = vsub.f32 %v6505_v51, %v2738_v53  ;;  %v2951_v2 = vmul.f32 1.442695, %v2849_v39 }
 0x49c   :  { %v2729_v55 = vpop.xlane.xlu1 %2728  ;;  %5094 = vpow2.f32 %v2945_v33 }
 0x49d   :  { %v2847_v38 = vsub.f32 %v6501_v24, %v2729_v55  ;;  %v2953_v50 = vmul.f32 1.442695, %v2850_v35 }
 0x49e   :  { %v2732_v22 = vpop.xlane.xlu0 %2731 }
 0x49f   :  { %v2947_v7 = vmul.f32 1.442695, %v2847_v38  ;;  %v2848_v63 = vsub.f32 %v6511_v36, %v2732_v22 }
 0x4a1   :  { %5096 = vpow2.f32 %v2947_v7  ;;  %v2949_v15 = vmul.f32 1.442695, %v2848_v63 }
 0x4a2   :  { %5098 = vpow2.f32 %v2951_v2 }
 0x4a3   :  { %v6829_v40 = vpop.eup %5088  ;;  %5100 = vpow2.f32 %v2949_v15 }
 0x4a4   :  { %v6831_v58 = vpop.eup %5090  ;;  %v3099_v61 = vsel %vm1723_vm0, %v6829_v40, 0.0  ;;  %5102 = vpow2.f32 %v2953_v50 }
 0x4a5   :  { %v6835_v51 = vpop.eup %5092  ;;  %3100 = vadd.xlane.f32.xlu1 %v3099_v61  ;;  %v3105_v28 = vsel %vm1723_vm0, %v6831_v58, 0.0 }
 0x4a6   :  { %v3102_v24 = vsel %vm1723_vm0, %v6835_v51, 0.0  ;;  %v6839_v36 = vpop.eup %5094 }
 0x4a7   :  { %3103 = vadd.xlane.f32.xlu0 %v3102_v24  ;;  %v3108_v23 = vsel %vm1723_vm0, %v6839_v36, 0.0 }
 0x4a9   :  { %3106 = vadd.xlane.f32.xlu1 %v3105_v28 }
 0x4ab   :  { %v6845_v42 = vpop.eup %5096  ;;  %3109 = vadd.xlane.f32.xlu0 %v3108_v23 }
 0x4ac   :  { %v6847_v3 = vpop.eup %5098  ;;  %v3111_v12 = vsel %vm1723_vm0, %v6845_v42, 0.0 }
 0x4ad   :  { %v6851_v21 = vpop.eup %5100  ;;  %3112 = vadd.xlane.f32.xlu1 %v3111_v12  ;;  %v3117_v39 = vsel %vm1723_vm0, %v6847_v3, 0.0 }
 0x4ae   :  { %v3011_v56 = vpop.xlane.xlu1 %3010  ;;  %v3114_v33 = vsel %vm1723_vm0, %v6851_v21, 0.0  ;;  %v6855_v10 = vpop.eup %5102 }
 0x4af   :  { %3115 = vadd.xlane.f32.xlu0 %v3114_v33  ;;  %v3120_v55 = vsel %vm1723_vm0, %v6855_v10, 0.0 }
 0x4b1   :  { %3118 = vadd.xlane.f32.xlu1 %v3117_v39 }
 0x4b2   :  { %v3005_v53 = vpop.xlane.xlu1 %3004 }
 0x4b3   :  { %3121 = vadd.xlane.f32.xlu0 %v3120_v55 }
 0x4b6   :  { %v2747_v35 = vpop.xlane.xlu1 %2746  ;;  %v3014_v38 = vpop.xlane.xlu0 %3013 }
 0x4b7   :  { %5104 = vrcp.f32 %v3014_v38  ;;  %v2853_v2 = vsub.f32 %v6534_v19, %v2747_v35 }
 0x4b8   :  { %5106 = vrcp.f32 %v3005_v53 }
 0x4b9   :  { %5108 = vrcp.f32 %v3011_v56  ;;  %v2959_v50 = vmul.f32 1.442695, %v2853_v2 }
 0x4ba   :  { %v2741_v22 = vpop.xlane.xlu1 %2740  ;;  %v3008_v7 = vpop.xlane.xlu0 %3007 }
 0x4bb   :  { %v2851_v63 = vsub.f32 %v6543_v25, %v2741_v22  ;;  %5110 = vrcp.f32 %v3008_v7 }
 0x4bd   :  { %v2955_v15 = vmul.f32 1.442695, %v2851_v63 }
 0x4be   :  { %v3023_v61 = vpop.xlane.xlu1 %3022  ;;  %v2750_v24 = vpop.xlane.xlu0 %2749 }
 0x4bf   :  { %5112 = vpow2.f32 %v2955_v15  ;;  %v2854_v28 = vsub.f32 %v6557_v62, %v2750_v24 }
 0x4c0   :  { %5114 = vpow2.f32 %v2959_v50 }
 0x4c1   :  { %v5105_v12 = vpop.eup %5104  ;;  %v2961_v25 = vmul.f32 1.442695, %v2854_v28 }
 0x4c2   :  { %v3017_v23 = vpop.xlane.xlu1 %3016  ;;  %v2744_v33 = vpop.xlane.xlu0 %2743  ;;  %v3262_v55 = vmul.f32 %v5105_v12, %v6536_v48 }
 0x4c3   :  { %v5107_v39 = vpop.eup %5106  ;;  %v2852_v19 = vsub.f32 %v6568_v4, %v2744_v33  ;;  %5116 = vrcp.f32 %v3017_v23  ;;  %v7320_v23 = vld [vmem:[#allocation16_spill] sm:$0xff] }
 0x4c4   :  { %v5109_v53 = vpop.eup %5108  ;;  %v3259_v22 = vmul.f32 %v5107_v39, %v6527_v11 }
 0x4c5   :  { %v5111_v56 = vpop.eup %5110  ;;  %v2957_v35 = vmul.f32 1.442695, %v2852_v19  ;;  %v3261_v62 = vmul.f32 %v5109_v53, %v6522_v16  ;;  %v7321_v53 = vld [vmem:[#allocation17_spill] sm:$0xff] }
 0x4c6   :  { %v2759_v38 = vpop.xlane.xlu1 %2758  ;;  %v3026_v2 = vpop.xlane.xlu0 %3025  ;;  %v3260_v7 = vmul.f32 %v5111_v56, %v6547_v13 }
 0x4c7   :  { %5118 = vpow2.f32 %v2957_v35  ;;  %v2857_v4 = vsub.f32 %v6575_v47, %v2759_v38  ;;  %v3324_v15 = vpack.c.bf16 %v3262_v55, %v3261_v62 }
 0x4c8   :  { %5120 = vrcp.f32 %v3026_v2  ;;  %v3323_v50 = vpack.c.bf16 %v3260_v7, %v3259_v22 }
 0x4c9   :  { %v6869_v63 = vpop.eup %5112  ;;  %5122 = vpow2.f32 %v2961_v25  ;;  %v2967_v13 = vmul.f32 1.442695, %v2857_v4 }
 0x4ca   :  { %v2753_v48 = vpop.xlane.xlu1 %2752  ;;  %v3123_v24 = vsel %vm1723_vm0, %v6869_v63, 0.0  ;;  %v6874_v28 = vpop.eup %5114  ;;  %5124 = vrcp.f32 %v3023_v61  ;;  %4523 = vmatprep.mubr.msk.bf16.mxu1 %vm1723_vm0, %v3323_v50 }
 0x4cb   :  { %v3020_v11 = vpop.xlane.xlu0 %3019  ;;  %v2855_v16 = vsub.f32 %v6587_v26, %v2753_v48  ;;  %3124 = vadd.xlane.f32.xlu1 %v3123_v24  ;;  %4524 = vmatmul.mubr.msk.bf16.vlgmr.msra.gmra.mrb[108].mxu1 %vm1723_vm0, %v3324_v15  ;;  %v3129_v33 = vsel %vm1723_vm0, %v6874_v28, 0.0  ;;  %v7323_v24 = vld [vmem:[#allocation33_spill] sm:$0xff] }
 0x4cc   :  { %5126 = vrcp.f32 %v3020_v11  ;;  %4532 = vmatpush3.bf16.msra.mxu1 %v5988_v17 }
 0x4cd   :  { %v2963_v47 = vmul.f32 1.442695, %v2855_v16  ;;  %4533 = vmatprep.subr.bf16.mxu1 %v7320_v23  ;;  %v5117_v39 = vpop.eup %5116 }
 0x4ce   :  { %v3035_v12 = vpop.xlane.xlu1 %3034  ;;  %v3263_v11 = vmul.f32 %v5117_v39, %v7323_v24 }
 0x4cf   :  { %5128 = vpow2.f32 %v2963_v47  ;;  %v2762_v61 = vpop.xlane.xlu0 %2761  ;;  %3130 = vadd.xlane.f32.xlu1 %v3129_v33 }
 0x4d0   :  { %5130 = vpow2.f32 %v2967_v13  ;;  %4534 = vmatpush3.bf16.msra.mxu1 %v7320_v23  ;;  %v2858_v19 = vsub.f32 %v6600_v54, %v2762_v61  ;;  %v7322_v54 = vld [vmem:[#allocation18_spill] sm:$0xff]  ;;  %v7325_v13 = vld [vmem:[#allocation32_spill] sm:$0xff]  ;;  %v7326_v61 = vld [vmem:[#allocation19_spill] sm:$0xff] }
 0x4d1   :  { %v6884_v26 = vpop.eup %5118  ;;  %4535 = vmatprep.subr.bf16.mxu1 %v7321_v53 }
 0x4d2   :  { %v3029_v17 = vpop.xlane.xlu1 %3028  ;;  %v5121_v56 = vpop.eup %5120  ;;  %v3126_v25 = vsel %vm1723_vm0, %v6884_v26, 0.0  ;;  %v2969_v7 = vmul.f32 1.442695, %v2858_v19 }
 0x4d3   :  { %v2756_v55 = vpop.xlane.xlu0 %2755  ;;  %v6890_v35 = vpop.eup %5122  ;;  %3127 = vadd.xlane.f32.xlu0 %v3126_v25  ;;  %v3266_v50 = vmul.f32 %v5121_v56, %v6580_v9  ;;  %5132 = vrcp.f32 %v3029_v17 }
 0x4d4   :  { %v2856_v38 = vsub.f32 %v6611_v46, %v2756_v55  ;;  %v5125_v2 = vpop.eup %5124  ;;  %4536 = vmatpush3.bf16.msra.mxu1 %v7321_v53  ;;  %v3132_v48 = vsel %vm1723_vm0, %v6890_v35, 0.0  ;;  %v7324_v46 = vld [vmem:[#allocation34_spill] sm:$0xff] }
 0x4d5   :  { %4537 = vmatprep.subr.bf16.mxu1 %v7322_v54  ;;  %v3265_v47 = vmul.f32 %v5125_v2, %v7325_v13  ;;  %v7327_v55 = vld [vmem:[#allocation38_spill] sm:$0xff] }
 0x4d6   :  { %v5127_v22 = vpop.eup %5126  ;;  %v2965_v62 = vmul.f32 1.442695, %v2856_v38  ;;  %v2771_v4 = vpop.xlane.xlu1 %2770 }
 0x4d7   :  { %v3038_v15 = vpop.xlane.xlu0 %3037  ;;  %v3264_v16 = vmul.f32 %v5127_v22, %v7324_v46  ;;  %3133 = vadd.xlane.f32.xlu0 %v3132_v48  ;;  %v2861_v33 = vsub.f32 %v6620_v31, %v2771_v4  ;;  %v3326_v53 = vpack.c.bf16 %v3266_v50, %v3265_v47  ;;  %v7329_v46 = vld [vmem:[#allocation43_spill] sm:$0xff] }
 0x4d8   :  { %5134 = vpow2.f32 %v2965_v62  ;;  %4538 = vmatpush3.bf16.msra.mxu1 %v7322_v54  ;;  %v7328_v54 = vld [vmem:[#allocation41_spill] sm:$0xff] }
 0x4d9   :  { %v6901_v23 = vpop.eup %5128  ;;  %5136 = vrcp.f32 %v3038_v15  ;;  %v3325_v9 = vpack.c.bf16 %v3264_v16, %v3263_v11  ;;  %4547 = vmatprep.subr.bf16.mxu1 %v7326_v61  ;;  %v2975_v31 = vmul.f32 1.442695, %v2861_v33  ;;  %v7330_v33 = vld [vmem:[#allocation37_spill] sm:$0xff] }
 0x4da   :  { %5138 = vpow2.f32 %v2969_v7  ;;  %v2765_v19 = vpop.xlane.xlu1 %2764  ;;  %v3135_v39 = vsel %vm1723_vm0, %v6901_v23, 0.0  ;;  %v6908_v17 = vpop.eup %5130 }
 0x4db   :  { %5140 = vrcp.f32 %v3035_v12  ;;  %4527 = vmatprep.mubr.msk.bf16.mxu1 %vm1723_vm0, %v3325_v9  ;;  %v3032_v56 = vpop.xlane.xlu0 %3031  ;;  %v2859_v25 = vsub.f32 %v7327_v55, %v2765_v19  ;;  %3136 = vadd.xlane.f32.xlu1 %v3135_v39  ;;  %v3141_v22 = vsel %vm1723_vm0, %v6908_v17, 0.0 }
 0x4dc   :  { %5142 = vrcp.f32 %v3032_v56  ;;  %4528 = vmatmul.mubr.msk.bf16.gmra.mrb[112].mxu1 %vm1723_vm0, %v3326_v53 }
 0x4dd   :  { %v2971_v38 = vmul.f32 1.442695, %v2859_v25  ;;  %v5133_v62 = vpop.eup %5132  ;;  %v7331_v25 = vld [vmem:[#allocation36_spill] sm:$0xff] }
 0x4de   :  { %v3047_v2 = vpop.xlane.xlu1 %3046 }
 0x4df   :  { %5144 = vpow2.f32 %v2971_v38  ;;  %v2774_v7 = vpop.xlane.xlu0 %2773  ;;  %3142 = vadd.xlane.f32.xlu1 %v3141_v22  ;;  %v7332_v38 = vld [vmem:[#allocation39_spill] sm:$0xff] }
 0x4e0   :  { %5146 = vpow2.f32 %v2975_v31  ;;  %v2862_v4 = vsub.f32 %v7328_v54, %v2774_v7  ;;  %v3267_v31 = vmul.f32 %v5133_v62, %v7331_v25  ;;  %v7333_v7 = vld [vmem:[#allocation35_spill] sm:$0xff]  ;;  %v7337_v25 = vld [vmem:[#allocation48_spill] sm:$0xff] }
 0x4e2   :  { %v6915_v12 = vpop.eup %5134  ;;  %v3041_v50 = vpop.xlane.xlu1 %3040  ;;  %v2977_v19 = vmul.f32 1.442695, %v2862_v4 }
 0x4e3   :  { %v5137_v15 = vpop.eup %5136  ;;  %v2768_v48 = vpop.xlane.xlu0 %2767  ;;  %v3138_v24 = vsel %vm1723_vm0, %v6915_v12, 0.0  ;;  %5148 = vrcp.f32 %v3041_v50 }
 0x4e4   :  { %v6920_v11 = vpop.eup %5138  ;;  %v2860_v16 = vsub.f32 %v7329_v46, %v2768_v48  ;;  %3139 = vadd.xlane.f32.xlu0 %v3138_v24  ;;  %v3270_v9 = vmul.f32 %v5137_v15, %v7330_v33  ;;  %v7334_v15 = vld [vmem:[#allocation44_spill] sm:$0xff] }
 0x4e5   :  { %v5141_v13 = vpop.eup %5140  ;;  %v3144_v55 = vsel %vm1723_vm0, %v6920_v11, 0.0 }
 0x4e6   :  { %v5143_v47 = vpop.eup %5142  ;;  %v2973_v53 = vmul.f32 1.442695, %v2860_v16  ;;  %v2783_v39 = vpop.xlane.xlu1 %2782  ;;  %v3269_v54 = vmul.f32 %v5141_v13, %v7333_v7  ;;  %v7335_v13 = vld [vmem:[#allocation46_spill] sm:$0xff] }
 0x4e7   :  { %v3050_v56 = vpop.xlane.xlu0 %3049  ;;  %v3268_v22 = vmul.f32 %v5143_v47, %v7332_v38  ;;  %v2865_v4 = vsub.f32 %v7334_v15, %v2783_v39  ;;  %v7338_v38 = vld [vmem:[#allocation21_spill] sm:$0xff] }
 0x4e8   :  { %5150 = vpow2.f32 %v2973_v53  ;;  %3145 = vadd.xlane.f32.xlu0 %v3144_v55  ;;  %v3328_v46 = vpack.c.bf16 %v3270_v9, %v3269_v54  ;;  %v7336_v9 = vld [vmem:[#allocation20_spill] sm:$0xff] }
 0x4e9   :  { %v6929_v48 = vpop.eup %5144  ;;  %5152 = vrcp.f32 %v3050_v56  ;;  %v3327_v24 = vpack.c.bf16 %v3268_v22, %v3267_v31  ;;  %v2983_v53 = vmul.f32 1.442695, %v2865_v4  ;;  %v7340_v4 = vld [vmem:[#allocation49_spill] sm:$0xff] }
 0x4ea   :  { %5154 = vpow2.f32 %v2977_v19  ;;  %v2777_v50 = vpop.xlane.xlu1 %2776  ;;  %v3147_v16 = vsel %vm1723_vm0, %v6929_v48, 0.0  ;;  %v6934_v33 = vpop.eup %5146 }
 0x4eb   :  { %5156 = vrcp.f32 %v3047_v2  ;;  %4539 = vmatprep.mubr.msk.bf16.mxu1 %vm1723_vm0, %v3327_v24  ;;  %v3044_v62 = vpop.xlane.xlu0 %3043  ;;  %v2863_v47 = vsub.f32 %v7335_v13, %v2777_v50  ;;  %3148 = vadd.xlane.f32.xlu1 %v3147_v16  ;;  %v3153_v19 = vsel %vm1723_vm0, %v6934_v33, 0.0  ;;  %v7341_v13 = vld [vmem:[#allocation22_spill] sm:$0xff] }
 0x4ec   :  { %5158 = vrcp.f32 %v3044_v62  ;;  %4540 = vmatmul.mubr.msk.bf16.vlgmr.msra.gmra.mrb[116].mxu1 %vm1723_vm0, %v3328_v46 }
 0x4ed   :  { %v2979_v39 = vmul.f32 1.442695, %v2863_v47  ;;  %4548 = vmatpush3.bf16.msra.mxu1 %v7326_v61  ;;  %v5149_v56 = vpop.eup %5148 }
 0x4ee   :  { %4549 = vmatprep.subr.bf16.mxu1 %v7336_v9 }
 0x4ef   :  { %5160 = vpow2.f32 %v2979_v39  ;;  %v2786_v2 = vpop.xlane.xlu0 %2785  ;;  %3154 = vadd.xlane.f32.xlu1 %v3153_v19 }
 0x4f0   :  { %5162 = vpow2.f32 %v2983_v53  ;;  %v2866_v31 = vsub.f32 %v7337_v25, %v2786_v2  ;;  %v7342_v53 = vld [vmem:[#allocation45_spill] sm:$0xff]  ;;  %v7343_v2 = vld [vmem:[#allocation42_spill] sm:$0xff] }
 0x4f1   :  { %4550 = vmatpush3.bf16.msra.mxu1 %v7336_v9  ;;  %v3271_v25 = vmul.f32 %v5149_v56, %v7343_v2 }
 0x4f2   :  { %v6944_v55 = vpop.eup %5150  ;;  %4551 = vmatprep.subr.bf16.mxu1 %v7338_v38  ;;  %v3053_v22 = vpop.xlane.xlu1 %3052  ;;  %v2985_v16 = vmul.f32 1.442695, %v2866_v31 }
 0x4f3   :  { %v5153_v61 = vpop.eup %5152  ;;  %v2780_v7 = vpop.xlane.xlu0 %2779  ;;  %v3150_v54 = vsel %vm1723_vm0, %v6944_v55, 0.0  ;;  %5164 = vrcp.f32 %v3053_v22 }
 0x4f4   :  { %v6950_v15 = vpop.eup %5154  ;;  %v2864_v24 = vsub.f32 %v7340_v4, %v2780_v7  ;;  %3151 = vadd.xlane.f32.xlu0 %v3150_v54  ;;  %v3274_v39 = vmul.f32 %v5153_v61, %v7342_v53  ;;  %v7344_v7 = vld [vmem:[#allocation47_spill] sm:$0xff] }
 0x4f5   :  { %7339 = vst [vmem:[#allocation16_spill] sm:$0xff] %v6950_v15  ;;  %v5157_v46 = vpop.eup %5156  ;;  %4552 = vmatpush3.bf16.msra.mxu1 %v7338_v38  ;;  %v3156_v19 = vsel %vm1723_vm0, %v6950_v15, 0.0  ;;  %v7345_v38 = vld [vmem:[#allocation40_spill] sm:$0xff]  ;;  %v7346_v61 = vld [vmem:[#allocation23_spill] sm:$0xff] }
 0x4f6   :  { %v5159_v50 = vpop.eup %5158  ;;  %v2981_v62 = vmul.f32 1.442695, %v2864_v24  ;;  %4553 = vmatprep.subr.bf16.mxu1 %v7341_v13  ;;  %v2795_v47 = vpop.xlane.xlu1 %2794  ;;  %v3273_v4 = vmul.f32 %v5157_v46, %v7345_v38 }
 0x4f7   :  { %v3056_v9 = vpop.xlane.xlu0 %3055  ;;  %v3272_v54 = vmul.f32 %v5159_v50, %v7344_v7  ;;  %v2869_v24 = vsub.f32 %v6702_v6, %v2795_v47 }
 0x4f8   :  { %5166 = vpow2.f32 %v2981_v62  ;;  %3157 = vadd.xlane.f32.xlu0 %v3156_v19  ;;  %v3330_v15 = vpack.c.bf16 %v3274_v39, %v3273_v4 }
 0x4f9   :  { %v6961_v31 = vpop.eup %5160  ;;  %5168 = vrcp.f32 %v3056_v9  ;;  %4554 = vmatpush3.bf16.msra.mxu1 %v7341_v13  ;;  %v3329_v22 = vpack.c.bf16 %v3272_v54, %v3271_v25  ;;  %v2991_v6 = vmul.f32 1.442695, %v2869_v24 }
 0x4fa   :  { %5170 = vpow2.f32 %v2985_v16  ;;  %4563 = vmatprep.subr.bf16.mxu1 %v7346_v61  ;;  %v2789_v53 = vpop.xlane.xlu1 %2788  ;;  %v3159_v56 = vsel %vm1723_vm0, %v6961_v31, 0.0  ;;  %v6968_v50 = vpop.eup %5162 }
 0x4fb   :  { %4543 = vmatprep.mubr.msk.bf16.mxu1 %vm1723_vm0, %v3329_v22  ;;  %v2867_v46 = vsub.f32 %v6712_v27, %v2789_v53  ;;  %v2798_v62 = vpop.xlane.xlu0 %2797  ;;  %3160 = vadd.xlane.f32.xlu1 %v3159_v56  ;;  %v3165_v39 = vsel %vm1723_vm0, %v6968_v50, 0.0  ;;  %v7347_v53 = vld [vmem:[#allocation50_spill] sm:$0xff] }
 0x4fc   :  { %4544 = vmatmul.mubr.msk.bf16.gmra.mrb[120].mxu1 %vm1723_vm0, %v3330_v15  ;;  %v2870_v16 = vsub.f32 %v6718_v8, %v2798_v62 }
 0x4fd   :  { %v2987_v13 = vmul.f32 1.442695, %v2867_v46  ;;  %v5165_v2 = vpop.eup %5164 }
 0x4fe   :  { %v2807_v47 = vpop.xlane.xlu1 %2806  ;;  %v2993_v15 = vmul.f32 1.442695, %v2870_v16 }
 0x4ff   :  { %5172 = vpow2.f32 %v2987_v13  ;;  %v2792_v9 = vpop.xlane.xlu0 %2791  ;;  %3166 = vadd.xlane.f32.xlu1 %v3165_v39  ;;  %v2873_v27 = vsub.f32 %v6728_v0, %v2807_v47  ;;  %v3275_v0 = vmul.f32 %v5165_v2, %v7347_v53 }
 0x500   :  { %v2868_v19 = vsub.f32 %v6732_v18, %v2792_v9  ;;  %5174 = vpow2.f32 %v2991_v6 }
 0x501   :  { %v2999_v46 = vmul.f32 1.442695, %v2873_v27 }
 0x502   :  { %v6978_v25 = vpop.eup %5166  ;;  %v2989_v7 = vmul.f32 1.442695, %v2868_v19  ;;  %v2801_v54 = vpop.xlane.xlu1 %2800 }
 0x503   :  { %v5169_v38 = vpop.eup %5168  ;;  %v2871_v8 = vsub.f32 %v6741_v49, %v2801_v54  ;;  %v2810_v4 = vpop.xlane.xlu0 %2809  ;;  %v3162_v24 = vsel %vm1723_vm0, %v6978_v25, 0.0 }
 0x504   :  { %v6983_v22 = vpop.eup %5170  ;;  %5176 = vpow2.f32 %v2989_v7  ;;  %v2874_v18 = vsub.f32 %v6745_v44, %v2810_v4  ;;  %3163 = vadd.xlane.f32.xlu0 %v3162_v24  ;;  %v3276_v56 = vmul.f32 %v5169_v38, %v6704_v5 }
 0x505   :  { %v2995_v62 = vmul.f32 1.442695, %v2871_v8  ;;  %5178 = vpow2.f32 %v2993_v15  ;;  %v3168_v47 = vsel %vm1723_vm0, %v6983_v22, 0.0 }
 0x506   :  { %v3001_v6 = vmul.f32 1.442695, %v2874_v18  ;;  %v3331_v13 = vpack.c.bf16 %v3276_v56, %v3275_v0  ;;  %v3059_v49 = vpop.xlane.xlu1 %3058 }
 0x507   :  { %5180 = vpow2.f32 %v2995_v62  ;;  %v2804_v16 = vpop.xlane.xlu0 %2803 }
 0x508   :  { %4555 = vmatprep.mubr.msk.bf16.mxu1 %vm1723_vm0, %v3331_v13  ;;  %v2872_v44 = vsub.f32 %v6757_v32, %v2804_v16  ;;  %3169 = vadd.xlane.f32.xlu0 %v3168_v47  ;;  %5182 = vpow2.f32 %v2999_v46 }
 0x509   :  { %v6992_v39 = vpop.eup %5172  ;;  %5184 = vpow2.f32 %v3001_v6 }
 0x50a   :  { %v2997_v5 = vmul.f32 1.442695, %v2872_v44  ;;  %v3065_v9 = vpop.xlane.xlu1 %3064  ;;  %v3171_v19 = vsel %vm1723_vm0, %v6992_v39, 0.0  ;;  %v6996_v2 = vpop.eup %5174  ;;  %5186 = vrcp.f32 %v3059_v49 }
 0x50b   :  { %v3062_v27 = vpop.xlane.xlu0 %3061  ;;  %3172 = vadd.xlane.f32.xlu1 %v3171_v19  ;;  %v3177_v7 = vsel %vm1723_vm0, %v6996_v2, 0.0 }
 0x50c   :  { %5188 = vpow2.f32 %v2997_v5 }
 0x50d   :  { %5190 = vrcp.f32 %v3062_v27 }
 0x50e   :  { %v6998_v15 = vpop.eup %5176  ;;  %5192 = vrcp.f32 %v3065_v9  ;;  %v3071_v32 = vpop.xlane.xlu1 %3070 }
 0x50f   :  { %v3068_v54 = vpop.xlane.xlu0 %3067  ;;  %3178 = vadd.xlane.f32.xlu1 %v3177_v7  ;;  %v3174_v38 = vsel %vm1723_vm0, %v6998_v15, 0.0  ;;  %v7004_v8 = vpop.eup %5178 }
 0x510   :  { %5194 = vrcp.f32 %v3068_v54  ;;  %3175 = vadd.xlane.f32.xlu0 %v3174_v38  ;;  %v3180_v56 = vsel %vm1723_vm0, %v7004_v8, 0.0 }
 0x511   :  { %v7006_v4 = vpop.eup %5180  ;;  %5196 = vrcp.f32 %v3071_v32 }
 0x512   :  { %v3077_v24 = vpop.xlane.xlu1 %3076  ;;  %v3183_v18 = vsel %vm1723_vm0, %v7006_v4, 0.0  ;;  %v7010_v53 = vpop.eup %5182 }
 0x513   :  { %v3074_v0 = vpop.xlane.xlu0 %3073  ;;  %3184 = vadd.xlane.f32.xlu1 %v3183_v18  ;;  %v7014_v46 = vpop.eup %5184  ;;  %v3189_v49 = vsel %vm1723_vm0, %v7010_v53, 0.0 }
 0x514   :  { %5198 = vrcp.f32 %v3074_v0  ;;  %3181 = vadd.xlane.f32.xlu0 %v3180_v56  ;;  %v5187_v62 = vpop.eup %5186  ;;  %v3192_v38 = vsel %vm1723_vm0, %v7014_v46, 0.0  ;;  %v7348_v56 = vld [vmem:[#allocation24_spill] sm:$0xff] }
 0x515   :  { %5200 = vrcp.f32 %v3077_v24  ;;  %v3277_v9 = vmul.f32 %v5187_v62, %v6750_v1 }
 0x516   :  { %v7016_v6 = vpop.eup %5188  ;;  %v3083_v13 = vpop.xlane.xlu1 %3082 }
 0x517   :  { %v5191_v16 = vpop.eup %5190  ;;  %v3080_v47 = vpop.xlane.xlu0 %3079  ;;  %3190 = vadd.xlane.f32.xlu1 %v3189_v49  ;;  %v3186_v44 = vsel %vm1723_vm0, %v7016_v6, 0.0 }
 0x518   :  { %v5193_v5 = vpop.eup %5192  ;;  %v3278_v19 = vmul.f32 %v5191_v16, %v6767_v20  ;;  %5202 = vrcp.f32 %v3080_v47  ;;  %3187 = vadd.xlane.f32.xlu0 %v3186_v44 }
 0x519   :  { %5204 = vrcp.f32 %v3083_v13  ;;  %v3279_v24 = vmul.f32 %v5193_v5, %v6763_v52 }
 0x51a   :  { %v5195_v27 = vpop.eup %5194  ;;  %v3332_v32 = vpack.c.bf16 %v3278_v19, %v3277_v9  ;;  %v3089_v7 = vpop.xlane.xlu1 %3088 }
 0x51b   :  { %v3086_v54 = vpop.xlane.xlu0 %3085  ;;  %v3280_v18 = vmul.f32 %v5195_v27, %v6777_v14  ;;  %v5197_v0 = vpop.eup %5196  ;;  %v7350_v27 = vld [vmem:[#allocation26_spill] sm:$0xff] }
 0x51c   :  { %4556 = vmatmul.mubr.msk.bf16.vlgmr.msra.gmra.mrb[124].mxu1 %vm1723_vm0, %v3332_v32  ;;  %5206 = vrcp.f32 %v3086_v54  ;;  %3193 = vadd.xlane.f32.xlu0 %v3192_v38  ;;  %v3281_v52 = vmul.f32 %v5197_v0, %v6772_v34  ;;  %v7351_v38 = vld [vmem:[#allocation27_spill] sm:$0xff] }
 0x51d   :  { %4564 = vmatpush3.bf16.msra.mxu1 %v7346_v61  ;;  %v3333_v1 = vpack.c.bf16 %v3280_v18, %v3279_v24  ;;  %5208 = vrcp.f32 %v3089_v7  ;;  %v7349_v61 = vld [vmem:[#allocation25_spill] sm:$0xff] }
 0x51e   :  { %v5199_v20 = vpop.eup %5198  ;;  %4565 = vmatprep.subr.bf16.mxu1 %v7348_v56  ;;  %v3095_v62 = vpop.xlane.xlu1 %3094 }
 0x51f   :  { %4559 = vmatprep.mubr.msk.bf16.mxu1 %vm1723_vm0, %v3333_v1  ;;  %v3092_v13 = vpop.xlane.xlu0 %3091  ;;  %v3282_v14 = vmul.f32 %v5199_v20, %v6785_v43  ;;  %v5201_v49 = vpop.eup %5200  ;;  %v7352_v1 = vld [vmem:[#allocation28_spill] sm:$0xff] }
 0x520   :  { %5210 = vrcp.f32 %v3092_v13  ;;  %v3283_v5 = vmul.f32 %v5201_v49, %v6787_v60 }
 0x521   :  { %4566 = vmatpush3.bf16.msra.mxu1 %v7348_v56  ;;  %v3334_v16 = vpack.c.bf16 %v3282_v14, %v3281_v52  ;;  %5212 = vrcp.f32 %v3095_v62  ;;  %v7353_v62 = vld [vmem:[#allocation29_spill] sm:$0xff]  ;;  %v7354_v52 = vld [vmem:[#allocation30_spill] sm:$0xff] }
 0x522   :  { %v5203_v47 = vpop.eup %5202  ;;  %4567 = vmatprep.subr.bf16.mxu1 %v7349_v61 }
 0x523   :  { %v3098_v44 = vpop.xlane.xlu0 %3097  ;;  %v3284_v9 = vmul.f32 %v5203_v47, %v6795_v57  ;;  %v5205_v19 = vpop.eup %5204 }
 0x524   :  { %4560 = vmatmul.mubr.msk.bf16.gmra.mrb[128].mxu1 %vm1723_vm0, %v3334_v16  ;;  %5214 = vrcp.f32 %v3098_v44  ;;  %v3285_v32 = vmul.f32 %v5205_v19, %v6791_v59 }
 0x525   :  { %4568 = vmatpush3.bf16.msra.mxu1 %v7349_v61  ;;  %v3335_v34 = vpack.c.bf16 %v3284_v9, %v3283_v5 }
 0x526   :  { %v5207_v43 = vpop.eup %5206  ;;  %4569 = vmatprep.subr.bf16.mxu1 %v7350_v27 }
 0x527   :  { %v3286_v7 = vmul.f32 %v5207_v43, %v6801_v41  ;;  %4571 = vmatprep.mubr.msk.bf16.mxu1 %vm1723_vm0, %v3335_v34  ;;  %v5209_v54 = vpop.eup %5208 }
 0x528   :  { %v3287_v24 = vmul.f32 %v5209_v54, %v6803_v30 }
 0x529   :  { %v3336_v60 = vpack.c.bf16 %v3286_v7, %v3285_v32  ;;  %4570 = vmatpush3.bf16.msra.mxu1 %v7350_v27 }
 0x52a   :  { %v5211_v57 = vpop.eup %5210  ;;  %4579 = vmatprep.subr.bf16.mxu1 %v7351_v38 }
 0x52b   :  { %v3288_v18 = vmul.f32 %v5211_v57, %v6811_v37  ;;  %v5213_v0 = vpop.eup %5212 }
 0x52c   :  { %4572 = vmatmul.mubr.msk.bf16.vlgmr.msra.gmra.mrb[132].mxu1 %vm1723_vm0, %v3336_v60  ;;  %v3289_v20 = vmul.f32 %v5213_v0, %v6807_v45 }
 0x52d   :  { %4580 = vmatpush3.bf16.msra.mxu1 %v7351_v38  ;;  %v3337_v59 = vpack.c.bf16 %v3288_v18, %v3287_v24  ;;  %v7356_v24 = vld [vmem:[#allocation5_spill] sm:$0xff] }
 0x52e   :  { %v5215_v41 = vpop.eup %5214  ;;  %4581 = vmatprep.subr.bf16.mxu1 %v7352_v1 }
 0x52f   :  { %4575 = vmatprep.mubr.msk.bf16.mxu1 %vm1723_vm0, %v3337_v59  ;;  %v3290_v56 = vmul.f32 %v5215_v41, %v6817_v29  ;;  %v7355_v29 = vld [vmem:[#allocation31_spill] sm:$0xff]  ;;  %v7357_v59 = vld [vmem:[#allocation6_spill] sm:$0xff]  ;;  %v7359_v41 = vld [vmem:[#allocation8_spill] sm:$0xff] }
 0x531   :  { %4582 = vmatpush3.bf16.msra.mxu1 %v7352_v1  ;;  %v3338_v30 = vpack.c.bf16 %v3290_v56, %v3289_v20 }
 0x532   :  { %4583 = vmatprep.subr.bf16.mxu1 %v7353_v62  ;;  %v3101_v37 = vpop.xlane.xlu1 %3100 }
 0x533   :  { %5216 = vrcp.f32 %v3101_v37 }
 0x534   :  { %4576 = vmatmul.mubr.msk.bf16.gmra.mrb[136].mxu1 %vm1723_vm0, %v3338_v30  ;;  %v3104_v13 = vpop.xlane.xlu0 %3103 }
 0x535   :  { %4584 = vmatpush3.bf16.msra.mxu1 %v7353_v62  ;;  %5218 = vrcp.f32 %v3104_v13 }
 0x536   :  { %4585 = vmatprep.subr.bf16.mxu1 %v7354_v52  ;;  %v3107_v14 = vpop.xlane.xlu1 %3106 }
 0x537   :  { %5220 = vrcp.f32 %v3107_v14 }
 0x538   :  { %v3110_v45 = vpop.xlane.xlu0 %3109 }
 0x539   :  { %4586 = vmatpush3.bf16.msra.mxu1 %v7354_v52  ;;  %5222 = vrcp.f32 %v3110_v45 }
 0x53a   :  { %4595 = vmatprep.subr.bf16.mxu1 %v7355_v29  ;;  %v3113_v49 = vpop.xlane.xlu1 %3112 }
 0x53b   :  { %5224 = vrcp.f32 %v3113_v49 }
 0x53c   :  { %v3116_v16 = vpop.xlane.xlu0 %3115 }
 0x53d   :  { %v5217_v47 = vpop.eup %5216  ;;  %5226 = vrcp.f32 %v3116_v16 }
 0x53e   :  { %v3119_v61 = vpop.xlane.xlu1 %3118  ;;  %v3291_v9 = vmul.f32 %v5217_v47, %v6829_v40 }
 0x53f   :  { %v5219_v44 = vpop.eup %5218  ;;  %5228 = vrcp.f32 %v3119_v61 }
 0x540   :  { %v3122_v5 = vpop.xlane.xlu0 %3121  ;;  %v3292_v19 = vmul.f32 %v5219_v44, %v6835_v51 }
 0x541   :  { %v5221_v34 = vpop.eup %5220  ;;  %5230 = vrcp.f32 %v3122_v5 }
 0x542   :  { %v3339_v43 = vpack.c.bf16 %v3292_v19, %v3291_v9  ;;  %v3293_v32 = vmul.f32 %v5221_v34, %v6831_v58 }
 0x543   :  { %v5223_v27 = vpop.eup %5222 }
 0x544   :  { %v3294_v7 = vmul.f32 %v5223_v27, %v6839_v36  ;;  %4587 = vmatprep.mubr.msk.bf16.mxu1 %vm1723_vm0, %v3339_v43  ;;  %v7362_v43 = vld [vmem:[#allocation11_spill] sm:$0xff] }
 0x545   :  { %v5225_v54 = vpop.eup %5224 }
 0x546   :  { %v3340_v60 = vpack.c.bf16 %v3294_v7, %v3293_v32  ;;  %v3295_v38 = vmul.f32 %v5225_v54, %v6845_v42 }
 0x547   :  { %v5227_v57 = vpop.eup %5226 }
 0x548   :  { %4588 = vmatmul.mubr.msk.bf16.vlgmr.msra.gmra.mrb[140].mxu1 %vm1723_vm0, %v3340_v60  ;;  %v3296_v40 = vmul.f32 %v5227_v57, %v6851_v21  ;;  %v7358_v21 = vld [vmem:[#allocation7_spill] sm:$0xff] }
 0x549   :  { %v5229_v51 = vpop.eup %5228  ;;  %4596 = vmatpush3.bf16.msra.mxu1 %v7355_v29 }
 0x54a   :  { %4597 = vmatprep.subr.bf16.mxu1 %v7356_v24  ;;  %v3341_v18 = vpack.c.bf16 %v3296_v40, %v3295_v38  ;;  %v3297_v36 = vmul.f32 %v5229_v51, %v6847_v3 }
 0x54b   :  { %v5231_v58 = vpop.eup %5230 }
 0x54c   :  { %4591 = vmatprep.mubr.msk.bf16.mxu1 %vm1723_vm0, %v3341_v18  ;;  %v3298_v0 = vmul.f32 %v5231_v58, %v6855_v10 }
 0x54d   :  { %4598 = vmatpush3.bf16.msra.mxu1 %v7356_v24 }
 0x54e   :  { %4599 = vmatprep.subr.bf16.mxu1 %v7357_v59  ;;  %v3342_v42 = vpack.c.bf16 %v3298_v0, %v3297_v36 }
 0x550   :  { %4592 = vmatmul.mubr.msk.bf16.gmra.mrb[144].mxu1 %vm1723_vm0, %v3342_v42 }
 0x551   :  { %4600 = vmatpush3.bf16.msra.mxu1 %v7357_v59  ;;  %v7364_v59 = vld [vmem:[#allocation16_spill] sm:$0xff] }
 0x552   :  { %4601 = vmatprep.subr.bf16.mxu1 %v7358_v21 }
 0x555   :  { %4602 = vmatpush3.bf16.msra.mxu1 %v7358_v21 }
 0x556   :  { %4611 = vmatprep.subr.bf16.mxu1 %v7359_v41 }
 0x558   :  { %v3125_v1 = vpop.xlane.xlu1 %3124 }
 0x559   :  { %5232 = vrcp.f32 %v3125_v1 }
 0x55c   :  { %v3131_v3 = vpop.xlane.xlu1 %3130 }
 0x560   :  { %v3128_v20 = vpop.xlane.xlu0 %3127 }
 0x561   :  { %5234 = vrcp.f32 %v3128_v20 }
 0x562   :  { %5236 = vrcp.f32 %v3131_v3 }
 0x563   :  { %v5233_v56 = vpop.eup %5232 }
 0x564   :  { %v3134_v10 = vpop.xlane.xlu0 %3133  ;;  %v3299_v37 = vmul.f32 %v5233_v56, %v6869_v63  ;;  %v7360_v63 = vld [vmem:[#allocation9_spill] sm:$0xff] }
 0x565   :  { %5238 = vrcp.f32 %v3134_v10 }
 0x568   :  { %v3137_v30 = vpop.xlane.xlu1 %3136 }
 0x569   :  { %5240 = vrcp.f32 %v3137_v30 }
 0x56b   :  { %v5235_v62 = vpop.eup %5234 }
 0x56c   :  { %v3300_v13 = vmul.f32 %v5235_v62, %v6884_v26  ;;  %v5237_v52 = vpop.eup %5236  ;;  %v3143_v16 = vpop.xlane.xlu1 %3142 }
 0x56d   :  { %v3301_v29 = vmul.f32 %v5237_v52, %v6874_v28  ;;  %v7367_v52 = vld [vmem:[#allocation15_spill] sm:$0xff] }
 0x56e   :  { %v3343_v14 = vpack.c.bf16 %v3300_v13, %v3299_v37 }
 0x56f   :  { %v5239_v45 = vpop.eup %5238 }
 0x570   :  { %v3302_v49 = vmul.f32 %v5239_v45, %v6890_v35  ;;  %4603 = vmatprep.mubr.msk.bf16.mxu1 %vm1723_vm0, %v3343_v14  ;;  %v7361_v35 = vld [vmem:[#allocation10_spill] sm:$0xff] }
 0x571   :  { %v3140_v47 = vpop.xlane.xlu0 %3139 }
 0x572   :  { %5242 = vrcp.f32 %v3140_v47  ;;  %v3344_v61 = vpack.c.bf16 %v3302_v49, %v3301_v29 }
 0x573   :  { %5244 = vrcp.f32 %v3143_v16  ;;  %v5241_v26 = vpop.eup %5240 }
 0x574   :  { %4604 = vmatmul.mubr.msk.bf16.vlgmr.msra.gmra.mrb[148].mxu1 %vm1723_vm0, %v3344_v61  ;;  %v3303_v9 = vmul.f32 %v5241_v26, %v6901_v23  ;;  %v7363_v23 = vld [vmem:[#allocation12_spill] sm:$0xff] }
 0x575   :  { %v3146_v44 = vpop.xlane.xlu0 %3145  ;;  %4612 = vmatpush3.bf16.msra.mxu1 %v7359_v41 }
 0x576   :  { %5246 = vrcp.f32 %v3146_v44  ;;  %4613 = vmatprep.subr.bf16.mxu1 %v7360_v63 }
 0x578   :  { %v3149_v28 = vpop.xlane.xlu1 %3148 }
 0x579   :  { %4614 = vmatpush3.bf16.msra.mxu1 %v7360_v63  ;;  %5248 = vrcp.f32 %v3149_v28 }
 0x57a   :  { %4615 = vmatprep.subr.bf16.mxu1 %v7361_v35 }
 0x57c   :  { %v5243_v5 = vpop.eup %5242  ;;  %v3155_v7 = vpop.xlane.xlu1 %3154 }
 0x57d   :  { %v3304_v19 = vmul.f32 %v5243_v5, %v6915_v12  ;;  %v5245_v34 = vpop.eup %5244  ;;  %4616 = vmatpush3.bf16.msra.mxu1 %v7361_v35 }
 0x57e   :  { %4617 = vmatprep.subr.bf16.mxu1 %v7362_v43  ;;  %v3305_v60 = vmul.f32 %v5245_v34, %v6908_v17 }
 0x57f   :  { %v3345_v27 = vpack.c.bf16 %v3304_v19, %v3303_v9 }
 0x580   :  { %v5247_v32 = vpop.eup %5246 }
 0x581   :  { %v3152_v54 = vpop.xlane.xlu0 %3151  ;;  %4607 = vmatprep.mubr.msk.bf16.mxu1 %vm1723_vm0, %v3345_v27  ;;  %v3306_v57 = vmul.f32 %v5247_v32, %v6920_v11  ;;  %4618 = vmatpush3.bf16.msra.mxu1 %v7362_v43 }
 0x582   :  { %5250 = vrcp.f32 %v3152_v54  ;;  %4627 = vmatprep.subr.bf16.mxu1 %v7363_v23 }
 0x583   :  { %v3346_v12 = vpack.c.bf16 %v3306_v57, %v3305_v60  ;;  %5252 = vrcp.f32 %v3155_v7  ;;  %v5249_v40 = vpop.eup %5248 }
 0x584   :  { %v3307_v18 = vmul.f32 %v5249_v40, %v6929_v48  ;;  %v7365_v48 = vld [vmem:[#allocation13_spill] sm:$0xff] }
 0x585   :  { %v3158_v38 = vpop.xlane.xlu0 %3157  ;;  %4608 = vmatmul.mubr.msk.bf16.gmra.mrb[152].mxu1 %vm1723_vm0, %v3346_v12 }
 0x586   :  { %5254 = vrcp.f32 %v3158_v38 }
 0x588   :  { %v3161_v51 = vpop.xlane.xlu1 %3160 }
 0x589   :  { %5256 = vrcp.f32 %v3161_v51 }
 0x58c   :  { %v5251_v24 = vpop.eup %5250  ;;  %v3167_v21 = vpop.xlane.xlu1 %3166 }
 0x58d   :  { %v3308_v17 = vmul.f32 %v5251_v24, %v6944_v55  ;;  %v5253_v58 = vpop.eup %5252 }
 0x58e   :  { %v3309_v0 = vmul.f32 %v5253_v58, %v6934_v33  ;;  %v7366_v33 = vld [vmem:[#allocation14_spill] sm:$0xff] }
 0x58f   :  { %v3347_v11 = vpack.c.bf16 %v3308_v17, %v3307_v18 }
 0x590   :  { %v5255_v36 = vpop.eup %5254 }
 0x591   :  { %v3310_v42 = vmul.f32 %v5255_v36, %v7364_v59  ;;  %v3164_v41 = vpop.xlane.xlu0 %3163  ;;  %4619 = vmatprep.mubr.msk.bf16.mxu1 %vm1723_vm0, %v3347_v11 }
 0x592   :  { %5258 = vrcp.f32 %v3164_v41 }
 0x593   :  { %v3348_v1 = vpack.c.bf16 %v3310_v42, %v3309_v0  ;;  %5260 = vrcp.f32 %v3167_v21  ;;  %v5257_v20 = vpop.eup %5256 }
 0x594   :  { %v3311_v62 = vmul.f32 %v5257_v20, %v6961_v31 }
 0x595   :  { %v3170_v3 = vpop.xlane.xlu0 %3169  ;;  %4620 = vmatmul.mubr.msk.bf16.vlgmr.msra.gmra.mrb[156].mxu1 %vm1723_vm0, %v3348_v1 }
 0x596   :  { %5262 = vrcp.f32 %v3170_v3  ;;  %4628 = vmatpush3.bf16.msra.mxu1 %v7363_v23 }
 0x597   :  { %4629 = vmatprep.subr.bf16.mxu1 %v7365_v48 }
 0x598   :  { %v3173_v55 = vpop.xlane.xlu1 %3172 }
 0x599   :  { %5264 = vrcp.f32 %v3173_v55 }
 0x59a   :  { %4630 = vmatpush3.bf16.msra.mxu1 %v7365_v48 }
 0x59b   :  { %4631 = vmatprep.subr.bf16.mxu1 %v7366_v33 }
 0x59c   :  { %v5259_v10 = vpop.eup %5258  ;;  %v3179_v56 = vpop.xlane.xlu1 %3178 }
 0x59d   :  { %v3176_v30 = vpop.xlane.xlu0 %3175  ;;  %v3312_v37 = vmul.f32 %v5259_v10, %v6978_v25  ;;  %v5261_v13 = vpop.eup %5260 }
 0x59e   :  { %5266 = vrcp.f32 %v3176_v30  ;;  %4632 = vmatpush3.bf16.msra.mxu1 %v7366_v33  ;;  %v4525_v14 = vpop.f32.mrb[108].mxu1  ;;  %v3313_v25 = vmul.f32 %v5261_v13, %v6968_v50 }
 0x59f   :  { %4633 = vmatprep.subr.bf16.mxu1 %v7367_v52  ;;  %v3349_v45 = vpack.c.bf16 %v3312_v37, %v3311_v62  ;;  %5268 = vrcp.f32 %v3179_v56  ;;  %3973 = vst.msk [vmem:[#allocation2 + $0x10] sm:$0xff] %vm1723_vm0, %v4525_v14  ;;  %v3401_v49 = vpop.f32.mrb[109].mxu1 }
 0x5a0   :  { %v5263_v29 = vpop.eup %5262  ;;  %v3185_v16 = vpop.xlane.xlu1 %3184  ;;  %3971 = vst.msk [vmem:[#allocation2] sm:$0xff] %vm1723_vm0, %v3401_v49 }
 0x5a1   :  { %v4526_v47 = vpop.f32.mrb[110].mxu1  ;;  %v3182_v31 = vpop.xlane.xlu0 %3181  ;;  %4623 = vmatprep.mubr.msk.bf16.mxu1 %vm1723_vm0, %v3349_v45  ;;  %v3314_v61 = vmul.f32 %v5263_v29, %v6983_v22 }
 0x5a2   :  { %3974 = vst.msk [vmem:[#allocation2 + $0x18] sm:$0xff] %vm1723_vm0, %v4526_v47  ;;  %5270 = vrcp.f32 %v3182_v31  ;;  %4634 = vmatpush3.bf16.msra.mxu1 %v7367_v52  ;;  %v3404_v44 = vpop.f32.mrb[111].mxu1 }
 0x5a3   :  { %3972 = vst.msk [vmem:[#allocation2 + $0x8] sm:$0xff] %vm1723_vm0, %v3404_v44  ;;  %v3350_v63 = vpack.c.bf16 %v3314_v61, %v3313_v25  ;;  %5272 = vrcp.f32 %v3185_v16  ;;  %v5265_v35 = vpop.eup %5264 }
 0x5a4   :  { %v3191_v26 = vpop.xlane.xlu1 %3190  ;;  %v3315_v22 = vmul.f32 %v5265_v35, %v6992_v39 }
 0x5a5   :  { %v3188_v28 = vpop.xlane.xlu0 %3187  ;;  %4624 = vmatmul.mubr.msk.bf16.gmra.mrb[160].mxu1 %vm1723_vm0, %v3350_v63 }
 0x5a6   :  { %5274 = vrcp.f32 %v3188_v28 }
 0x5a7   :  { %5276 = vrcp.f32 %v3191_v26 }
 0x5a8   :  { %v5267_v5 = vpop.eup %5266 }
 0x5a9   :  { %v3194_v50 = vpop.xlane.xlu0 %3193  ;;  %v3316_v9 = vmul.f32 %v5267_v5, %v6998_v15  ;;  %v5269_v19 = vpop.eup %5268 }
 0x5aa   :  { %5278 = vrcp.f32 %v3194_v50  ;;  %v3317_v27 = vmul.f32 %v5269_v19, %v6996_v2 }
 0x5ab   :  { %v3351_v34 = vpack.c.bf16 %v3316_v9, %v3315_v22 }
 0x5ac   :  { %v5271_v43 = vpop.eup %5270 }
 0x5ad   :  { %v3318_v32 = vmul.f32 %v5271_v43, %v7004_v8  ;;  %4635 = vmatprep.mubr.msk.bf16.mxu1 %vm1723_vm0, %v3351_v34  ;;  %v5273_v7 = vpop.eup %5272 }
 0x5ae   :  { %v3319_v15 = vmul.f32 %v5273_v7, %v7006_v4 }
 0x5af   :  { %v3352_v54 = vpack.c.bf16 %v3318_v32, %v3317_v27  ;;  %v4529_v60 = vpop.f32.mrb[112].mxu1 }
 0x5b0   :  { %v5275_v57 = vpop.eup %5274  ;;  %3977 = vst.msk [vmem:[#allocation2 + $0x30] sm:$0xff] %vm1723_vm0, %v4529_v60  ;;  %v3417_v23 = vpop.f32.mrb[113].mxu1 }
 0x5b1   :  { %3975 = vst.msk [vmem:[#allocation2 + $0x20] sm:$0xff] %vm1723_vm0, %v3417_v23  ;;  %v4530_v39 = vpop.f32.mrb[114].mxu1  ;;  %4636 = vmatmul.mubr.msk.bf16.vlgmr.msra.gmra.mrb[164].mxu1 %vm1723_vm0, %v3352_v54  ;;  %v3320_v2 = vmul.f32 %v5275_v57, %v7016_v6  ;;  %v5277_v12 = vpop.eup %5276 }
 0x5b2   :  { %3978 = vst.msk [vmem:[#allocation2 + $0x38] sm:$0xff] %vm1723_vm0, %v4530_v39  ;;  %v3420_v8 = vpop.f32.mrb[115].mxu1  ;;  %v3321_v51 = vmul.f32 %v5277_v12, %v7010_v53 }
 0x5b3   :  { %3976 = vst.msk [vmem:[#allocation2 + $0x28] sm:$0xff] %vm1723_vm0, %v3420_v8  ;;  %v3353_v38 = vpack.c.bf16 %v3320_v2, %v3319_v15 }
 0x5b4   :  { %v5279_v40 = vpop.eup %5278 }
 0x5b5   :  { %4639 = vmatprep.mubr.msk.bf16.mxu1 %vm1723_vm0, %v3353_v38  ;;  %v3322_v24 = vmul.f32 %v5279_v40, %v7014_v46 }
 0x5b7   :  { %v3354_v18 = vpack.c.bf16 %v3322_v24, %v3321_v51 }
 0x5b9   :  { %4640 = vmatmul.mubr.msk.bf16.gmra.mrb[168].mxu1 %vm1723_vm0, %v3354_v18 }
 0x5bf   :  { %v4541_v4 = vpop.f32.mrb[116].mxu1 }
 0x5c0   :  { %3981 = vst.msk [vmem:[#allocation2 + $0x50] sm:$0xff] %vm1723_vm0, %v4541_v4  ;;  %v3478_v6 = vpop.f32.mrb[117].mxu1 }
 0x5c1   :  { %3979 = vst.msk [vmem:[#allocation2 + $0x40] sm:$0xff] %vm1723_vm0, %v3478_v6  ;;  %v4542_v17 = vpop.f32.mrb[118].mxu1 }
 0x5c2   :  { %3982 = vst.msk [vmem:[#allocation2 + $0x58] sm:$0xff] %vm1723_vm0, %v4542_v17  ;;  %v3481_v58 = vpop.f32.mrb[119].mxu1 }
 0x5c3   :  { %3980 = vst.msk [vmem:[#allocation2 + $0x48] sm:$0xff] %vm1723_vm0, %v3481_v58 }
 0x5cf   :  { %v4545_v11 = vpop.f32.mrb[120].mxu1 }
 0x5d0   :  { %3985 = vst.msk [vmem:[#allocation2 + $0x70] sm:$0xff] %vm1723_vm0, %v4545_v11  ;;  %v3494_v53 = vpop.f32.mrb[121].mxu1 }
 0x5d1   :  { %3983 = vst.msk [vmem:[#allocation2 + $0x60] sm:$0xff] %vm1723_vm0, %v3494_v53  ;;  %v4546_v46 = vpop.f32.mrb[122].mxu1 }
 0x5d2   :  { %3986 = vst.msk [vmem:[#allocation2 + $0x78] sm:$0xff] %vm1723_vm0, %v4546_v46  ;;  %v3497_v36 = vpop.f32.mrb[123].mxu1 }
 0x5d3   :  { %3984 = vst.msk [vmem:[#allocation2 + $0x68] sm:$0xff] %vm1723_vm0, %v3497_v36 }
 0x5ef   :  { %v4557_v0 = vpop.f32.mrb[124].mxu1 }
 0x5f0   :  { %3989 = vst.msk [vmem:[#allocation2 + $0x90] sm:$0xff] %vm1723_vm0, %v4557_v0  ;;  %v3555_v59 = vpop.f32.mrb[125].mxu1 }
 0x5f1   :  { %3987 = vst.msk [vmem:[#allocation2 + $0x80] sm:$0xff] %vm1723_vm0, %v3555_v59  ;;  %v4558_v42 = vpop.f32.mrb[126].mxu1 }
 0x5f2   :  { %3990 = vst.msk [vmem:[#allocation2 + $0x98] sm:$0xff] %vm1723_vm0, %v4558_v42  ;;  %v3558_v21 = vpop.f32.mrb[127].mxu1 }
 0x5f3   :  { %3988 = vst.msk [vmem:[#allocation2 + $0x88] sm:$0xff] %vm1723_vm0, %v3558_v21 }
 0x5f7   :  { %v4561_v41 = vpop.f32.mrb[128].mxu1 }
 0x5f8   :  { %3993 = vst.msk [vmem:[#allocation2 + $0xb0] sm:$0xff] %vm1723_vm0, %v4561_v41  ;;  %v3571_v1 = vpop.f32.mrb[129].mxu1 }
 0x5f9   :  { %3991 = vst.msk [vmem:[#allocation2 + $0xa0] sm:$0xff] %vm1723_vm0, %v3571_v1  ;;  %v4562_v3 = vpop.f32.mrb[130].mxu1 }
 0x5fa   :  { %3994 = vst.msk [vmem:[#allocation2 + $0xb8] sm:$0xff] %vm1723_vm0, %v4562_v3  ;;  %v3574_v48 = vpop.f32.mrb[131].mxu1 }
 0x5fb   :  { %3992 = vst.msk [vmem:[#allocation2 + $0xa8] sm:$0xff] %vm1723_vm0, %v3574_v48 }
 0x5ff   :  { %v4573_v55 = vpop.f32.mrb[132].mxu1 }
 0x600   :  { %3997 = vst.msk [vmem:[#allocation2 + $0xd0] sm:$0xff] %vm1723_vm0, %v4573_v55  ;;  %v3632_v20 = vpop.f32.mrb[133].mxu1 }
 0x601   :  { %3995 = vst.msk [vmem:[#allocation2 + $0xc0] sm:$0xff] %vm1723_vm0, %v3632_v20  ;;  %v4574_v33 = vpop.f32.mrb[134].mxu1 }
 0x602   :  { %3998 = vst.msk [vmem:[#allocation2 + $0xd8] sm:$0xff] %vm1723_vm0, %v4574_v33  ;;  %v3635_v10 = vpop.f32.mrb[135].mxu1 }
 0x603   :  { %3996 = vst.msk [vmem:[#allocation2 + $0xc8] sm:$0xff] %vm1723_vm0, %v3635_v10 }
 0x607   :  { %v4577_v56 = vpop.f32.mrb[136].mxu1 }
 0x608   :  { %4001 = vst.msk [vmem:[#allocation2 + $0xf0] sm:$0xff] %vm1723_vm0, %v4577_v56  ;;  %v3648_v30 = vpop.f32.mrb[137].mxu1 }
 0x609   :  { %3999 = vst.msk [vmem:[#allocation2 + $0xe0] sm:$0xff] %vm1723_vm0, %v3648_v30  ;;  %v4578_v62 = vpop.f32.mrb[138].mxu1 }
 0x60a   :  { %4002 = vst.msk [vmem:[#allocation2 + $0xf8] sm:$0xff] %vm1723_vm0, %v4578_v62  ;;  %v3651_v37 = vpop.f32.mrb[139].mxu1 }
 0x60b   :  { %4000 = vst.msk [vmem:[#allocation2 + $0xe8] sm:$0xff] %vm1723_vm0, %v3651_v37 }
 0x61b   :  { %v4589_v13 = vpop.f32.mrb[140].mxu1 }
 0x61c   :  { %4005 = vst.msk [vmem:[#allocation2 + $0x110] sm:$0xff] %vm1723_vm0, %v4589_v13  ;;  %v3709_v52 = vpop.f32.mrb[141].mxu1 }
 0x61d   :  { %4003 = vst.msk [vmem:[#allocation2 + $0x100] sm:$0xff] %vm1723_vm0, %v3709_v52  ;;  %v4590_v14 = vpop.f32.mrb[142].mxu1 }
 0x61e   :  { %4006 = vst.msk [vmem:[#allocation2 + $0x118] sm:$0xff] %vm1723_vm0, %v4590_v14  ;;  %v3712_v45 = vpop.f32.mrb[143].mxu1 }
 0x61f   :  { %4004 = vst.msk [vmem:[#allocation2 + $0x108] sm:$0xff] %vm1723_vm0, %v3712_v45 }
 0x623   :  { %v4593_v29 = vpop.f32.mrb[144].mxu1 }
 0x624   :  { %4009 = vst.msk [vmem:[#allocation2 + $0x130] sm:$0xff] %vm1723_vm0, %v4593_v29  ;;  %v3725_v49 = vpop.f32.mrb[145].mxu1 }
 0x625   :  { %4007 = vst.msk [vmem:[#allocation2 + $0x120] sm:$0xff] %vm1723_vm0, %v3725_v49  ;;  %v4594_v16 = vpop.f32.mrb[146].mxu1 }
 0x626   :  { %4010 = vst.msk [vmem:[#allocation2 + $0x138] sm:$0xff] %vm1723_vm0, %v4594_v16  ;;  %v3728_v47 = vpop.f32.mrb[147].mxu1 }
 0x627   :  { %4008 = vst.msk [vmem:[#allocation2 + $0x128] sm:$0xff] %vm1723_vm0, %v3728_v47 }
 0x647   :  { %v4605_v31 = vpop.f32.mrb[148].mxu1 }
 0x648   :  { %4013 = vst.msk [vmem:[#allocation2 + $0x150] sm:$0xff] %vm1723_vm0, %v4605_v31  ;;  %v3786_v25 = vpop.f32.mrb[149].mxu1 }
 0x649   :  { %4011 = vst.msk [vmem:[#allocation2 + $0x140] sm:$0xff] %vm1723_vm0, %v3786_v25  ;;  %v4606_v61 = vpop.f32.mrb[150].mxu1 }
 0x64a   :  { %4014 = vst.msk [vmem:[#allocation2 + $0x158] sm:$0xff] %vm1723_vm0, %v4606_v61  ;;  %v3789_v44 = vpop.f32.mrb[151].mxu1 }
 0x64b   :  { %4012 = vst.msk [vmem:[#allocation2 + $0x148] sm:$0xff] %vm1723_vm0, %v3789_v44 }
 0x658   :  { %v4609_v63 = vpop.f32.mrb[152].mxu1 }
 0x659   :  { %4017 = vst.msk [vmem:[#allocation2 + $0x170] sm:$0xff] %vm1723_vm0, %v4609_v63  ;;  %v3802_v26 = vpop.f32.mrb[153].mxu1 }
 0x65a   :  { %4015 = vst.msk [vmem:[#allocation2 + $0x160] sm:$0xff] %vm1723_vm0, %v3802_v26  ;;  %v4610_v28 = vpop.f32.mrb[154].mxu1 }
 0x65b   :  { %4018 = vst.msk [vmem:[#allocation2 + $0x178] sm:$0xff] %vm1723_vm0, %v4610_v28  ;;  %v3805_v35 = vpop.f32.mrb[155].mxu1 }
 0x65c   :  { %4016 = vst.msk [vmem:[#allocation2 + $0x168] sm:$0xff] %vm1723_vm0, %v3805_v35 }
 0x668   :  { %v4621_v5 = vpop.f32.mrb[156].mxu1 }
 0x669   :  { %4021 = vst.msk [vmem:[#allocation2 + $0x190] sm:$0xff] %vm1723_vm0, %v4621_v5  ;;  %v3863_v50 = vpop.f32.mrb[157].mxu1 }
 0x66a   :  { %4019 = vst.msk [vmem:[#allocation2 + $0x180] sm:$0xff] %vm1723_vm0, %v3863_v50  ;;  %v4622_v22 = vpop.f32.mrb[158].mxu1 }
 0x66b   :  { %4022 = vst.msk [vmem:[#allocation2 + $0x198] sm:$0xff] %vm1723_vm0, %v4622_v22  ;;  %v3866_v9 = vpop.f32.mrb[159].mxu1 }
 0x66c   :  { %4020 = vst.msk [vmem:[#allocation2 + $0x188] sm:$0xff] %vm1723_vm0, %v3866_v9 }
 0x678   :  { %v4625_v19 = vpop.f32.mrb[160].mxu1 }
 0x679   :  { %4025 = vst.msk [vmem:[#allocation2 + $0x1b0] sm:$0xff] %vm1723_vm0, %v4625_v19  ;;  %v3879_v34 = vpop.f32.mrb[161].mxu1 }
 0x67a   :  { %4023 = vst.msk [vmem:[#allocation2 + $0x1a0] sm:$0xff] %vm1723_vm0, %v3879_v34  ;;  %v4626_v43 = vpop.f32.mrb[162].mxu1 }
 0x67b   :  { %4026 = vst.msk [vmem:[#allocation2 + $0x1b8] sm:$0xff] %vm1723_vm0, %v4626_v43  ;;  %v3882_v27 = vpop.f32.mrb[163].mxu1 }
 0x67c   :  { %4024 = vst.msk [vmem:[#allocation2 + $0x1a8] sm:$0xff] %vm1723_vm0, %v3882_v27 }
 0x684   :  { %v4637_v32 = vpop.f32.mrb[164].mxu1 }
 0x685   :  { %4029 = vst.msk [vmem:[#allocation2 + $0x1d0] sm:$0xff] %vm1723_vm0, %v4637_v32  ;;  %v3940_v7 = vpop.f32.mrb[165].mxu1 }
 0x686   :  { %4027 = vst.msk [vmem:[#allocation2 + $0x1c0] sm:$0xff] %vm1723_vm0, %v3940_v7  ;;  %v4638_v54 = vpop.f32.mrb[166].mxu1 }
 0x687   :  { %4030 = vst.msk [vmem:[#allocation2 + $0x1d8] sm:$0xff] %vm1723_vm0, %v4638_v54  ;;  %v3943_v60 = vpop.f32.mrb[167].mxu1 }
 0x688   :  { %4028 = vst.msk [vmem:[#allocation2 + $0x1c8] sm:$0xff] %vm1723_vm0, %v3943_v60 }
 0x68c   :  { %v4641_v57 = vpop.f32.mrb[168].mxu1 }
 0x68d   :  { %4033 = vst.msk [vmem:[#allocation2 + $0x1f0] sm:$0xff] %vm1723_vm0, %v4641_v57  ;;  %v3956_v23 = vpop.f32.mrb[169].mxu1 }
 0x68e   :  { %4031 = vst.msk [vmem:[#allocation2 + $0x1e0] sm:$0xff] %vm1723_vm0, %v3956_v23  ;;  %v4642_v39 = vpop.f32.mrb[170].mxu1 }
 0x68f   :  { %4034 = vst.msk [vmem:[#allocation2 + $0x1f8] sm:$0xff] %vm1723_vm0, %v4642_v39  ;;  %v3959_v15 = vpop.f32.mrb[171].mxu1 }
 0x690   :  { %4032 = vst.msk [vmem:[#allocation2 + $0x1e8] sm:$0xff] %vm1723_vm0, %v3959_v15 }
 0x691   :  { %5291 = shalt.err (!%p5288_p4)
}
 0x692   :  { %s5292_s16 = scalar_lea.hbm %s7210_s2, 8192 }
 0x693   :  { %p5293_p5 = scmp.ne.s32.totalorder %s7210_s2, %s5292_s16  ;;  %p5296_p6 = scmp.lt.u32.totalorder %s5292_s16, %s7210_s2 }
 0x695   :  { %p5298_p7 = pnand %p5296_p6, %p5293_p5 }
 0x697   :  { %5301 = shalt.err (!%p5298_p7)
}
 0x698   :  { %s5307_s1 = smov 128   ;;  %s5308_s21 = smov 8  }
 0x699   :  { %4046 = dma.vmem_to_hbm [thread:$0]  %s4041_s12, 8192, %s7210_s2, [#allocation3], %s5307_s1, %s5307_s1, %s5308_s21  }
 0x69a   :  { %5302 = dma.done.wait [#allocation3], 8192  }
 0x69b   :  { %5303 = vsyncadd [#allocation3], 4294959104 }
 0x69c   :  { %4050 = vsyncpa [#allocation3], 1 }

</bundles_post_ra>
